<compile_context>
chip_gen: v5e
topology: v5e:2x2
jax: 0.10.0
libtpu: 0.0.40
codegen_flags: <defaults>
</compile_context>

<pallas_src>
import numpy as np
import jax
import jax.numpy as jnp
from jax.experimental import pallas as pl
from jax.experimental.pallas import tpu as pltpu

BASIS_DIM = 20


def _gnn3_kernel(x_ref, a_ref, cl_ref, cr_ref, ce_ref, ccol_ref, crow_ref, bias_ref, o_ref):
    # x_ref    : (1, D, N, N)   VMEM  input features
    # a_ref    : (1, N, N)      VMEM  adjacency
    # cl_ref   : (3, D, 1, E*N) VMEM  lane-replicated coeffs, matmul family  [(xA)^T@A, xA@A, x^T@A]
    # cr_ref   : (3, D, 1, E*N) VMEM  coeffs for the transposed matmul family
    # ce_ref   : (4, D, 1, E*N) VMEM  elementwise family [x*AAt, x*rowA_i, x*rowA_j, x]
    # ccol_ref : (4*D, E*N)     VMEM  column-broadcast family weight matrix (one MXU matmul)
    # crow_ref : (4, D, E*N)    VMEM  row-broadcast family lane-replicated coeffs
    # bias_ref : (1, E*N)       VMEM
    # o_ref    : (1, N, E*N)    VMEM  out[b, i, e*N + j] = output[b, e, i, j]
    D = x_ref.shape[1]
    N = x_ref.shape[2]
    EN = o_ref.shape[2]
    E = EN // N

    A = a_ref[0]                                       # (N, N)
    At = A.T
    AAT = jnp.dot(A, At, preferred_element_type=jnp.float32)
    rowA_col = jnp.sum(A, axis=1, keepdims=True)       # (N,1): sum_k A[i,k]
    rowA_row = jnp.sum(At, axis=0, keepdims=True)      # (1,N): sum_k A[j,k]

    x_all = x_ref[0]                                   # (D, N, N)
    xA_all = x_all * A                                 # (D, N, N): x_d * A (bulk, reused)
    xs = [x_all[d] for d in range(D)]
    xts = [xd.T for xd in xs]
    xAs = [xA_all[d] for d in range(D)]
    xAts = [xts[d] * At for d in range(D)]             # == (x_d * A).T

    # ---- bulk rank-1 reductions shared by the column/row broadcast families ----
    rA_all = jnp.sum(xA_all, axis=2)                   # (D,N): rowsum(x_d*A)[i]
    sA_all = jnp.sum(xA_all, axis=1)                   # (D,N): colsum(x_d*A)[i]
    rx_all = jnp.sum(x_all, axis=2)                    # (D,N): rowsum(x_d)[i]
    cx_all = jnp.sum(x_all, axis=1)                    # (D,N): colsum(x_d)[i]

    # ---- column-broadcast family (op4/op5/op10/T(op11)): ONE small MXU matmul ----
    col_stack = jnp.concatenate([rA_all, sA_all, rx_all, cx_all], axis=0)   # (4D, N)
    acc = jnp.dot(col_stack.T, ccol_ref[...], preferred_element_type=jnp.float32)  # (N, EN)

    # ---- row-broadcast family (+ bias): build one (1,EN) row, broadcast-add once ----
    def rep(m):                                        # (D,N) -> (D,EN)
        return jnp.tile(m, (1, E))
    row_mix = (crow_ref[0] * rep(rA_all) + crow_ref[1] * rep(sA_all)
               + crow_ref[2] * rep(rx_all) + crow_ref[3] * rep(cx_all))     # (D, EN)
    acc = acc + (bias_ref[...] + jnp.sum(row_mix, axis=0, keepdims=True))   # (1,EN) bcast

    # ---- matmul family: single batched MXU call for all d and all 3 basis kinds ----
    # block (s, d) of left_res is S_{s,d} @ A with S = [(x_d*A)^T, x_d*A, x_d^T][s].
    left_cat = jnp.concatenate(xAts + xAs + xts, axis=0)            # (3*D*N, N)
    left_res = jnp.dot(left_cat, A, preferred_element_type=jnp.float32)

    for s in range(3):
        for d in range(D):
            blk = left_res[(s * D + d) * N:(s * D + d + 1) * N, :]  # (N, N)
            # transposed ops (op1t/op2t/op6t) == blk.T : XLU transpose, no extra matmul
            acc = acc + jnp.tile(blk, (1, E)) * cl_ref[s, d]
            acc = acc + jnp.tile(blk.T, (1, E)) * cr_ref[s, d]

    # ---- elementwise family: x * {A A^T, rowsum(A)_i, rowsum(A)_j, 1} ----
    aat_rep = jnp.tile(AAT, (1, E))                    # hoisted (no CSE of broadcasts)
    rowa_row_rep = jnp.tile(rowA_row, (1, E))
    for d in range(D):
        mult = (ce_ref[0, d] * aat_rep
                + ce_ref[1, d] * rowA_col
                + ce_ref[2, d] * rowa_row_rep
                + ce_ref[3, d])
        acc = acc + jnp.tile(xs[d], (1, E)) * mult

    o_ref[0] = acc


def simple_gnn3_forward(x, A, coeffs, bias, normalization=True):
    """x: (B, D, N, N) f32, A: (B, N, N) f32, coeffs: (D, E, 20), bias: (E,) -> (B, E, N, N)."""
    B, D, N, _ = x.shape
    E = coeffs.shape[1]
    EN = E * N
    inv = jnp.float32(1.0 / N) if normalization else jnp.float32(1.0)

    # --- coefficient grouping / folding (plain JAX, done once) ---
    c = coeffs.astype(jnp.float32)
    # matmul family: op1 uses (x*A)^T, op2 uses x*A, op6 uses x^T ; ops7 bug folds r=11/12
    cL = jnp.stack([c[:, :, 0], c[:, :, 2], c[:, :, 9] + c[:, :, 11]], axis=0) * inv   # (3, D, E)
    cR = jnp.stack([c[:, :, 1], c[:, :, 3], c[:, :, 10] + c[:, :, 12]], axis=0) * inv  # (3, D, E)
    # elementwise family: [x*AAt (r=4), x*rowA_i (13), x*rowA_j (14), raw x (19, not normalized)]
    cE = jnp.stack([c[:, :, 4] * inv, c[:, :, 13] * inv, c[:, :, 14] * inv, c[:, :, 19]], axis=0)
    # column-broadcast family [rA (5), sA (7), rowsum(x) (15), colsum(x) (18)]
    cC = jnp.stack([c[:, :, 5], c[:, :, 7], c[:, :, 15], c[:, :, 18]], axis=0) * inv   # (4, D, E)
    # row-broadcast family    [rA (6), sA (8), rowsum(x) (16), colsum(x) (17)]
    cW = jnp.stack([c[:, :, 6], c[:, :, 8], c[:, :, 16], c[:, :, 17]], axis=0) * inv   # (4, D, E)

    def lane_rep(w):                                   # (G, D, E) -> (G, D, 1, E*N)
        G = w.shape[0]
        return jnp.repeat(w, N, axis=-1).reshape(G, D, 1, EN)

    cL_r, cR_r, cE_r = lane_rep(cL), lane_rep(cR), lane_rep(cE)
    # weight matrix for the column-family MXU matmul: rows are family-major, channel-minor,
    # matching col_stack = concat([rA_all, sA_all, rx_all, cx_all]) in the kernel.
    ccol_mat = jnp.repeat(cC.reshape(4 * D, E), N, axis=-1)           # (4*D, E*N)
    crow_rep = jnp.repeat(cW, N, axis=-1)                             # (4, D, E*N)
    bias_row = jnp.repeat(bias.reshape(E).astype(jnp.float32), N)[None, :]  # (1, E*N)

    def full_spec(shape):
        return pl.BlockSpec(shape, lambda b, _s=shape: (0,) * len(_s))

    out_flat = pl.pallas_call(
        _gnn3_kernel,
        out_shape=jax.ShapeDtypeStruct((B, N, EN), jnp.float32),
        grid_spec=pltpu.PrefetchScalarGridSpec(
            num_scalar_prefetch=0,
            grid=(B,),
            in_specs=[
                pl.BlockSpec((1, D, N, N), lambda b: (b, 0, 0, 0)),
                pl.BlockSpec((1, N, N), lambda b: (b, 0, 0)),
                full_spec((3, D, 1, EN)),
                full_spec((3, D, 1, EN)),
                full_spec((4, D, 1, EN)),
                full_spec((4 * D, EN)),
                full_spec((4, D, EN)),
                full_spec((1, EN)),
            ],
            out_specs=pl.BlockSpec((1, N, EN), lambda b: (b, 0, 0)),
        ),
        compiler_params=pltpu.CompilerParams(dimension_semantics=("parallel",)),
    )(x, A, cL_r, cR_r, cE_r, ccol_mat, crow_rep, bias_row)

    # out_flat[b, i, e*N + j] == output[b, e, i, j]
    return out_flat.reshape(B, N, E, N).transpose(0, 2, 1, 3)


def ref_forward(x, A, coeffs, bias, normalization=True):
    """Pure-JAX mirror of the PyTorch forward (including the ops7-reuses-op6 bug)."""
    n = x.shape[-1]
    norm = n if normalization else 1
    xdim = x.shape
    T = lambda t: jnp.swapaxes(t, 2, 3)
    op1 = jnp.einsum('bdij,bij,bik->bdjk', x, A, A) / norm
    op2 = jnp.einsum('bdij,bij,bjk->bdik', x, A, A) / norm
    op3 = jnp.einsum('bdij,bik,bjk->bdij', x, A, A) / norm
    op4 = jnp.broadcast_to(jnp.einsum('bdij,bij->bdi', x, A)[..., None], xdim) / norm
    op5 = jnp.broadcast_to(jnp.einsum('bdij,bij->bdj', x, A)[..., None], xdim) / norm
    op6 = jnp.einsum('bdij,bik->bdjk', x, A) / norm
    op8 = jnp.einsum('bdij,bik->bdij', x, A) / norm
    op9 = jnp.einsum('bdij,bjk->bdij', x, A) / norm
    op10 = jnp.broadcast_to(x.sum(3, keepdims=True), xdim) / norm
    op11 = jnp.broadcast_to(x.sum(2, keepdims=True), xdim) / norm
    ops = [op1, T(op1), op2, T(op2), op3, op4, T(op4), op5, T(op5),
           op6, T(op6), op6, T(op6), op8, op9, op10, T(op10), op11, T(op11), x]
    ops_out = jnp.stack(ops, axis=2)
    out = jnp.einsum('der,bdrij->beij', coeffs, ops_out)
    return out + bias.reshape(1, -1, 1, 1)


if __name__ == "__main__":
    B, in_channels, out_channels, N = 2, 2, 2, 16
    D, E = in_channels * 2, out_channels * 2           # module doubles channels

    key = jax.random.PRNGKey(0)
    kx, ka, kc = jax.random.split(key, 3)
    x = jax.random.normal(kx, (B, D, N, N), dtype=jnp.float32)
    A = jax.random.normal(ka, (B, N, N), dtype=jnp.float32)
    coeffs = (jax.random.normal(kc, (D, E, BASIS_DIM), dtype=jnp.float32)
              * np.float32(np.sqrt(2.0) / (D + E)))
    bias = jnp.zeros((E,), dtype=jnp.float32)           # torch: zeros(1, E, 1, 1)

    out = simple_gnn3_forward(x, A, coeffs, bias, normalization=True)
    out = jax.block_until_ready(out)

    ref = ref_forward(x, A, coeffs, bias, normalization=True)
    if not np.allclose(np.asarray(out), np.asarray(ref), rtol=1e-3, atol=5e-4):
        raise AssertionError("Pallas kernel output mismatch vs pure-JAX reference")
    print("KERNEL_OK")
</pallas_src>

<mosaic_0001>
module attributes {stable_mosaic.version = 11 : i64} {
  func.func @_gnn3_kernel(%arg0: i32, %arg1: memref<1x4x16x16xf32, #tpu.memory_space<vmem>>, %arg2: memref<1x16x16xf32, #tpu.memory_space<vmem>>, %arg3: memref<3x4x1x64xf32, #tpu.memory_space<vmem>>, %arg4: memref<3x4x1x64xf32, #tpu.memory_space<vmem>>, %arg5: memref<4x4x1x64xf32, #tpu.memory_space<vmem>>, %arg6: memref<16x64xf32, #tpu.memory_space<vmem>>, %arg7: memref<4x4x64xf32, #tpu.memory_space<vmem>>, %arg8: memref<1x64xf32, #tpu.memory_space<vmem>>, %arg9: memref<1x16x64xf32, #tpu.memory_space<vmem>>) attributes {dimension_semantics = [#tpu.dimension_semantics<parallel>], iteration_bounds = array<i64: 2>, scalar_prefetch = 0 : i64, scratch_operands = 0 : i64, tpu.core_type = #tpu.core_type<tc>, window_params = [{transform_indices = @transform_0, window_bounds = array<i64: 1, 4, 16, 16>}, {transform_indices = @transform_1, window_bounds = array<i64: 1, 16, 16>}, {pipeline_mode = #tpu.pipeline_mode<synchronous>, transform_indices = @transform_2, window_bounds = array<i64: 3, 4, 1, 64>}, {pipeline_mode = #tpu.pipeline_mode<synchronous>, transform_indices = @transform_3, window_bounds = array<i64: 3, 4, 1, 64>}, {pipeline_mode = #tpu.pipeline_mode<synchronous>, transform_indices = @transform_4, window_bounds = array<i64: 4, 4, 1, 64>}, {pipeline_mode = #tpu.pipeline_mode<synchronous>, transform_indices = @transform_5, window_bounds = array<i64: 16, 64>}, {pipeline_mode = #tpu.pipeline_mode<synchronous>, transform_indices = @transform_6, window_bounds = array<i64: 4, 4, 64>}, {pipeline_mode = #tpu.pipeline_mode<synchronous>, transform_indices = @transform_7, window_bounds = array<i64: 1, 64>}, {transform_indices = @transform_8, window_bounds = array<i64: 1, 16, 64>}]} {
    %c0 = arith.constant 0 : index
    %c0_0 = arith.constant 0 : index
    %c0_1 = arith.constant 0 : index
    %0 = vector.load %arg2[%c0, %c0_0, %c0_1] : memref<1x16x16xf32, #tpu.memory_space<vmem>>, vector<1x16x16xf32>
    %1 = vector.shape_cast %0 : vector<1x16x16xf32> to vector<16x16xf32>
    %2 = tpu.transpose %1, [1, 0] : vector<16x16xf32> -> vector<16x16xf32>
    %cst = arith.constant dense<0.000000e+00> : vector<16x16xf32>
    %3 = tpu.matmul %1, %2, %cst {dimension_numbers = #tpu.dot_dimension_numbers<[1], [0], [0], [1], [0, 0, 1, 1], [], []>} : vector<16x16xf32>, vector<16x16xf32>, vector<16x16xf32> -> vector<16x16xf32>
    %cst_2 = arith.constant dense<0.000000e+00> : vector<16xf32>
    %4 = vector.multi_reduction <add>, %1, %cst_2 [1] : vector<16x16xf32> to vector<16xf32>
    %5 = vector.shape_cast %4 : vector<16xf32> to vector<16x1xf32>
    %cst_3 = arith.constant dense<0.000000e+00> : vector<16xf32>
    %6 = vector.multi_reduction <add>, %2, %cst_3 [0] : vector<16x16xf32> to vector<16xf32>
    %7 = vector.shape_cast %6 : vector<16xf32> to vector<1x16xf32>
    %c0_4 = arith.constant 0 : index
    %c0_5 = arith.constant 0 : index
    %c0_6 = arith.constant 0 : index
    %c0_7 = arith.constant 0 : index
    %8 = vector.load %arg1[%c0_4, %c0_5, %c0_6, %c0_7] : memref<1x4x16x16xf32, #tpu.memory_space<vmem>>, vector<1x4x16x16xf32>
    %9 = vector.shape_cast %8 : vector<1x4x16x16xf32> to vector<4x16x16xf32>
    %10 = vector.shape_cast %1 : vector<16x16xf32> to vector<1x16x16xf32>
    %11 = vector.broadcast %10 : vector<1x16x16xf32> to vector<4x16x16xf32>
    %12 = arith.mulf %9, %11 : vector<4x16x16xf32>
    %13 = vector.extract_strided_slice %9 {offsets = [0, 0, 0], sizes = [1, 16, 16], strides = [1, 1, 1]} : vector<4x16x16xf32> to vector<1x16x16xf32>
    %14 = vector.shape_cast %13 : vector<1x16x16xf32> to vector<16x16xf32>
    %15 = vector.extract_strided_slice %9 {offsets = [1, 0, 0], sizes = [1, 16, 16], strides = [1, 1, 1]} : vector<4x16x16xf32> to vector<1x16x16xf32>
    %16 = vector.shape_cast %15 : vector<1x16x16xf32> to vector<16x16xf32>
    %17 = vector.extract_strided_slice %9 {offsets = [2, 0, 0], sizes = [1, 16, 16], strides = [1, 1, 1]} : vector<4x16x16xf32> to vector<1x16x16xf32>
    %18 = vector.shape_cast %17 : vector<1x16x16xf32> to vector<16x16xf32>
    %19 = vector.extract_strided_slice %9 {offsets = [3, 0, 0], sizes = [1, 16, 16], strides = [1, 1, 1]} : vector<4x16x16xf32> to vector<1x16x16xf32>
    %20 = vector.shape_cast %19 : vector<1x16x16xf32> to vector<16x16xf32>
    %21 = tpu.transpose %14, [1, 0] : vector<16x16xf32> -> vector<16x16xf32>
    %22 = tpu.transpose %16, [1, 0] : vector<16x16xf32> -> vector<16x16xf32>
    %23 = tpu.transpose %18, [1, 0] : vector<16x16xf32> -> vector<16x16xf32>
    %24 = tpu.transpose %20, [1, 0] : vector<16x16xf32> -> vector<16x16xf32>
    %25 = vector.extract_strided_slice %12 {offsets = [0, 0, 0], sizes = [1, 16, 16], strides = [1, 1, 1]} : vector<4x16x16xf32> to vector<1x16x16xf32>
    %26 = vector.shape_cast %25 : vector<1x16x16xf32> to vector<16x16xf32>
    %27 = vector.extract_strided_slice %12 {offsets = [1, 0, 0], sizes = [1, 16, 16], strides = [1, 1, 1]} : vector<4x16x16xf32> to vector<1x16x16xf32>
    %28 = vector.shape_cast %27 : vector<1x16x16xf32> to vector<16x16xf32>
    %29 = vector.extract_strided_slice %12 {offsets = [2, 0, 0], sizes = [1, 16, 16], strides = [1, 1, 1]} : vector<4x16x16xf32> to vector<1x16x16xf32>
    %30 = vector.shape_cast %29 : vector<1x16x16xf32> to vector<16x16xf32>
    %31 = vector.extract_strided_slice %12 {offsets = [3, 0, 0], sizes = [1, 16, 16], strides = [1, 1, 1]} : vector<4x16x16xf32> to vector<1x16x16xf32>
    %32 = vector.shape_cast %31 : vector<1x16x16xf32> to vector<16x16xf32>
    %33 = arith.mulf %21, %2 : vector<16x16xf32>
    %34 = arith.mulf %22, %2 : vector<16x16xf32>
    %35 = arith.mulf %23, %2 : vector<16x16xf32>
    %36 = arith.mulf %24, %2 : vector<16x16xf32>
    %cst_8 = arith.constant dense<0.000000e+00> : vector<4x16xf32>
    %37 = vector.multi_reduction <add>, %12, %cst_8 [2] : vector<4x16x16xf32> to vector<4x16xf32>
    %cst_9 = arith.constant dense<0.000000e+00> : vector<4x16xf32>
    %38 = vector.multi_reduction <add>, %12, %cst_9 [1] : vector<4x16x16xf32> to vector<4x16xf32>
    %cst_10 = arith.constant dense<0.000000e+00> : vector<4x16xf32>
    %39 = vector.multi_reduction <add>, %9, %cst_10 [2] : vector<4x16x16xf32> to vector<4x16xf32>
    %cst_11 = arith.constant dense<0.000000e+00> : vector<4x16xf32>
    %40 = vector.multi_reduction <add>, %9, %cst_11 [1] : vector<4x16x16xf32> to vector<4x16xf32>
    %41 = tpu.concatenate %37, %38, %39, %40 in 0 : vector<4x16xf32>, vector<4x16xf32>, vector<4x16xf32>, vector<4x16xf32> -> vector<16x16xf32>
    %42 = tpu.transpose %41, [1, 0] : vector<16x16xf32> -> vector<16x16xf32>
    %c0_12 = arith.constant 0 : index
    %c0_13 = arith.constant 0 : index
    %43 = vector.load %arg6[%c0_12, %c0_13] : memref<16x64xf32, #tpu.memory_space<vmem>>, vector<16x64xf32>
    %cst_14 = arith.constant dense<0.000000e+00> : vector<16x64xf32>
    %44 = tpu.matmul %42, %43, %cst_14 {dimension_numbers = #tpu.dot_dimension_numbers<[1], [0], [0], [1], [0, 0, 1, 1], [], []>} : vector<16x16xf32>, vector<16x64xf32>, vector<16x64xf32> -> vector<16x64xf32>
    %c0_15 = arith.constant 0 : index
    %c0_16 = arith.constant 0 : index
    %c0_17 = arith.constant 0 : index
    %45 = vector.load %arg7[%c0_15, %c0_16, %c0_17] : memref<4x4x64xf32, #tpu.memory_space<vmem>>, vector<1x4x64xf32>
    %46 = vector.shape_cast %45 : vector<1x4x64xf32> to vector<4x64xf32>
    %47 = tpu.concatenate %37, %37, %37, %37 in 1 : vector<4x16xf32>, vector<4x16xf32>, vector<4x16xf32>, vector<4x16xf32> -> vector<4x64xf32>
    %48 = arith.mulf %46, %47 : vector<4x64xf32>
    %c1 = arith.constant 1 : index
    %c0_18 = arith.constant 0 : index
    %c0_19 = arith.constant 0 : index
    %49 = vector.load %arg7[%c1, %c0_18, %c0_19] : memref<4x4x64xf32, #tpu.memory_space<vmem>>, vector<1x4x64xf32>
    %50 = vector.shape_cast %49 : vector<1x4x64xf32> to vector<4x64xf32>
    %51 = tpu.concatenate %38, %38, %38, %38 in 1 : vector<4x16xf32>, vector<4x16xf32>, vector<4x16xf32>, vector<4x16xf32> -> vector<4x64xf32>
    %52 = arith.mulf %50, %51 : vector<4x64xf32>
    %53 = arith.addf %48, %52 : vector<4x64xf32>
    %c2 = arith.constant 2 : index
    %c0_20 = arith.constant 0 : index
    %c0_21 = arith.constant 0 : index
    %54 = vector.load %arg7[%c2, %c0_20, %c0_21] : memref<4x4x64xf32, #tpu.memory_space<vmem>>, vector<1x4x64xf32>
    %55 = vector.shape_cast %54 : vector<1x4x64xf32> to vector<4x64xf32>
    %56 = tpu.concatenate %39, %39, %39, %39 in 1 : vector<4x16xf32>, vector<4x16xf32>, vector<4x16xf32>, vector<4x16xf32> -> vector<4x64xf32>
    %57 = arith.mulf %55, %56 : vector<4x64xf32>
    %58 = arith.addf %53, %57 : vector<4x64xf32>
    %c3 = arith.constant 3 : index
    %c0_22 = arith.constant 0 : index
    %c0_23 = arith.constant 0 : index
    %59 = vector.load %arg7[%c3, %c0_22, %c0_23] : memref<4x4x64xf32, #tpu.memory_space<vmem>>, vector<1x4x64xf32>
    %60 = vector.shape_cast %59 : vector<1x4x64xf32> to vector<4x64xf32>
    %61 = tpu.concatenate %40, %40, %40, %40 in 1 : vector<4x16xf32>, vector<4x16xf32>, vector<4x16xf32>, vector<4x16xf32> -> vector<4x64xf32>
    %62 = arith.mulf %60, %61 : vector<4x64xf32>
    %63 = arith.addf %58, %62 : vector<4x64xf32>
    %c0_24 = arith.constant 0 : index
    %c0_25 = arith.constant 0 : index
    %64 = vector.load %arg8[%c0_24, %c0_25] : memref<1x64xf32, #tpu.memory_space<vmem>>, vector<1x64xf32>
    %cst_26 = arith.constant dense<0.000000e+00> : vector<64xf32>
    %65 = vector.multi_reduction <add>, %63, %cst_26 [0] : vector<4x64xf32> to vector<64xf32>
    %66 = vector.shape_cast %65 : vector<64xf32> to vector<1x64xf32>
    %67 = arith.addf %64, %66 : vector<1x64xf32>
    %68 = vector.broadcast %67 : vector<1x64xf32> to vector<16x64xf32>
    %69 = arith.addf %44, %68 : vector<16x64xf32>
    %70 = tpu.concatenate %33, %34, %35, %36, %26, %28, %30, %32, %21, %22, %23, %24 in 0 : vector<16x16xf32>, vector<16x16xf32>, vector<16x16xf32>, vector<16x16xf32>, vector<16x16xf32>, vector<16x16xf32>, vector<16x16xf32>, vector<16x16xf32>, vector<16x16xf32>, vector<16x16xf32>, vector<16x16xf32>, vector<16x16xf32> -> vector<192x16xf32>
    %cst_27 = arith.constant dense<0.000000e+00> : vector<192x16xf32>
    %71 = tpu.matmul %70, %1, %cst_27 {dimension_numbers = #tpu.dot_dimension_numbers<[1], [0], [0], [1], [0, 0, 1, 1], [], []>} : vector<192x16xf32>, vector<16x16xf32>, vector<192x16xf32> -> vector<192x16xf32>
    %72 = vector.extract_strided_slice %71 {offsets = [0, 0], sizes = [16, 16], strides = [1, 1]} : vector<192x16xf32> to vector<16x16xf32>
    %73 = tpu.concatenate %72, %72, %72, %72 in 1 : vector<16x16xf32>, vector<16x16xf32>, vector<16x16xf32>, vector<16x16xf32> -> vector<16x64xf32>
    %c0_28 = arith.constant 0 : index
    %c0_29 = arith.constant 0 : index
    %c0_30 = arith.constant 0 : index
    %c0_31 = arith.constant 0 : index
    %74 = vector.load %arg3[%c0_28, %c0_29, %c0_30, %c0_31] : memref<3x4x1x64xf32, #tpu.memory_space<vmem>>, vector<1x1x1x64xf32>
    %75 = vector.shape_cast %74 : vector<1x1x1x64xf32> to vector<1x64xf32>
    %76 = vector.broadcast %75 : vector<1x64xf32> to vector<16x64xf32>
    %77 = arith.mulf %73, %76 : vector<16x64xf32>
    %78 = arith.addf %69, %77 : vector<16x64xf32>
    %79 = tpu.transpose %72, [1, 0] : vector<16x16xf32> -> vector<16x16xf32>
    %80 = tpu.concatenate %79, %79, %79, %79 in 1 : vector<16x16xf32>, vector<16x16xf32>, vector<16x16xf32>, vector<16x16xf32> -> vector<16x64xf32>
    %c0_32 = arith.constant 0 : index
    %c0_33 = arith.constant 0 : index
    %c0_34 = arith.constant 0 : index
    %c0_35 = arith.constant 0 : index
    %81 = vector.load %arg4[%c0_32, %c0_33, %c0_34, %c0_35] : memref<3x4x1x64xf32, #tpu.memory_space<vmem>>, vector<1x1x1x64xf32>
    %82 = vector.shape_cast %81 : vector<1x1x1x64xf32> to vector<1x64xf32>
    %83 = vector.broadcast %82 : vector<1x64xf32> to vector<16x64xf32>
    %84 = arith.mulf %80, %83 : vector<16x64xf32>
    %85 = arith.addf %78, %84 : vector<16x64xf32>
    %86 = vector.extract_strided_slice %71 {offsets = [16, 0], sizes = [16, 16], strides = [1, 1]} : vector<192x16xf32> to vector<16x16xf32>
    %87 = tpu.concatenate %86, %86, %86, %86 in 1 : vector<16x16xf32>, vector<16x16xf32>, vector<16x16xf32>, vector<16x16xf32> -> vector<16x64xf32>
    %c0_36 = arith.constant 0 : index
    %c1_37 = arith.constant 1 : index
    %c0_38 = arith.constant 0 : index
    %c0_39 = arith.constant 0 : index
    %88 = vector.load %arg3[%c0_36, %c1_37, %c0_38, %c0_39] : memref<3x4x1x64xf32, #tpu.memory_space<vmem>>, vector<1x1x1x64xf32>
    %89 = vector.shape_cast %88 : vector<1x1x1x64xf32> to vector<1x64xf32>
    %90 = vector.broadcast %89 : vector<1x64xf32> to vector<16x64xf32>
    %91 = arith.mulf %87, %90 : vector<16x64xf32>
    %92 = arith.addf %85, %91 : vector<16x64xf32>
    %93 = tpu.transpose %86, [1, 0] : vector<16x16xf32> -> vector<16x16xf32>
    %94 = tpu.concatenate %93, %93, %93, %93 in 1 : vector<16x16xf32>, vector<16x16xf32>, vector<16x16xf32>, vector<16x16xf32> -> vector<16x64xf32>
    %c0_40 = arith.constant 0 : index
    %c1_41 = arith.constant 1 : index
    %c0_42 = arith.constant 0 : index
    %c0_43 = arith.constant 0 : index
    %95 = vector.load %arg4[%c0_40, %c1_41, %c0_42, %c0_43] : memref<3x4x1x64xf32, #tpu.memory_space<vmem>>, vector<1x1x1x64xf32>
    %96 = vector.shape_cast %95 : vector<1x1x1x64xf32> to vector<1x64xf32>
    %97 = vector.broadcast %96 : vector<1x64xf32> to vector<16x64xf32>
    %98 = arith.mulf %94, %97 : vector<16x64xf32>
    %99 = arith.addf %92, %98 : vector<16x64xf32>
    %100 = vector.extract_strided_slice %71 {offsets = [32, 0], sizes = [16, 16], strides = [1, 1]} : vector<192x16xf32> to vector<16x16xf32>
    %101 = tpu.concatenate %100, %100, %100, %100 in 1 : vector<16x16xf32>, vector<16x16xf32>, vector<16x16xf32>, vector<16x16xf32> -> vector<16x64xf32>
    %c0_44 = arith.constant 0 : index
    %c2_45 = arith.constant 2 : index
    %c0_46 = arith.constant 0 : index
    %c0_47 = arith.constant 0 : index
    %102 = vector.load %arg3[%c0_44, %c2_45, %c0_46, %c0_47] : memref<3x4x1x64xf32, #tpu.memory_space<vmem>>, vector<1x1x1x64xf32>
    %103 = vector.shape_cast %102 : vector<1x1x1x64xf32> to vector<1x64xf32>
    %104 = vector.broadcast %103 : vector<1x64xf32> to vector<16x64xf32>
    %105 = arith.mulf %101, %104 : vector<16x64xf32>
    %106 = arith.addf %99, %105 : vector<16x64xf32>
    %107 = tpu.transpose %100, [1, 0] : vector<16x16xf32> -> vector<16x16xf32>
    %108 = tpu.concatenate %107, %107, %107, %107 in 1 : vector<16x16xf32>, vector<16x16xf32>, vector<16x16xf32>, vector<16x16xf32> -> vector<16x64xf32>
    %c0_48 = arith.constant 0 : index
    %c2_49 = arith.constant 2 : index
    %c0_50 = arith.constant 0 : index
    %c0_51 = arith.constant 0 : index
    %109 = vector.load %arg4[%c0_48, %c2_49, %c0_50, %c0_51] : memref<3x4x1x64xf32, #tpu.memory_space<vmem>>, vector<1x1x1x64xf32>
    %110 = vector.shape_cast %109 : vector<1x1x1x64xf32> to vector<1x64xf32>
    %111 = vector.broadcast %110 : vector<1x64xf32> to vector<16x64xf32>
    %112 = arith.mulf %108, %111 : vector<16x64xf32>
    %113 = arith.addf %106, %112 : vector<16x64xf32>
    %114 = vector.extract_strided_slice %71 {offsets = [48, 0], sizes = [16, 16], strides = [1, 1]} : vector<192x16xf32> to vector<16x16xf32>
    %115 = tpu.concatenate %114, %114, %114, %114 in 1 : vector<16x16xf32>, vector<16x16xf32>, vector<16x16xf32>, vector<16x16xf32> -> vector<16x64xf32>
    %c0_52 = arith.constant 0 : index
    %c3_53 = arith.constant 3 : index
    %c0_54 = arith.constant 0 : index
    %c0_55 = arith.constant 0 : index
    %116 = vector.load %arg3[%c0_52, %c3_53, %c0_54, %c0_55] : memref<3x4x1x64xf32, #tpu.memory_space<vmem>>, vector<1x1x1x64xf32>
    %117 = vector.shape_cast %116 : vector<1x1x1x64xf32> to vector<1x64xf32>
    %118 = vector.broadcast %117 : vector<1x64xf32> to vector<16x64xf32>
    %119 = arith.mulf %115, %118 : vector<16x64xf32>
    %120 = arith.addf %113, %119 : vector<16x64xf32>
    %121 = tpu.transpose %114, [1, 0] : vector<16x16xf32> -> vector<16x16xf32>
    %122 = tpu.concatenate %121, %121, %121, %121 in 1 : vector<16x16xf32>, vector<16x16xf32>, vector<16x16xf32>, vector<16x16xf32> -> vector<16x64xf32>
    %c0_56 = arith.constant 0 : index
    %c3_57 = arith.constant 3 : index
    %c0_58 = arith.constant 0 : index
    %c0_59 = arith.constant 0 : index
    %123 = vector.load %arg4[%c0_56, %c3_57, %c0_58, %c0_59] : memref<3x4x1x64xf32, #tpu.memory_space<vmem>>, vector<1x1x1x64xf32>
    %124 = vector.shape_cast %123 : vector<1x1x1x64xf32> to vector<1x64xf32>
    %125 = vector.broadcast %124 : vector<1x64xf32> to vector<16x64xf32>
    %126 = arith.mulf %122, %125 : vector<16x64xf32>
    %127 = arith.addf %120, %126 : vector<16x64xf32>
    %128 = vector.extract_strided_slice %71 {offsets = [64, 0], sizes = [16, 16], strides = [1, 1]} : vector<192x16xf32> to vector<16x16xf32>
    %129 = tpu.concatenate %128, %128, %128, %128 in 1 : vector<16x16xf32>, vector<16x16xf32>, vector<16x16xf32>, vector<16x16xf32> -> vector<16x64xf32>
    %c1_60 = arith.constant 1 : index
    %c0_61 = arith.constant 0 : index
    %c0_62 = arith.constant 0 : index
    %c0_63 = arith.constant 0 : index
    %130 = vector.load %arg3[%c1_60, %c0_61, %c0_62, %c0_63] : memref<3x4x1x64xf32, #tpu.memory_space<vmem>>, vector<1x1x1x64xf32>
    %131 = vector.shape_cast %130 : vector<1x1x1x64xf32> to vector<1x64xf32>
    %132 = vector.broadcast %131 : vector<1x64xf32> to vector<16x64xf32>
    %133 = arith.mulf %129, %132 : vector<16x64xf32>
    %134 = arith.addf %127, %133 : vector<16x64xf32>
    %135 = tpu.transpose %128, [1, 0] : vector<16x16xf32> -> vector<16x16xf32>
    %136 = tpu.concatenate %135, %135, %135, %135 in 1 : vector<16x16xf32>, vector<16x16xf32>, vector<16x16xf32>, vector<16x16xf32> -> vector<16x64xf32>
    %c1_64 = arith.constant 1 : index
    %c0_65 = arith.constant 0 : index
    %c0_66 = arith.constant 0 : index
    %c0_67 = arith.constant 0 : index
    %137 = vector.load %arg4[%c1_64, %c0_65, %c0_66, %c0_67] : memref<3x4x1x64xf32, #tpu.memory_space<vmem>>, vector<1x1x1x64xf32>
    %138 = vector.shape_cast %137 : vector<1x1x1x64xf32> to vector<1x64xf32>
    %139 = vector.broadcast %138 : vector<1x64xf32> to vector<16x64xf32>
    %140 = arith.mulf %136, %139 : vector<16x64xf32>
    %141 = arith.addf %134, %140 : vector<16x64xf32>
    %142 = vector.extract_strided_slice %71 {offsets = [80, 0], sizes = [16, 16], strides = [1, 1]} : vector<192x16xf32> to vector<16x16xf32>
    %143 = tpu.concatenate %142, %142, %142, %142 in 1 : vector<16x16xf32>, vector<16x16xf32>, vector<16x16xf32>, vector<16x16xf32> -> vector<16x64xf32>
    %c1_68 = arith.constant 1 : index
    %c1_69 = arith.constant 1 : index
    %c0_70 = arith.constant 0 : index
    %c0_71 = arith.constant 0 : index
    %144 = vector.load %arg3[%c1_68, %c1_69, %c0_70, %c0_71] : memref<3x4x1x64xf32, #tpu.memory_space<vmem>>, vector<1x1x1x64xf32>
    %145 = vector.shape_cast %144 : vector<1x1x1x64xf32> to vector<1x64xf32>
    %146 = vector.broadcast %145 : vector<1x64xf32> to vector<16x64xf32>
    %147 = arith.mulf %143, %146 : vector<16x64xf32>
    %148 = arith.addf %141, %147 : vector<16x64xf32>
    %149 = tpu.transpose %142, [1, 0] : vector<16x16xf32> -> vector<16x16xf32>
    %150 = tpu.concatenate %149, %149, %149, %149 in 1 : vector<16x16xf32>, vector<16x16xf32>, vector<16x16xf32>, vector<16x16xf32> -> vector<16x64xf32>
    %c1_72 = arith.constant 1 : index
    %c1_73 = arith.constant 1 : index
    %c0_74 = arith.constant 0 : index
    %c0_75 = arith.constant 0 : index
    %151 = vector.load %arg4[%c1_72, %c1_73, %c0_74, %c0_75] : memref<3x4x1x64xf32, #tpu.memory_space<vmem>>, vector<1x1x1x64xf32>
    %152 = vector.shape_cast %151 : vector<1x1x1x64xf32> to vector<1x64xf32>
    %153 = vector.broadcast %152 : vector<1x64xf32> to vector<16x64xf32>
    %154 = arith.mulf %150, %153 : vector<16x64xf32>
    %155 = arith.addf %148, %154 : vector<16x64xf32>
    %156 = vector.extract_strided_slice %71 {offsets = [96, 0], sizes = [16, 16], strides = [1, 1]} : vector<192x16xf32> to vector<16x16xf32>
    %157 = tpu.concatenate %156, %156, %156, %156 in 1 : vector<16x16xf32>, vector<16x16xf32>, vector<16x16xf32>, vector<16x16xf32> -> vector<16x64xf32>
    %c1_76 = arith.constant 1 : index
    %c2_77 = arith.constant 2 : index
    %c0_78 = arith.constant 0 : index
    %c0_79 = arith.constant 0 : index
    %158 = vector.load %arg3[%c1_76, %c2_77, %c0_78, %c0_79] : memref<3x4x1x64xf32, #tpu.memory_space<vmem>>, vector<1x1x1x64xf32>
    %159 = vector.shape_cast %158 : vector<1x1x1x64xf32> to vector<1x64xf32>
    %160 = vector.broadcast %159 : vector<1x64xf32> to vector<16x64xf32>
    %161 = arith.mulf %157, %160 : vector<16x64xf32>
    %162 = arith.addf %155, %161 : vector<16x64xf32>
    %163 = tpu.transpose %156, [1, 0] : vector<16x16xf32> -> vector<16x16xf32>
    %164 = tpu.concatenate %163, %163, %163, %163 in 1 : vector<16x16xf32>, vector<16x16xf32>, vector<16x16xf32>, vector<16x16xf32> -> vector<16x64xf32>
    %c1_80 = arith.constant 1 : index
    %c2_81 = arith.constant 2 : index
    %c0_82 = arith.constant 0 : index
    %c0_83 = arith.constant 0 : index
    %165 = vector.load %arg4[%c1_80, %c2_81, %c0_82, %c0_83] : memref<3x4x1x64xf32, #tpu.memory_space<vmem>>, vector<1x1x1x64xf32>
    %166 = vector.shape_cast %165 : vector<1x1x1x64xf32> to vector<1x64xf32>
    %167 = vector.broadcast %166 : vector<1x64xf32> to vector<16x64xf32>
    %168 = arith.mulf %164, %167 : vector<16x64xf32>
    %169 = arith.addf %162, %168 : vector<16x64xf32>
    %170 = vector.extract_strided_slice %71 {offsets = [112, 0], sizes = [16, 16], strides = [1, 1]} : vector<192x16xf32> to vector<16x16xf32>
    %171 = tpu.concatenate %170, %170, %170, %170 in 1 : vector<16x16xf32>, vector<16x16xf32>, vector<16x16xf32>, vector<16x16xf32> -> vector<16x64xf32>
    %c1_84 = arith.constant 1 : index
    %c3_85 = arith.constant 3 : index
    %c0_86 = arith.constant 0 : index
    %c0_87 = arith.constant 0 : index
    %172 = vector.load %arg3[%c1_84, %c3_85, %c0_86, %c0_87] : memref<3x4x1x64xf32, #tpu.memory_space<vmem>>, vector<1x1x1x64xf32>
    %173 = vector.shape_cast %172 : vector<1x1x1x64xf32> to vector<1x64xf32>
    %174 = vector.broadcast %173 : vector<1x64xf32> to vector<16x64xf32>
    %175 = arith.mulf %171, %174 : vector<16x64xf32>
    %176 = arith.addf %169, %175 : vector<16x64xf32>
    %177 = tpu.transpose %170, [1, 0] : vector<16x16xf32> -> vector<16x16xf32>
    %178 = tpu.concatenate %177, %177, %177, %177 in 1 : vector<16x16xf32>, vector<16x16xf32>, vector<16x16xf32>, vector<16x16xf32> -> vector<16x64xf32>
    %c1_88 = arith.constant 1 : index
    %c3_89 = arith.constant 3 : index
    %c0_90 = arith.constant 0 : index
    %c0_91 = arith.constant 0 : index
    %179 = vector.load %arg4[%c1_88, %c3_89, %c0_90, %c0_91] : memref<3x4x1x64xf32, #tpu.memory_space<vmem>>, vector<1x1x1x64xf32>
    %180 = vector.shape_cast %179 : vector<1x1x1x64xf32> to vector<1x64xf32>
    %181 = vector.broadcast %180 : vector<1x64xf32> to vector<16x64xf32>
    %182 = arith.mulf %178, %181 : vector<16x64xf32>
    %183 = arith.addf %176, %182 : vector<16x64xf32>
    %184 = vector.extract_strided_slice %71 {offsets = [128, 0], sizes = [16, 16], strides = [1, 1]} : vector<192x16xf32> to vector<16x16xf32>
    %185 = tpu.concatenate %184, %184, %184, %184 in 1 : vector<16x16xf32>, vector<16x16xf32>, vector<16x16xf32>, vector<16x16xf32> -> vector<16x64xf32>
    %c2_92 = arith.constant 2 : index
    %c0_93 = arith.constant 0 : index
    %c0_94 = arith.constant 0 : index
    %c0_95 = arith.constant 0 : index
    %186 = vector.load %arg3[%c2_92, %c0_93, %c0_94, %c0_95] : memref<3x4x1x64xf32, #tpu.memory_space<vmem>>, vector<1x1x1x64xf32>
    %187 = vector.shape_cast %186 : vector<1x1x1x64xf32> to vector<1x64xf32>
    %188 = vector.broadcast %187 : vector<1x64xf32> to vector<16x64xf32>
    %189 = arith.mulf %185, %188 : vector<16x64xf32>
    %190 = arith.addf %183, %189 : vector<16x64xf32>
    %191 = tpu.transpose %184, [1, 0] : vector<16x16xf32> -> vector<16x16xf32>
    %192 = tpu.concatenate %191, %191, %191, %191 in 1 : vector<16x16xf32>, vector<16x16xf32>, vector<16x16xf32>, vector<16x16xf32> -> vector<16x64xf32>
    %c2_96 = arith.constant 2 : index
    %c0_97 = arith.constant 0 : index
    %c0_98 = arith.constant 0 : index
    %c0_99 = arith.constant 0 : index
    %193 = vector.load %arg4[%c2_96, %c0_97, %c0_98, %c0_99] : memref<3x4x1x64xf32, #tpu.memory_space<vmem>>, vector<1x1x1x64xf32>
    %194 = vector.shape_cast %193 : vector<1x1x1x64xf32> to vector<1x64xf32>
    %195 = vector.broadcast %194 : vector<1x64xf32> to vector<16x64xf32>
    %196 = arith.mulf %192, %195 : vector<16x64xf32>
    %197 = arith.addf %190, %196 : vector<16x64xf32>
    %198 = vector.extract_strided_slice %71 {offsets = [144, 0], sizes = [16, 16], strides = [1, 1]} : vector<192x16xf32> to vector<16x16xf32>
    %199 = tpu.concatenate %198, %198, %198, %198 in 1 : vector<16x16xf32>, vector<16x16xf32>, vector<16x16xf32>, vector<16x16xf32> -> vector<16x64xf32>
    %c2_100 = arith.constant 2 : index
    %c1_101 = arith.constant 1 : index
    %c0_102 = arith.constant 0 : index
    %c0_103 = arith.constant 0 : index
    %200 = vector.load %arg3[%c2_100, %c1_101, %c0_102, %c0_103] : memref<3x4x1x64xf32, #tpu.memory_space<vmem>>, vector<1x1x1x64xf32>
    %201 = vector.shape_cast %200 : vector<1x1x1x64xf32> to vector<1x64xf32>
    %202 = vector.broadcast %201 : vector<1x64xf32> to vector<16x64xf32>
    %203 = arith.mulf %199, %202 : vector<16x64xf32>
    %204 = arith.addf %197, %203 : vector<16x64xf32>
    %205 = tpu.transpose %198, [1, 0] : vector<16x16xf32> -> vector<16x16xf32>
    %206 = tpu.concatenate %205, %205, %205, %205 in 1 : vector<16x16xf32>, vector<16x16xf32>, vector<16x16xf32>, vector<16x16xf32> -> vector<16x64xf32>
    %c2_104 = arith.constant 2 : index
    %c1_105 = arith.constant 1 : index
    %c0_106 = arith.constant 0 : index
    %c0_107 = arith.constant 0 : index
    %207 = vector.load %arg4[%c2_104, %c1_105, %c0_106, %c0_107] : memref<3x4x1x64xf32, #tpu.memory_space<vmem>>, vector<1x1x1x64xf32>
    %208 = vector.shape_cast %207 : vector<1x1x1x64xf32> to vector<1x64xf32>
    %209 = vector.broadcast %208 : vector<1x64xf32> to vector<16x64xf32>
    %210 = arith.mulf %206, %209 : vector<16x64xf32>
    %211 = arith.addf %204, %210 : vector<16x64xf32>
    %212 = vector.extract_strided_slice %71 {offsets = [160, 0], sizes = [16, 16], strides = [1, 1]} : vector<192x16xf32> to vector<16x16xf32>
    %213 = tpu.concatenate %212, %212, %212, %212 in 1 : vector<16x16xf32>, vector<16x16xf32>, vector<16x16xf32>, vector<16x16xf32> -> vector<16x64xf32>
    %c2_108 = arith.constant 2 : index
    %c2_109 = arith.constant 2 : index
    %c0_110 = arith.constant 0 : index
    %c0_111 = arith.constant 0 : index
    %214 = vector.load %arg3[%c2_108, %c2_109, %c0_110, %c0_111] : memref<3x4x1x64xf32, #tpu.memory_space<vmem>>, vector<1x1x1x64xf32>
    %215 = vector.shape_cast %214 : vector<1x1x1x64xf32> to vector<1x64xf32>
    %216 = vector.broadcast %215 : vector<1x64xf32> to vector<16x64xf32>
    %217 = arith.mulf %213, %216 : vector<16x64xf32>
    %218 = arith.addf %211, %217 : vector<16x64xf32>
    %219 = tpu.transpose %212, [1, 0] : vector<16x16xf32> -> vector<16x16xf32>
    %220 = tpu.concatenate %219, %219, %219, %219 in 1 : vector<16x16xf32>, vector<16x16xf32>, vector<16x16xf32>, vector<16x16xf32> -> vector<16x64xf32>
    %c2_112 = arith.constant 2 : index
    %c2_113 = arith.constant 2 : index
    %c0_114 = arith.constant 0 : index
    %c0_115 = arith.constant 0 : index
    %221 = vector.load %arg4[%c2_112, %c2_113, %c0_114, %c0_115] : memref<3x4x1x64xf32, #tpu.memory_space<vmem>>, vector<1x1x1x64xf32>
    %222 = vector.shape_cast %221 : vector<1x1x1x64xf32> to vector<1x64xf32>
    %223 = vector.broadcast %222 : vector<1x64xf32> to vector<16x64xf32>
    %224 = arith.mulf %220, %223 : vector<16x64xf32>
    %225 = arith.addf %218, %224 : vector<16x64xf32>
    %226 = vector.extract_strided_slice %71 {offsets = [176, 0], sizes = [16, 16], strides = [1, 1]} : vector<192x16xf32> to vector<16x16xf32>
    %227 = tpu.concatenate %226, %226, %226, %226 in 1 : vector<16x16xf32>, vector<16x16xf32>, vector<16x16xf32>, vector<16x16xf32> -> vector<16x64xf32>
    %c2_116 = arith.constant 2 : index
    %c3_117 = arith.constant 3 : index
    %c0_118 = arith.constant 0 : index
    %c0_119 = arith.constant 0 : index
    %228 = vector.load %arg3[%c2_116, %c3_117, %c0_118, %c0_119] : memref<3x4x1x64xf32, #tpu.memory_space<vmem>>, vector<1x1x1x64xf32>
    %229 = vector.shape_cast %228 : vector<1x1x1x64xf32> to vector<1x64xf32>
    %230 = vector.broadcast %229 : vector<1x64xf32> to vector<16x64xf32>
    %231 = arith.mulf %227, %230 : vector<16x64xf32>
    %232 = arith.addf %225, %231 : vector<16x64xf32>
    %233 = tpu.transpose %226, [1, 0] : vector<16x16xf32> -> vector<16x16xf32>
    %234 = tpu.concatenate %233, %233, %233, %233 in 1 : vector<16x16xf32>, vector<16x16xf32>, vector<16x16xf32>, vector<16x16xf32> -> vector<16x64xf32>
    %c2_120 = arith.constant 2 : index
    %c3_121 = arith.constant 3 : index
    %c0_122 = arith.constant 0 : index
    %c0_123 = arith.constant 0 : index
    %235 = vector.load %arg4[%c2_120, %c3_121, %c0_122, %c0_123] : memref<3x4x1x64xf32, #tpu.memory_space<vmem>>, vector<1x1x1x64xf32>
    %236 = vector.shape_cast %235 : vector<1x1x1x64xf32> to vector<1x64xf32>
    %237 = vector.broadcast %236 : vector<1x64xf32> to vector<16x64xf32>
    %238 = arith.mulf %234, %237 : vector<16x64xf32>
    %239 = arith.addf %232, %238 : vector<16x64xf32>
    %240 = tpu.concatenate %3, %3, %3, %3 in 1 : vector<16x16xf32>, vector<16x16xf32>, vector<16x16xf32>, vector<16x16xf32> -> vector<16x64xf32>
    %241 = tpu.concatenate %7, %7, %7, %7 in 1 : vector<1x16xf32>, vector<1x16xf32>, vector<1x16xf32>, vector<1x16xf32> -> vector<1x64xf32>
    %c0_124 = arith.constant 0 : index
    %c0_125 = arith.constant 0 : index
    %c0_126 = arith.constant 0 : index
    %c0_127 = arith.constant 0 : index
    %242 = vector.load %arg5[%c0_124, %c0_125, %c0_126, %c0_127] : memref<4x4x1x64xf32, #tpu.memory_space<vmem>>, vector<1x1x1x64xf32>
    %243 = vector.shape_cast %242 : vector<1x1x1x64xf32> to vector<1x64xf32>
    %244 = vector.broadcast %243 : vector<1x64xf32> to vector<16x64xf32>
    %245 = arith.mulf %244, %240 : vector<16x64xf32>
    %c1_128 = arith.constant 1 : index
    %c0_129 = arith.constant 0 : index
    %c0_130 = arith.constant 0 : index
    %c0_131 = arith.constant 0 : index
    %246 = vector.load %arg5[%c1_128, %c0_129, %c0_130, %c0_131] : memref<4x4x1x64xf32, #tpu.memory_space<vmem>>, vector<1x1x1x64xf32>
    %247 = vector.shape_cast %246 : vector<1x1x1x64xf32> to vector<1x64xf32>
    %248 = vector.broadcast %247 : vector<1x64xf32> to vector<16x64xf32>
    %249 = vector.broadcast %5 : vector<16x1xf32> to vector<16x64xf32>
    %250 = arith.mulf %248, %249 : vector<16x64xf32>
    %251 = arith.addf %245, %250 : vector<16x64xf32>
    %c2_132 = arith.constant 2 : index
    %c0_133 = arith.constant 0 : index
    %c0_134 = arith.constant 0 : index
    %c0_135 = arith.constant 0 : index
    %252 = vector.load %arg5[%c2_132, %c0_133, %c0_134, %c0_135] : memref<4x4x1x64xf32, #tpu.memory_space<vmem>>, vector<1x1x1x64xf32>
    %253 = vector.shape_cast %252 : vector<1x1x1x64xf32> to vector<1x64xf32>
    %254 = arith.mulf %253, %241 : vector<1x64xf32>
    %255 = vector.broadcast %254 : vector<1x64xf32> to vector<16x64xf32>
    %256 = arith.addf %251, %255 : vector<16x64xf32>
    %c3_136 = arith.constant 3 : index
    %c0_137 = arith.constant 0 : index
    %c0_138 = arith.constant 0 : index
    %c0_139 = arith.constant 0 : index
    %257 = vector.load %arg5[%c3_136, %c0_137, %c0_138, %c0_139] : memref<4x4x1x64xf32, #tpu.memory_space<vmem>>, vector<1x1x1x64xf32>
    %258 = vector.shape_cast %257 : vector<1x1x1x64xf32> to vector<1x64xf32>
    %259 = vector.broadcast %258 : vector<1x64xf32> to vector<16x64xf32>
    %260 = arith.addf %256, %259 : vector<16x64xf32>
    %261 = tpu.concatenate %14, %14, %14, %14 in 1 : vector<16x16xf32>, vector<16x16xf32>, vector<16x16xf32>, vector<16x16xf32> -> vector<16x64xf32>
    %262 = arith.mulf %261, %260 : vector<16x64xf32>
    %263 = arith.addf %239, %262 : vector<16x64xf32>
    %c0_140 = arith.constant 0 : index
    %c1_141 = arith.constant 1 : index
    %c0_142 = arith.constant 0 : index
    %c0_143 = arith.constant 0 : index
    %264 = vector.load %arg5[%c0_140, %c1_141, %c0_142, %c0_143] : memref<4x4x1x64xf32, #tpu.memory_space<vmem>>, vector<1x1x1x64xf32>
    %265 = vector.shape_cast %264 : vector<1x1x1x64xf32> to vector<1x64xf32>
    %266 = vector.broadcast %265 : vector<1x64xf32> to vector<16x64xf32>
    %267 = arith.mulf %266, %240 : vector<16x64xf32>
    %c1_144 = arith.constant 1 : index
    %c1_145 = arith.constant 1 : index
    %c0_146 = arith.constant 0 : index
    %c0_147 = arith.constant 0 : index
    %268 = vector.load %arg5[%c1_144, %c1_145, %c0_146, %c0_147] : memref<4x4x1x64xf32, #tpu.memory_space<vmem>>, vector<1x1x1x64xf32>
    %269 = vector.shape_cast %268 : vector<1x1x1x64xf32> to vector<1x64xf32>
    %270 = vector.broadcast %269 : vector<1x64xf32> to vector<16x64xf32>
    %271 = vector.broadcast %5 : vector<16x1xf32> to vector<16x64xf32>
    %272 = arith.mulf %270, %271 : vector<16x64xf32>
    %273 = arith.addf %267, %272 : vector<16x64xf32>
    %c2_148 = arith.constant 2 : index
    %c1_149 = arith.constant 1 : index
    %c0_150 = arith.constant 0 : index
    %c0_151 = arith.constant 0 : index
    %274 = vector.load %arg5[%c2_148, %c1_149, %c0_150, %c0_151] : memref<4x4x1x64xf32, #tpu.memory_space<vmem>>, vector<1x1x1x64xf32>
    %275 = vector.shape_cast %274 : vector<1x1x1x64xf32> to vector<1x64xf32>
    %276 = arith.mulf %275, %241 : vector<1x64xf32>
    %277 = vector.broadcast %276 : vector<1x64xf32> to vector<16x64xf32>
    %278 = arith.addf %273, %277 : vector<16x64xf32>
    %c3_152 = arith.constant 3 : index
    %c1_153 = arith.constant 1 : index
    %c0_154 = arith.constant 0 : index
    %c0_155 = arith.constant 0 : index
    %279 = vector.load %arg5[%c3_152, %c1_153, %c0_154, %c0_155] : memref<4x4x1x64xf32, #tpu.memory_space<vmem>>, vector<1x1x1x64xf32>
    %280 = vector.shape_cast %279 : vector<1x1x1x64xf32> to vector<1x64xf32>
    %281 = vector.broadcast %280 : vector<1x64xf32> to vector<16x64xf32>
    %282 = arith.addf %278, %281 : vector<16x64xf32>
    %283 = tpu.concatenate %16, %16, %16, %16 in 1 : vector<16x16xf32>, vector<16x16xf32>, vector<16x16xf32>, vector<16x16xf32> -> vector<16x64xf32>
    %284 = arith.mulf %283, %282 : vector<16x64xf32>
    %285 = arith.addf %263, %284 : vector<16x64xf32>
    %c0_156 = arith.constant 0 : index
    %c2_157 = arith.constant 2 : index
    %c0_158 = arith.constant 0 : index
    %c0_159 = arith.constant 0 : index
    %286 = vector.load %arg5[%c0_156, %c2_157, %c0_158, %c0_159] : memref<4x4x1x64xf32, #tpu.memory_space<vmem>>, vector<1x1x1x64xf32>
    %287 = vector.shape_cast %286 : vector<1x1x1x64xf32> to vector<1x64xf32>
    %288 = vector.broadcast %287 : vector<1x64xf32> to vector<16x64xf32>
    %289 = arith.mulf %288, %240 : vector<16x64xf32>
    %c1_160 = arith.constant 1 : index
    %c2_161 = arith.constant 2 : index
    %c0_162 = arith.constant 0 : index
    %c0_163 = arith.constant 0 : index
    %290 = vector.load %arg5[%c1_160, %c2_161, %c0_162, %c0_163] : memref<4x4x1x64xf32, #tpu.memory_space<vmem>>, vector<1x1x1x64xf32>
    %291 = vector.shape_cast %290 : vector<1x1x1x64xf32> to vector<1x64xf32>
    %292 = vector.broadcast %291 : vector<1x64xf32> to vector<16x64xf32>
    %293 = vector.broadcast %5 : vector<16x1xf32> to vector<16x64xf32>
    %294 = arith.mulf %292, %293 : vector<16x64xf32>
    %295 = arith.addf %289, %294 : vector<16x64xf32>
    %c2_164 = arith.constant 2 : index
    %c2_165 = arith.constant 2 : index
    %c0_166 = arith.constant 0 : index
    %c0_167 = arith.constant 0 : index
    %296 = vector.load %arg5[%c2_164, %c2_165, %c0_166, %c0_167] : memref<4x4x1x64xf32, #tpu.memory_space<vmem>>, vector<1x1x1x64xf32>
    %297 = vector.shape_cast %296 : vector<1x1x1x64xf32> to vector<1x64xf32>
    %298 = arith.mulf %297, %241 : vector<1x64xf32>
    %299 = vector.broadcast %298 : vector<1x64xf32> to vector<16x64xf32>
    %300 = arith.addf %295, %299 : vector<16x64xf32>
    %c3_168 = arith.constant 3 : index
    %c2_169 = arith.constant 2 : index
    %c0_170 = arith.constant 0 : index
    %c0_171 = arith.constant 0 : index
    %301 = vector.load %arg5[%c3_168, %c2_169, %c0_170, %c0_171] : memref<4x4x1x64xf32, #tpu.memory_space<vmem>>, vector<1x1x1x64xf32>
    %302 = vector.shape_cast %301 : vector<1x1x1x64xf32> to vector<1x64xf32>
    %303 = vector.broadcast %302 : vector<1x64xf32> to vector<16x64xf32>
    %304 = arith.addf %300, %303 : vector<16x64xf32>
    %305 = tpu.concatenate %18, %18, %18, %18 in 1 : vector<16x16xf32>, vector<16x16xf32>, vector<16x16xf32>, vector<16x16xf32> -> vector<16x64xf32>
    %306 = arith.mulf %305, %304 : vector<16x64xf32>
    %307 = arith.addf %285, %306 : vector<16x64xf32>
    %c0_172 = arith.constant 0 : index
    %c3_173 = arith.constant 3 : index
    %c0_174 = arith.constant 0 : index
    %c0_175 = arith.constant 0 : index
    %308 = vector.load %arg5[%c0_172, %c3_173, %c0_174, %c0_175] : memref<4x4x1x64xf32, #tpu.memory_space<vmem>>, vector<1x1x1x64xf32>
    %309 = vector.shape_cast %308 : vector<1x1x1x64xf32> to vector<1x64xf32>
    %310 = vector.broadcast %309 : vector<1x64xf32> to vector<16x64xf32>
    %311 = arith.mulf %310, %240 : vector<16x64xf32>
    %c1_176 = arith.constant 1 : index
    %c3_177 = arith.constant 3 : index
    %c0_178 = arith.constant 0 : index
    %c0_179 = arith.constant 0 : index
    %312 = vector.load %arg5[%c1_176, %c3_177, %c0_178, %c0_179] : memref<4x4x1x64xf32, #tpu.memory_space<vmem>>, vector<1x1x1x64xf32>
    %313 = vector.shape_cast %312 : vector<1x1x1x64xf32> to vector<1x64xf32>
    %314 = vector.broadcast %313 : vector<1x64xf32> to vector<16x64xf32>
    %315 = vector.broadcast %5 : vector<16x1xf32> to vector<16x64xf32>
    %316 = arith.mulf %314, %315 : vector<16x64xf32>
    %317 = arith.addf %311, %316 : vector<16x64xf32>
    %c2_180 = arith.constant 2 : index
    %c3_181 = arith.constant 3 : index
    %c0_182 = arith.constant 0 : index
    %c0_183 = arith.constant 0 : index
    %318 = vector.load %arg5[%c2_180, %c3_181, %c0_182, %c0_183] : memref<4x4x1x64xf32, #tpu.memory_space<vmem>>, vector<1x1x1x64xf32>
    %319 = vector.shape_cast %318 : vector<1x1x1x64xf32> to vector<1x64xf32>
    %320 = arith.mulf %319, %241 : vector<1x64xf32>
    %321 = vector.broadcast %320 : vector<1x64xf32> to vector<16x64xf32>
    %322 = arith.addf %317, %321 : vector<16x64xf32>
    %c3_184 = arith.constant 3 : index
    %c3_185 = arith.constant 3 : index
    %c0_186 = arith.constant 0 : index
    %c0_187 = arith.constant 0 : index
    %323 = vector.load %arg5[%c3_184, %c3_185, %c0_186, %c0_187] : memref<4x4x1x64xf32, #tpu.memory_space<vmem>>, vector<1x1x1x64xf32>
    %324 = vector.shape_cast %323 : vector<1x1x1x64xf32> to vector<1x64xf32>
    %325 = vector.broadcast %324 : vector<1x64xf32> to vector<16x64xf32>
    %326 = arith.addf %322, %325 : vector<16x64xf32>
    %327 = tpu.concatenate %20, %20, %20, %20 in 1 : vector<16x16xf32>, vector<16x16xf32>, vector<16x16xf32>, vector<16x16xf32> -> vector<16x64xf32>
    %328 = arith.mulf %327, %326 : vector<16x64xf32>
    %329 = arith.addf %307, %328 : vector<16x64xf32>
    %c0_188 = arith.constant 0 : index
    %c0_189 = arith.constant 0 : index
    %c0_190 = arith.constant 0 : index
    %330 = vector.load %arg9[%c0_188, %c0_189, %c0_190] : memref<1x16x64xf32, #tpu.memory_space<vmem>>, vector<1x16x64xf32>
    %331 = vector.shape_cast %330 : vector<1x16x64xf32> to vector<16x64xf32>
    %332 = vector.shape_cast %329 : vector<16x64xf32> to vector<1x16x64xf32>
    tpu.vector_store %arg9[%c0_188, %c0_189, %c0_190], %332 {strides = array<i32>} : memref<1x16x64xf32, #tpu.memory_space<vmem>>, vector<1x16x64xf32>,
    return
  }
  func.func @transform_0(%arg0: i32) -> (i32, i32, i32, i32) {
    %c0_i32 = arith.constant 0 : i32
    %c0_i32_0 = arith.constant 0 : i32
    %c0_i32_1 = arith.constant 0 : i32
    %c0_i32_2 = arith.constant 0 : i32
    return %arg0, %c0_i32, %c0_i32_0, %c0_i32_1 : i32, i32, i32, i32
  }
  func.func @transform_1(%arg0: i32) -> (i32, i32, i32) {
    %c0_i32 = arith.constant 0 : i32
    %c0_i32_0 = arith.constant 0 : i32
    %c0_i32_1 = arith.constant 0 : i32
    return %arg0, %c0_i32, %c0_i32_0 : i32, i32, i32
  }
  func.func @transform_2(%arg0: i32) -> (i32, i32, i32, i32) {
    %c0_i32 = arith.constant 0 : i32
    %c0_i32_0 = arith.constant 0 : i32
    %c0_i32_1 = arith.constant 0 : i32
    %c0_i32_2 = arith.constant 0 : i32
    %c0_i32_3 = arith.constant 0 : i32
    return %c0_i32, %c0_i32_0, %c0_i32_1, %c0_i32_2 : i32, i32, i32, i32
  }
  func.func @transform_3(%arg0: i32) -> (i32, i32, i32, i32) {
    %c0_i32 = arith.constant 0 : i32
    %c0_i32_0 = arith.constant 0 : i32
    %c0_i32_1 = arith.constant 0 : i32
    %c0_i32_2 = arith.constant 0 : i32
    %c0_i32_3 = arith.constant 0 : i32
    return %c0_i32, %c0_i32_0, %c0_i32_1, %c0_i32_2 : i32, i32, i32, i32
  }
  func.func @transform_4(%arg0: i32) -> (i32, i32, i32, i32) {
    %c0_i32 = arith.constant 0 : i32
    %c0_i32_0 = arith.constant 0 : i32
    %c0_i32_1 = arith.constant 0 : i32
    %c0_i32_2 = arith.constant 0 : i32
    %c0_i32_3 = arith.constant 0 : i32
    return %c0_i32, %c0_i32_0, %c0_i32_1, %c0_i32_2 : i32, i32, i32, i32
  }
  func.func @transform_5(%arg0: i32) -> (i32, i32) {
    %c0_i32 = arith.constant 0 : i32
    %c0_i32_0 = arith.constant 0 : i32
    %c0_i32_1 = arith.constant 0 : i32
    return %c0_i32, %c0_i32_0 : i32, i32
  }
  func.func @transform_6(%arg0: i32) -> (i32, i32, i32) {
    %c0_i32 = arith.constant 0 : i32
    %c0_i32_0 = arith.constant 0 : i32
    %c0_i32_1 = arith.constant 0 : i32
    %c0_i32_2 = arith.constant 0 : i32
    return %c0_i32, %c0_i32_0, %c0_i32_1 : i32, i32, i32
  }
  func.func @transform_7(%arg0: i32) -> (i32, i32) {
    %c0_i32 = arith.constant 0 : i32
    %c0_i32_0 = arith.constant 0 : i32
    %c0_i32_1 = arith.constant 0 : i32
    return %c0_i32, %c0_i32_0 : i32, i32
  }
  func.func @transform_8(%arg0: i32) -> (i32, i32, i32) {
    %c0_i32 = arith.constant 0 : i32
    %c0_i32_0 = arith.constant 0 : i32
    %c0_i32_1 = arith.constant 0 : i32
    return %arg0, %c0_i32, %c0_i32_0 : i32, i32, i32
  }
}

</mosaic_0001>

<bundles_post_ra>
// kernel: tpu_custom_call.1
= control target key start
LH: loop header
LB: loop body
LE: loop exit
PB: predicated region body
PF: predicated region fallthrough
CT: control target
= control target key end

     0   :  { %s5133_s0 = inlined_call_operand.hbm [shape: f32[2,4,16,16], index: 0, kind: input, shape index: {}]   ;;  %s5134_s1 = inlined_call_operand.hbm [shape: f32[2,16,16], index: 1, kind: input, shape index: {}]   ;;  %s5135_s2 = inlined_call_operand.hbm [shape: f32[3,4,1,64], index: 2, kind: input, shape index: {}]   ;;  %s5136_s3 = inlined_call_operand.hbm [shape: f32[3,4,1,64], index: 3, kind: input, shape index: {}]   ;;  %s5137_s4 = inlined_call_operand.hbm [shape: f32[4,4,1,64], index: 4, kind: input, shape index: {}]   ;;  %s5138_s5 = inlined_call_operand.hbm [shape: f32[16,64], index: 5, kind: input, shape index: {}]   ;;  %s5139_s6 = inlined_call_operand.hbm [shape: f32[4,4,64], index: 6, kind: input, shape index: {}]   ;;  %s5140_s7 = inlined_call_operand.vmem [shape: f32[1,64], index: 7, kind: input, shape index: {}]   ;;  %s5141_s8 = inlined_call_operand.hbm [shape: f32[2,16,64], index: 8, kind: output, shape index: {}]  }
   0x1   :  { %5196 = sst [smem:[#allocation73_spill]] %s5135_s2 }
   0x2   :  { %5197 = sst [smem:[#allocation74_spill]] %s5136_s3 }
   0x3   :  { %5198 = sst [smem:[#allocation75_spill]] %s5137_s4 }
   0x4   :  { %5199 = sst [smem:[#allocation76_spill]] %s5138_s5 }
   0x5   :  { %5200 = sst [smem:[#allocation77_spill]] %s5139_s6 }
   0x6   :  { %13 = vsyncpa [#allocation3], 0 }
   0x7   :  { %15 = vsyncpa [#allocation3 + $0x1], 0 }
   0x8   :  { %16 = vsyncpa [#allocation6], 0 }
   0x9   :  { %18 = vsyncpa [#allocation6 + $0x1], 0 }
   0xa   :  { %19 = vsyncpa [#allocation9], 0 }
   0xb   :  { %20 = vsyncpa [#allocation12], 0 }
   0xc   :  { %21 = vsyncpa [#allocation4], 0 }
   0xd   :  { %23 = vsyncpa [#allocation4 + $0x1], 0  ;;  %s3505_s27 = smov 0   ;;  %s3507_s28 = smov 0  }
   0xe   :  { %s3509_s29 = smov 0   ;;  %s3511_s30 = smov 0  }
   0xf LB: > { %5201 = sst [smem:[#allocation21_spill]] %s3438_s29  ;;  %s3529_s12 = sadd.s32 4294967295, %s3442_s30   ;;  %s3442_s30 = sphi %s3511_s30, %s5325_s30   ;;  %s3438_s29 = sphi %s3509_s29, %s5322_s29   ;;  %s3434_s28 = sphi %s3507_s28, %s5324_s28   ;;  %s3430_s27 = sphi %s3505_s27, %s5323_s27  }
  0x10   : > { %s5202_s2 = sld [smem:[#allocation73_spill]]  ;;  %p2925_p0 = scmp.ge.s32.totalorder %s3442_s30, 1 }
  0x11   : > { %p50_p1 = scmp.eq.s32.totalorder %s3529_s12, 0  ;;  %p238_p2 = scmp.lt.s32.totalorder %s3442_s30, 3 }
  0x12   : > { %s3444_s14 = smov [#allocation7]   ;;  %s5204_s3 = sld [smem:[#allocation74_spill]] }
  0x13   : > { %p3534_p3 = pnand %p2925_p0, %p238_p2  ;;  %s251_s15 = sshll.u32 %s3444_s14, 4  ;;  %s252_s15 = int_to_ptr.vmem [resolvable:$true] %s251_s15 }
  0x14   : > { %s5206_s5 = sld [smem:[#allocation76_spill]]  ;;  %s3445_s23 = smov [#allocation8]  }
  0x15   : > { %p3015_p4 = pneg %p3534_p3  ;;  %s265_s24 = sshll.u32 %s3445_s23, 4  ;;  %s266_s24 = int_to_ptr.vmem [resolvable:$true] %s265_s24 }
  0x16   : > { %s249_s11 = sshll.u32 %s5202_s2, 4  ;;  %s3446_s25 = smov 16   ;;  %s250_s11 = int_to_ptr.hbm [resolvable:$true] %s249_s11 }
  0x17   : > { %p3546_p6 = pnand %p3015_p4, %p50_p1  ;;  %s3447_s26 = smov 1  }
  0x18   : > { %s263_s18 = sshll.u32 %s5204_s3, 4  ;;  %s3448_s9 = smov [#allocation11]   ;;  %s264_s18 = int_to_ptr.hbm [resolvable:$true] %s263_s18 }
  0x19   : > { %3018 = dma.hbm_to_vmem [thread:$0]  (!%p3546_p6), %s250_s11, 192, %s252_s15, [#allocation6], %s3446_s25, %s3446_s25, %s3447_s26  }
  0x1a   : > { %s291_s22 = sshll.u32 %s5206_s5, 4  ;;  %s293_s10 = sshll.u32 %s3448_s9, 4  ;;  %s292_s22 = int_to_ptr.hbm [resolvable:$true] %s291_s22  ;;  %s294_s10 = int_to_ptr.vmem [resolvable:$true] %s293_s10 }
  0x1b   : > { %3021 = dma.hbm_to_vmem [thread:$0]  (!%p3546_p6), %s264_s18, 192, %s266_s24, [#allocation9], %s3446_s25, %s3446_s25, %s3447_s26  }
  0x1c   : > { %s5207_s4 = sld [smem:[#allocation75_spill]]  ;;  %s5142_s20 = smov 128  }
  0x1d   : > { %s5144_s21 = smov 8   ;;  %s3451_s11 = smov [#allocation10]  }
  0x1e   : > { %3027 = dma.hbm_to_vmem [thread:$0]  (!%p3546_p6), %s292_s22, 256, %s294_s10, [#allocation12], %s5142_s20, %s5142_s20, %s5144_s21  }
  0x1f   : > { %s279_s15 = sshll.u32 %s3451_s11, 4  ;;  %s5208_s6 = sld [smem:[#allocation77_spill]]  ;;  %s280_s15 = int_to_ptr.vmem [resolvable:$true] %s279_s15 }
  0x20   : > { %s3452_s22 = smov [#allocation13]   ;;  %s3453_s10 = smov 64  }
  0x21   : > { %s307_s9 = sshll.u32 %s3452_s22, 4  ;;  %s3454_s14 = smov 4   ;;  %s308_s9 = int_to_ptr.vmem [resolvable:$true] %s307_s9 }
  0x22   : > { %s277_s17 = sshll.u32 %s5207_s4, 4  ;;  %s2924_s16 = sadd.s32 4294967294, %s3442_s30   ;;  %s278_s17 = int_to_ptr.hbm [resolvable:$true] %s277_s17 }
  0x23   : > { %3024 = dma.hbm_to_vmem [thread:$0]  (!%p3546_p6), %s278_s17, 256, %s280_s15, [#allocation9], %s3446_s25, %s3446_s25, %s3447_s26  }
  0x24   : > { %s3574_s11 = sadd.s32 1, %s3442_s30   ;;  %s36_s18 = sadd.s32 1, %s3438_s29 }
  0x25   : > { %s305_s24 = sshll.u32 %s5208_s6, 4  ;;  %s33_s23 = ssub.s32 %s3442_s30, %s3574_s11  ;;  %s306_s24 = int_to_ptr.hbm [resolvable:$true] %s305_s24 }
  0x26   : > { %3030 = dma.hbm_to_vmem [thread:$0]  (!%p3546_p6), %s306_s24, 256, %s308_s9, [#allocation12], %s3453_s10, %s3453_s10, %s3454_s14  }
  0x27   : > { %p43_p7 = scmp.ne.s32.totalorder %s3438_s29, %s3434_s28  ;;  %p34_p8 = scmp.eq.s32.totalorder %s33_s23, 0 }
  0x28   : > { %p44_p9 = scmp.eq.s32.totalorder %s3442_s30, 0  ;;  %p49_p10 = scmp.ne.s32.totalorder %s3434_s28, %s3430_s27 }
  0x29   : > { %p225_p11 = scmp.eq.s32.totalorder %s3529_s12, 1  ;;  %p231_p2 = scmp.eq.s32.totalorder %s2924_s16, 1 }
  0x2a   : > { %s3586_s25 = scalar_select %p34_p8, %s3438_s29, %s36_s18  }
  0x2b   : > { %p3588_p12 = por %p44_p9, %p43_p7  ;;  %p3594_p13 = por %p50_p1, %p49_p10 }
  0x2c   : > { %5209 = sst [smem:[#allocation22_spill]] %s3586_s25  ;;  %p3598_p0 = por %p225_p11, %p43_p7 }
  0x2d   : > { %p3047_p4 = scmp.lt.s32.totalorder %s3442_s30, 2  ;;  %s3604_s15 = sand.u32 1, %s3438_s29  }
  0x2e   : > { %p3606_p6 = por %p231_p2, %p49_p10  ;;  %s2932_s22 = sshll.u32 %s3604_s15, 6 }
  0x2f   : > { %s2980_s9 = sshll.u32 %s3442_s30, 6  ;;  %s328_s20 = scalar_lea.vmem [#allocation2], %s2932_s22 }
  0x30   : > { %s333_s18 = scalar_lea.hbm %s5133_s0, %s2980_s9  ;;  %s336_s21 = sshll.u32 %s328_s20, 4  ;;  %s337_s21 = int_to_ptr.vmem [resolvable:$true] %s336_s21 }
  0x31   : > { %s334_s23 = sshll.u32 %s333_s18, 4  ;;  %p3617_p7 = pnand %p3047_p4, %p3588_p12  ;;  %s335_s23 = int_to_ptr.hbm [resolvable:$true] %s334_s23 }
  0x32   : > { %s346_s2 = sand.u32 1, %s3442_s30   ;;  %s2935_s3 = sshll.u32 %s3604_s15, 4 }
  0x33   : > { %s325_s4 = scalar_lea.sflag [#allocation3], %s3604_s15  ;;  %s3300_s5 = sshra.s32 %s335_s23, 4  ;;  %s3301_s5 = int_to_ptr.hbm [resolvable:$true] %s3300_s5 }
  0x34   : > { %s3302_s6 = scalar_lea.hbm %s3301_s5, 64  ;;  %p3304_p9 = pneg %p3617_p7 }
  0x35   : > { %p3303_p8 = scmp.ne.s32.totalorder %s3301_s5, %s3302_s6  ;;  %s3307_s22 = scalar_lea.hbm %s5133_s0, 128 }
  0x36   : > { %p3308_p12 = scmp.lt.s32.totalorder %s3301_s5, %s5133_s0  ;;  %p3309_p2 = scmp.lt.s32.totalorder %s3307_s22, %s3302_s6 }
  0x37   : > { %p3305_p10 = pnand %p3304_p9, %p3303_p8 }
  0x38   : > { %p3310_p4 = por %p3309_p2, %p3308_p12 }
  0x39   : > { %p3306_p11 = pneg %p3305_p10 }
  0x3b   : > { %p3311_p5 = pnand %p3310_p4, %p3306_p11 }
  0x3d   : > { %3314 = shalt.err (!%p3311_p5)
}
  0x3e   : > { %s5215_s15 = smov 8   ;;  %s5216_s14 = smov 128  }
  0x3f   : > { %3034 = dma.hbm_to_vmem [thread:$0]  (!%p3617_p7), %s335_s23, 1024, %s337_s21, %s325_s4, %s5216_s14, %s5216_s14, %s5215_s15  }
  0x40   : > { %s2981_s18 = sshll.u32 %s3442_s30, 4  ;;  %s350_s25 = scalar_lea.vmem [#allocation5], %s2935_s3 }
  0x41   : > { %s358_s20 = sshll.u32 %s350_s25, 4  ;;  %s355_s9 = scalar_lea.hbm %s5134_s1, %s2981_s18  ;;  %s359_s20 = int_to_ptr.vmem [resolvable:$true] %s358_s20 }
  0x42   : > { %s356_s5 = sshll.u32 %s355_s9, 4  ;;  %s347_s6 = scalar_lea.sflag [#allocation6], %s346_s2  ;;  %s357_s5 = int_to_ptr.hbm [resolvable:$true] %s356_s5 }
  0x43   : > { %s3330_s22 = sshra.s32 %s357_s5, 4  ;;  %s3337_s3 = scalar_lea.hbm %s5134_s1, 32  ;;  %s3331_s22 = int_to_ptr.hbm [resolvable:$true] %s3330_s22 }
  0x44   : > { %s3332_s10 = scalar_lea.hbm %s3331_s22, 16  ;;  %p3338_p11 = scmp.lt.s32.totalorder %s3331_s22, %s5134_s1 }
  0x45   : > { %p3333_p5 = scmp.ne.s32.totalorder %s3331_s22, %s3332_s10  ;;  %p3339_p12 = scmp.lt.s32.totalorder %s3337_s3, %s3332_s10 }
  0x47   : > { %p3335_p8 = pnand %p3333_p5, %p3304_p9  ;;  %p3340_p2 = por %p3339_p12, %p3338_p11 }
  0x49   : > { %p3336_p10 = pneg %p3335_p8 }
  0x4b   : > { %p3341_p4 = pnand %p3340_p2, %p3336_p10 }
  0x4d   : > { %3344 = shalt.err (!%p3341_p4)
}
  0x4e   : > { %3037 = dma.hbm_to_vmem [thread:$0]  (!%p3617_p7), %s357_s5, 256, %s359_s20, %s347_s6, %s5216_s14, %s5216_s14, %s5215_s15  }
  0x4f   : > { %370 = sbr.rel (%p3534_p3) target bundleno = 1651 (0x673), region = 52 }
  0x54   : > { %s3661_s2 = sand.u32 1, %s3434_s28  }
  0x55   : > { %s2939_s29 = sshll.u32 %s3661_s2, 6  ;;  %s373_s18 = scalar_lea.sflag [#allocation3], %s3661_s2 }
  0x56   : > { %s3665_s26 = scalar_lea.vmem [#allocation2], %s2939_s29 }
  0x57   : > { %3405 = dma.done.wait (%p3594_p13), %s373_s18, 1024  }
  0x58   : > { %3407 = vsyncadd (%p3594_p13), %s373_s18, 4294966272  ;;  %s382_s13 = sand.u32 1, %s3529_s12   ;;  %s2940_s16 = sshll.u32 %s3661_s2, 4 }
  0x59   : > { %s383_s15 = scalar_lea.sflag [#allocation6], %s382_s13  ;;  %s386_s14 = scalar_lea.vmem [#allocation5], %s2940_s16 }
  0x5a   : > { %3409 = dma.done.wait (%p3594_p13), %s383_s15, 256  }
  0x5b   : > { %3411 = vsyncadd (%p3594_p13), %s383_s15, 4294967040 }
  0x5c   : > { %3413 = dma.done.wait (%p50_p1), [#allocation6], 192  }
  0x5d   : > { %3415 = vsyncadd (%p50_p1), [#allocation6], 4294967104 }
  0x5e   : > { %3417 = dma.done.wait (%p50_p1), [#allocation9], 448  }
  0x5f   : > { %3419 = vsyncadd (%p50_p1), [#allocation9], 4294966848 }
  0x60   : > { %3421 = dma.done.wait (%p50_p1), [#allocation12], 512  }
  0x61   : > { %3423 = vsyncadd (%p50_p1), [#allocation12], 4294966784  ;;  %vm484_vm0 = vcmask 130048   ;;  %v3691_v0 = vld [vmem:[%s386_s14] sm:$0xff]  ;;  %v3693_v1 = vld [vmem:[%s386_s14 + $0x8] sm:$0xff]  ;;  %v793_v62 = vlaneseq  ;;  %vm820_vm1 = vcmask 1045509  }
  0x62   : > { %v3696_v2 = vld [vmem:[%s3665_s26 + $0x8] sm:$0xff]  ;;  %v514_v3 = vsel %vm484_vm0, %v3691_v0, 0.0  ;;  %v3705_v5 = vld [vmem:[%s3665_s26] sm:$0xff]  ;;  %v3711_v7 = vld [vmem:[%s3665_s26 + $0x18] sm:$0xff]  ;;  %2984 = vmatpush.msra.mxu2 %v3693_v1  ;;  %2985 = vmatpush.msra.mxu3 %v3693_v1  ;;  %v517_v30 = vsel %vm484_vm0, %v3693_v1, 0.0  ;;  %vm822_vm2 = vcmask 1046534  }
  0x63   : > { %v3702_v4 = vmul.f32 %v3696_v2, %v3693_v1  ;;  %v3708_v6 = vld [vmem:[%s3665_s26 + $0x20] sm:$0xff]  ;;  %515 = vadd.xlane.f32.xlu1 %v514_v3  ;;  %v3717_v8 = vmul.f32 %v3705_v5, %v3691_v0  ;;  %v540_v10 = vmul.f32 %v3711_v7, %v3693_v1  ;;  %v3724_v11 = vld [vmem:[%s3665_s26 + $0x10] sm:$0xff]  ;;  %v534_v13 = vld [vmem:[%s3665_s26 + $0x28] sm:$0xff]  ;;  %v733_v31 = vsel %vm484_vm0, %v3705_v5, 0.0  ;;  %s3455_s19 = smov 32   ;;  %s3456_s20 = smov 16  }
  0x64   : > { %v541_v9 = vmul.f32 %v3708_v6, %v3691_v0  ;;  %v3727_v12 = vld [vmem:[%s3665_s26 + $0x30] sm:$0xff]  ;;  %v539_v15 = vmul.f32 %v3724_v11, %v3691_v0  ;;  %v542_v17 = vmul.f32 %v534_v13, %v3693_v1  ;;  %v3738_v18 = vld [vmem:[%s3665_s26 + $0x38] sm:$0xff]  ;;  %2987 = vmatpush.msra.mxu2 %v3691_v0  ;;  %2988 = vmatpush.msra.mxu3 %v3691_v0  ;;  %v736_v33 = vsel %vm484_vm0, %v3696_v2, 0.0  ;;  %s3457_s9 = smov 48   ;;  %s2982_s22 = sshll.u32 %s3529_s12, 4 }
  0x65   : > { %v684_v14 = vsel %vm484_vm0, %v3702_v4, 0.0  ;;  %v543_v16 = vmul.f32 %v3727_v12, %v3691_v0  ;;  %v681_v19 = vsel %vm484_vm0, %v3717_v8, 0.0  ;;  %v544_v21 = vmul.f32 %v3738_v18, %v3693_v1  ;;  %s2777_s21 = scalar_lea.hbm %s5141_s8, %s2982_s22  ;;  %s449_s3 = scalar_lea.vmem [#allocation14], %s2940_s16 }
  0x66   : > { %685 = vadd.xlane.f32.xlu2 %v684_v14  ;;  %v693_v20 = vsel %vm484_vm0, %v541_v9, 0.0  ;;  %682 = vadd.xlane.f32.xlu0 %v681_v19  ;;  %v705_v22 = vadd.f32 %v684_v14, %v681_v19  ;;  %v690_v23 = vsel %vm484_vm0, %v540_v10, 0.0  ;;  %v687_v24 = vsel %vm484_vm0, %v539_v15, 0.0  ;;  %s2778_s12 = sshll.u32 %s449_s3, 4  ;;  %s2780_s25 = sshll.u32 %s2777_s21, 4  ;;  %s2779_s12 = int_to_ptr.vmem [resolvable:$true] %s2778_s12  ;;  %s2781_s25 = int_to_ptr.hbm [resolvable:$true] %s2780_s25 }
  0x67   : > { %v696_v25 = vsel %vm484_vm0, %v542_v17, 0.0  ;;  %2961 = vmatmul.msk.f32.vlgmr.msra.gmra.mxu2 %vm484_vm0, %v539_v15  ;;  %v712_v26 = vadd.f32 %v690_v23, %v687_v24  ;;  %v699_v27 = vsel %vm484_vm0, %v543_v16, 0.0  ;;  %v702_v29 = vsel %vm484_vm0, %v544_v21, 0.0  ;;  %s2766_s23 = scalar_lea.sflag [#allocation4], %s3661_s2  ;;  %s3374_s29 = sshra.s32 %s2781_s25, 4  ;;  %s3375_s29 = int_to_ptr.hbm [resolvable:$true] %s3374_s29 }
  0x68   : > { %v719_v28 = vadd.f32 %v696_v25, %v693_v20  ;;  %v726_v32 = vadd.f32 %v702_v29, %v699_v27  ;;  %v3759_v34 = vadd.f32 %v736_v33, %v733_v31  ;;  %v748_v35 = vsel %vm484_vm0, %v534_v13, 0.0  ;;  %s3376_s18 = scalar_lea.hbm %s3375_s29, 16  ;;  %s3380_s16 = scalar_lea.hbm %s5141_s8, 32 }
  0x69   : > { %v745_v36 = vsel %vm484_vm0, %v3708_v6, 0.0  ;;  %v739_v38 = vsel %vm484_vm0, %v3724_v11, 0.0  ;;  %v742_v39 = vsel %vm484_vm0, %v3711_v7, 0.0  ;;  %v754_v41 = vsel %vm484_vm0, %v3738_v18, 0.0  ;;  %p3377_p1 = scmp.ne.s32.totalorder %s3375_s29, %s3376_s18  ;;  %p3381_p7 = scmp.lt.s32.totalorder %s3375_s29, %s5141_s8 }
  0x6a   : > { %v3764_v37 = vadd.f32 %v748_v35, %v745_v36  ;;  %v764_v40 = vadd.f32 %v742_v39, %v739_v38  ;;  %v751_v42 = vsel %vm484_vm0, %v3727_v12, 0.0  ;;  %v706_v44 = vrot.slane %v705_v22, 4  ;;  %p3382_p9 = scmp.lt.s32.totalorder %s3380_s16, %s3376_s18 }
  0x6b   : > { %518 = vadd.xlane.f32.xlu1 %v517_v30  ;;  %v3775_v43 = vadd.f32 %v754_v41, %v751_v42  ;;  %v713_v45 = vrot.slane %v712_v26, 4  ;;  %v720_v46 = vrot.slane %v719_v28, 4  ;;  %v727_v50 = vrot.slane %v726_v32, 4  ;;  %p3378_p3 = pnand %p3377_p1, %p3598_p0 }
  0x6c   : > { %v707_v47 = vadd.f32 %v706_v44, %v705_v22  ;;  %v758_v3 = vrot.slane %v3759_v34, 4  ;;  %vm901_vm3 = vcmask 261312   ;;  %vm920_vm4 = vcmask 392512   ;;  %p3383_p5 = por %p3382_p9, %p3381_p7 }
  0x6d   : > { %v714_v48 = vadd.f32 %v713_v45, %v712_v26  ;;  %v721_v49 = vadd.f32 %v720_v46, %v719_v28  ;;  %v728_v54 = vadd.f32 %v727_v50, %v726_v32  ;;  %v779_v30 = vrot.slane %v3775_v43, 4  ;;  %p3379_p13 = pneg %p3378_p3 }
  0x6e   : > { %694 = vadd.xlane.f32.xlu2 %v693_v20  ;;  %691 = vadd.xlane.f32.xlu0 %v690_v23  ;;  %v708_v51 = vrot.slane %v707_v47, 2  ;;  %v3807_v14 = vadd.f32 %v758_v3, %v3759_v34  ;;  %vm939_vm5 = vcmask 523712   ;;  %vm824_vm6 = vcmask 1047559  }
  0x6f   : > { %2962 = vmatmul.msk.f32.gmra.mxu2 %vm484_vm0, %v540_v10  ;;  %v715_v52 = vrot.slane %v714_v48, 2  ;;  %v722_v53 = vrot.slane %v721_v49, 2  ;;  %v729_v60 = vrot.slane %v728_v54, 2  ;;  %v772_v10 = vrot.slane %v3764_v37, 4  ;;  %p3384_p8 = pnand %p3383_p5, %p3379_p13 }
  0x70   : > { %v709_v56 = vadd.f32 %v708_v51, %v707_v47  ;;  %v760_v28 = vrot.slane %v3807_v14, 2  ;;  %vm809_vm7 = vcmask 1041409   ;;  %vm798_vm8 = vcmask 130112  }
  0x71   : > { %v716_v57 = vadd.f32 %v715_v52, %v714_v48  ;;  %v723_v59 = vadd.f32 %v722_v53, %v721_v49  ;;  %v3816_v19 = vadd.f32 %v772_v10, %v3764_v37  ;;  %vm811_vm9 = vcmask 1042434  }
  0x72   : > { %v710_v63 = vrot.slane %v709_v56, 1  ;;  %vm813_vm10 = vcmask 1043459   ;;  %vm859_vm11 = vcmask 1043456   ;;  %vm955_vm12 = vcmask 261120  }
  0x73   : > { %688 = vadd.xlane.f32.xlu1 %v687_v24  ;;  %vm957_vm13 = vcmask 392192   ;;  %vm1056_vm14 = vcmask 519168   ;;  %vm2762_vm15 = vcmask 523264  }
  0x76   : > { %700 = vadd.xlane.f32.xlu2 %v699_v27  ;;  %697 = vadd.xlane.f32.xlu0 %v696_v25 }
  0x77   : > { %2963 = vmatmul.msk.f32.gmra.mxu2 %vm484_vm0, %v541_v9  ;;  %v730_v9 = vadd.f32 %v729_v60, %v728_v54 }
  0x7b   : > { %749 = vadd.xlane.f32.xlu1 %v748_v35 }
  0x7e   : > { %734 = vadd.xlane.f32.xlu2 %v733_v31  ;;  %703 = vadd.xlane.f32.xlu0 %v702_v29 }
  0x7f   : > { %2964 = vmatmul.msk.f32.gmra.mxu2 %vm484_vm0, %v542_v17 }
  0x86   : > { %740 = vadd.xlane.f32.xlu2 %v739_v38  ;;  %737 = vadd.xlane.f32.xlu0 %v736_v33 }
  0x87   : > { %2965 = vmatmul.msk.f32.gmra.mxu2 %vm484_vm0, %v543_v16 }
  0x8e   : > { %746 = vadd.xlane.f32.xlu2 %v745_v36  ;;  %743 = vadd.xlane.f32.xlu0 %v742_v39 }
  0x8f   : > { %2966 = vmatmul.msk.f32.gmra.mxu2 %vm484_vm0, %v544_v21 }
  0x96   : > { %755 = vadd.xlane.f32.xlu2 %v754_v41  ;;  %752 = vadd.xlane.f32.xlu0 %v751_v42 }
  0xb5   : > { %609 = vxpose.xlu1.b32.start [1/2] (short) (narrow) %v3708_v6, 16  ;;  %v724_v6 = vrot.slane %v723_v59, 1 }
  0xb7   : > { %v3813_v17 = vadd.f32 %v724_v6, %v723_v59 }
  0xbd   : > { %610 = vxpose.xlu1.b32.end [2/2] (short) (narrow) %v534_v13, 16 }
  0xbf   : > { %545 = vxpose.xlu2.b32.start [1/2] (short) (narrow) %v3705_v5, 16  ;;  %452 = vxpose.xlu0.b32.start [1/2] (short) (narrow) %v3691_v0, 16  ;;  %v765_v5 = vrot.slane %v764_v40, 4 }
  0xc1   : > { %v3809_v15 = vadd.f32 %v765_v5, %v764_v40 }
  0xc3   : > { %v767_v29 = vrot.slane %v3809_v15, 2 }
  0xc7   : > { %546 = vxpose.xlu2.b32.end [2/2] (short) (narrow) %v3696_v2, 16  ;;  %453 = vxpose.xlu0.b32.end [2/2] (short) (narrow) %v3693_v1, 16  ;;  %v717_v2 = vrot.slane %v716_v57, 1 }
  0xc9   : > { %v3804_v13 = vadd.f32 %v717_v2, %v716_v57 }
  0xcf   : > { %641 = vxpose.xlu2.b32.start [1/2] (short) (narrow) %v3727_v12, 16  ;;  %577 = vxpose.xlu0.b32.start [1/2] (short) (narrow) %v3724_v11, 16  ;;  %v3798_v11 = vand.u32 127, %v793_v62 }
  0xd1   : > { %v3819_v21 = vadd.s32 4294967272, %v3798_v11  ;;  %v3822_v22 = vadd.s32 4294967256, %v3798_v11  ;;  %v3825_v23 = vadd.s32 4294967240, %v3798_v11  ;;  %v3828_v24 = vadd.s32 4294967280, %v3798_v11 }
  0xd2   : > { %v3831_v25 = vadd.s32 4294967264, %v3798_v11  ;;  %v3834_v26 = vadd.s32 4294967248, %v3798_v11  ;;  %v3843_v31 = vadd.s32 4294967288, %v3798_v11 }
  0xd6   : > { %v3789_v55 = vpop.xlane.xlu1 %515 }
  0xd7   : > { %642 = vxpose.xlu2.b32.end [2/2] (short) (narrow) %v3738_v18, 16  ;;  %5217 = vst [vmem:[#allocation23_spill] sm:$0xff] %v3789_v55  ;;  %578 = vxpose.xlu0.b32.end [2/2] (short) (narrow) %v3711_v7, 16  ;;  %v3802_v7 = vadd.f32 %v710_v63, %v709_v56  ;;  %v731_v18 = vrot.slane %v730_v9, 1 }
  0xd9   : > { %v3792_v58 = vpop.xlane.xlu2 %685  ;;  %v3794_v61 = vpop.xlane.xlu0 %682  ;;  %v821_v27 = vsel %vm820_vm1, %v3804_v13, %v3802_v7  ;;  %v3845_v32 = vadd.f32 %v731_v18, %v730_v9 }
  0xda   : > { %v900_v33 = vperm.slane %v3792_v58, %v3819_v21  ;;  %v898_v34 = vperm.slane %v3794_v61, %v3828_v24  ;;  %v823_v36 = vsel %vm822_vm2, %v3813_v17, %v821_v27  ;;  %v919_v37 = vperm.slane %v3792_v58, %v3822_v22 }
  0xdb   : > { %v938_v38 = vperm.slane %v3792_v58, %v3825_v23  ;;  %v917_v39 = vperm.slane %v3794_v61, %v3831_v25  ;;  %v936_v40 = vperm.slane %v3794_v61, %v3834_v26  ;;  %v797_v44 = vperm.slane %v3792_v58, %v3843_v31 }
  0xdc   : > { %v795_v45 = vperm.slane %v3794_v61, %v3798_v11  ;;  %v902_v49 = vsel %vm901_vm3, %v900_v33, %v898_v34  ;;  %v825_v52 = vsel %vm824_vm6, %v3845_v32, %v823_v36 }
  0xdd   : > { %v921_v53 = vsel %vm920_vm4, %v919_v37, %v917_v39  ;;  %v940_v54 = vsel %vm939_vm5, %v938_v38, %v936_v40 }
  0xde   : > { %v3800_v12 = vpop.xlane.xlu1 %518  ;;  %v799_v2 = vsel %vm798_vm8, %v797_v44, %v795_v45 }
  0xdf   : > { %5218 = vst [vmem:[#allocation24_spill] sm:$0xff] %v3800_v12 }
  0xe1   : > { %v3811_v16 = vpop.xlane.xlu2 %694  ;;  %v692_v20 = vpop.xlane.xlu0 %691 }
  0xe2   : > { %v923_v50 = vperm.slane %v692_v20, %v3822_v22  ;;  %v801_v56 = vperm.slane %v692_v20, %v3843_v31  ;;  %v904_v57 = vperm.slane %v692_v20, %v3819_v21  ;;  %v942_v58 = vperm.slane %v692_v20, %v3825_v23 }
  0xe3   : > { %v803_v5 = vperm.slane %v3811_v16, %v3798_v11  ;;  %v906_v6 = vperm.slane %v3811_v16, %v3828_v24  ;;  %v925_v9 = vperm.slane %v3811_v16, %v3831_v25  ;;  %v944_v18 = vperm.slane %v3811_v16, %v3834_v26 }
  0xe6   : > { %v689_v35 = vpop.xlane.xlu1 %688 }
  0xe7   : > { %v922_v41 = vperm.slane %v689_v35, %v3831_v25  ;;  %v800_v46 = vperm.slane %v689_v35, %v3798_v11  ;;  %v903_v47 = vperm.slane %v689_v35, %v3828_v24  ;;  %v941_v51 = vperm.slane %v689_v35, %v3834_v26 }
  0xe9   : > { %v3862_v42 = vpop.xlane.xlu2 %700  ;;  %v698_v48 = vpop.xlane.xlu0 %697  ;;  %v924_v59 = vsel %vm920_vm4, %v923_v50, %v922_v41  ;;  %v905_v62 = vsel %vm901_vm3, %v904_v57, %v903_v47  ;;  %v802_v3 = vsel %vm798_vm8, %v801_v56, %v800_v46  ;;  %v943_v10 = vsel %vm939_vm5, %v942_v58, %v941_v51 }
  0xea   : > { %v804_v60 = vperm.slane %v698_v48, %v3843_v31  ;;  %v907_v61 = vperm.slane %v698_v48, %v3819_v21  ;;  %v926_v63 = vperm.slane %v698_v48, %v3822_v22  ;;  %v931_v20 = vsel %vm809_vm7, %v924_v59, %v921_v53 }
  0xeb   : > { %v806_v27 = vperm.slane %v3862_v42, %v3798_v11  ;;  %v945_v33 = vperm.slane %v698_v48, %v3825_v23  ;;  %v810_v36 = vsel %vm809_vm7, %v802_v3, %v799_v2  ;;  %v912_v38 = vsel %vm809_vm7, %v905_v62, %v902_v49 }
  0xec   : > { %v805_v35 = vsel %vm798_vm8, %v804_v60, %v803_v5  ;;  %v908_v37 = vsel %vm901_vm3, %v907_v61, %v906_v6  ;;  %v950_v39 = vsel %vm809_vm7, %v943_v10, %v940_v54  ;;  %v909_v16 = vperm.slane %v3862_v42, %v3828_v24 }
  0xed   : > { %v928_v40 = vperm.slane %v3862_v42, %v3831_v25  ;;  %v927_v41 = vsel %vm920_vm4, %v926_v63, %v925_v9  ;;  %v947_v49 = vperm.slane %v3862_v42, %v3834_v26  ;;  %v946_v50 = vsel %vm939_vm5, %v945_v33, %v944_v18 }
  0xee   : > { %v812_v51 = vsel %vm811_vm9, %v805_v35, %v810_v36  ;;  %v913_v53 = vsel %vm811_vm9, %v908_v37, %v912_v38  ;;  %v932_v58 = vsel %vm811_vm9, %v927_v41, %v931_v20  ;;  %v951_v2 = vsel %vm811_vm9, %v946_v50, %v950_v39 }
  0xef   : > { %v780_v3 = vadd.f32 %v779_v30, %v3775_v43  ;;  %v774_v9 = vrot.slane %v3816_v19, 2  ;;  %v768_v43 = vadd.f32 %v767_v29, %v3809_v15 }
  0xf1   : > { %v3900_v34 = vpop.xlane.xlu2 %734  ;;  %v704_v44 = vpop.xlane.xlu0 %703  ;;  %v781_v20 = vrot.slane %v780_v3, 2  ;;  %v769_v35 = vrot.slane %v768_v43, 1 }
  0xf2   : > { %v807_v45 = vperm.slane %v704_v44, %v3843_v31  ;;  %v910_v46 = vperm.slane %v704_v44, %v3819_v21  ;;  %v929_v47 = vperm.slane %v704_v44, %v3822_v22  ;;  %v948_v48 = vperm.slane %v704_v44, %v3825_v23 }
  0xf3   : > { %v782_v36 = vadd.f32 %v781_v20, %v780_v3 }
  0xf4   : > { %v808_v54 = vsel %vm798_vm8, %v807_v45, %v806_v27  ;;  %v911_v56 = vsel %vm901_vm3, %v910_v46, %v909_v16  ;;  %v930_v57 = vsel %vm920_vm4, %v929_v47, %v928_v40  ;;  %v949_v61 = vsel %vm939_vm5, %v948_v48, %v947_v49 }
  0xf5   : > { %v814_v59 = vsel %vm813_vm10, %v808_v54, %v812_v51  ;;  %v914_v60 = vsel %vm813_vm10, %v911_v56, %v913_v53  ;;  %v933_v42 = vsel %vm813_vm10, %v930_v57, %v932_v58  ;;  %v952_v6 = vsel %vm813_vm10, %v949_v61, %v951_v2 }
  0xf6   : > { %v860_v62 = vsel %vm859_vm11, %v814_v59, %v825_v52  ;;  %v954_v63 = vsel %vm484_vm0, %v814_v59, %v914_v60  ;;  %v761_v52 = vadd.f32 %v760_v28, %v3807_v14  ;;  %v775_v27 = vadd.f32 %v774_v9, %v3816_v19  ;;  %v3962_v28 = vpop.xlane.xlu1 %749 }
  0xf7   : > { %v956_v5 = vsel %vm955_vm12, %v954_v63, %v933_v42  ;;  %862 = vxpose.xlu1.b32.start [1/2] (short) (narrow) %v860_v62, 16  ;;  %v3956_v16 = vadd.f32 %v769_v35, %v768_v43  ;;  %v783_v29 = vrot.slane %v782_v36, 1  ;;  %v842_v45 = vperm.slane %v3962_v28, %v3843_v31  ;;  %v894_v43 = vld [vmem:[#allocation11] sm:$0xff] }
  0xf8   : > { %v3941_v18 = vsel %vm957_vm13, %v956_v5, %v952_v6  ;;  %v762_v33 = vrot.slane %v761_v52, 1  ;;  %v776_v37 = vrot.slane %v775_v27, 1  ;;  %v835_v47 = vperm.slane %v3900_v34, %v3798_v11 }
  0xf9   : > { %v3938_v10 = vpop.xlane.xlu2 %740  ;;  %v3949_v30 = vpop.xlane.xlu0 %737  ;;  %v3980_v49 = vadd.f32 %v783_v29, %v782_v36 }
  0xfa   : > { %v3954_v39 = vadd.f32 %v762_v33, %v761_v52  ;;  %v3964_v40 = vadd.f32 %v776_v37, %v775_v27  ;;  %v838_v19 = vperm.slane %v3938_v10, %v3798_v11  ;;  %v836_v41 = vperm.slane %v3949_v30, %v3843_v31  ;;  %v895_v52 = vld [vmem:[#allocation11 + $0x8] sm:$0xff] }
  0xfb   : > { %1088 = vmatpush.msra.mxu1 %v895_v52 }
  0xfc   : > { %v855_v46 = vsel %vm820_vm1, %v3956_v16, %v3954_v39  ;;  %v837_v51 = vsel %vm798_vm8, %v836_v41, %v835_v47 }
  0xfd   : > { %v856_v53 = vsel %vm822_vm2, %v3964_v40, %v855_v46  ;;  %1089 = vmatpush.msra.mxu1 %v894_v43 }
  0xfe   : > { %v857_v60 = vsel %vm824_vm6, %v3980_v49, %v856_v53 }
  0xff   : > { %2983 = vmatpush.msrb.mxu1 %v3693_v1 }
 0x101   : > { %v3952_v38 = vpop.xlane.xlu2 %746  ;;  %v3958_v14 = vpop.xlane.xlu0 %743  ;;  %2986 = vmatpush.msrb.mxu1 %v3691_v0 }
 0x102   : > { %v839_v15 = vperm.slane %v3958_v14, %v3843_v31  ;;  %v841_v44 = vperm.slane %v3952_v38, %v3798_v11 }
 0x104   : > { %v840_v48 = vsel %vm798_vm8, %v839_v15, %v838_v19  ;;  %v843_v57 = vsel %vm798_vm8, %v842_v45, %v841_v44 }
 0x105   : > { %v847_v58 = vsel %vm809_vm7, %v840_v48, %v837_v51 }
 0x106   : > { %v848_v61 = vsel %vm811_vm9, %v843_v57, %v847_v58  ;;  %v4071_v57 = vpop.f32.mrf.mxu2 }
 0x109   : > { %v3982_v50 = vpop.xlane.xlu2 %755  ;;  %v3989_v56 = vpop.xlane.xlu0 %752 }
 0x10a   : > { %v845_v54 = vperm.slane %v3982_v50, %v3843_v31  ;;  %v844_v59 = vperm.slane %v3989_v56, %v3798_v11 }
 0x10c   : > { %v846_v42 = vsel %vm798_vm8, %v845_v54, %v844_v59 }
 0x10d   : > { %v4000_v62 = vsel %vm813_vm10, %v846_v42, %v848_v61 }
 0x10e   : > { %v861_v31 = vsel %vm859_vm11, %v4000_v62, %v857_v60  ;;  %v4076_v59 = vpop.f32.mrf.mxu2 }
 0x10f   : > { %863 = vxpose.xlu1.b32.end [2/2] (short) (narrow) %v861_v31, 16 }
 0x116   : > { %v4081_v42 = vpop.f32.mrf.mxu2 }
 0x117   : > { %5226 = vst [vmem:[#allocation32_spill] sm:$0xff] %v4081_v42 }
 0x158   : > { %v561_v63 = vpop.trf.xlu2 }
 0x159   : > { %2967 = vmatmul.msk.f32.gmra.mxu2 %vm484_vm0, %v561_v63  ;;  %v625_v20 = vpop.trf.xlu1 }
 0x160   : > { %v562_v2 = vpop.trf.xlu2 }
 0x161   : > { %2968 = vmatmul.msk.f32.vlgmr.msra.gmra.mxu3 %vm484_vm0, %v562_v2  ;;  %v626_v33 = vpop.trf.xlu1 }
 0x163   : > { %v4006_v11 = vpop.trf.xlu0 }
 0x164   : > { %5219 = vst [vmem:[#allocation25_spill] sm:$0xff] %v4006_v11  ;;  %v673_v9 = vmul.f32 %v561_v63, %v4006_v11 }
 0x168   : > { %v657_v36 = vpop.trf.xlu2 }
 0x169   : > { %v679_v41 = vmul.f32 %v657_v36, %v4006_v11 }
 0x16b   : > { %v4008_v3 = vpop.trf.xlu0 }
 0x16c   : > { %5220 = vst [vmem:[#allocation26_spill] sm:$0xff] %v4008_v3  ;;  %505 = vmatpush.msra.mxu0 %v4008_v3  ;;  %v674_v27 = vmul.f32 %v562_v2, %v4008_v3  ;;  %v678_v19 = vmul.f32 %v626_v33, %v4008_v3  ;;  %v4092_v2 = vpop.f32.mrf.mxu2 }
 0x16d   : > { %5229 = vst [vmem:[#allocation35_spill] sm:$0xff] %v4092_v2 }
 0x16e   : > { %506 = vmatpush.msra.mxu0 %v4006_v11 }
 0x16f   : > { %2947 = vmatmul.msk.f32.vlgmr.msra.gmra.mxu0 %vm484_vm0, %v3691_v0 }
 0x170   : > { %1183 = vmatpush.msrb.mxu0 %v3693_v1  ;;  %v658_v37 = vpop.trf.xlu2 }
 0x171   : > { %v680_v44 = vmul.f32 %v658_v37, %v4008_v3 }
 0x172   : > { %1184 = vmatpush.msrb.mxu0 %v3691_v0  ;;  %v677_v0 = vmul.f32 %v625_v20, %v4006_v11 }
 0x173   : > { %v593_v5 = vpop.trf.xlu0 }
 0x174   : > { %2969 = vmatmul.msk.f32.gmra.mxu3 %vm484_vm0, %v593_v5  ;;  %v675_v35 = vmul.f32 %v593_v5, %v4006_v11  ;;  %v989_v11 = vperm.slane %v3962_v28, %v3819_v21 }
 0x177   : > { %2948 = vmatmul.msk.f32.gmra.mxu0 %vm484_vm0, %v3693_v1 }
 0x17b   : > { %v594_v6 = vpop.trf.xlu0 }
 0x17c   : > { %2970 = vmatmul.msk.f32.gmra.mxu3 %vm484_vm0, %v594_v6  ;;  %v676_v1 = vmul.f32 %v594_v6, %v4008_v3 }
 0x17f   : > { %2951 = vmatmul.msk.f32.vlgmr.msrb.gmra.mxu0 %vm484_vm0, %v673_v9  ;;  %v4100_v9 = vpop.f32.mrf.mxu2 }
 0x180   : > { %5231 = vst [vmem:[#allocation37_spill] sm:$0xff] %v4100_v9 }
 0x184   : > { %2971 = vmatmul.msk.f32.gmra.mxu3 %vm484_vm0, %v625_v20 }
 0x187   : > { %2952 = vmatmul.msk.f32.gmra.mxu0 %vm484_vm0, %v674_v27  ;;  %v4106_v43 = vpop.f32.mrf.mxu2 }
 0x188   : > { %5233 = vst [vmem:[#allocation39_spill] sm:$0xff] %v4106_v43 }
 0x18c   : > { %2972 = vmatmul.msk.f32.gmra.mxu3 %vm484_vm0, %v626_v33  ;;  %v962_v33 = vsel %vm809_vm7, %v3804_v13, %v3802_v7 }
 0x18f   : > { %2953 = vmatmul.msk.f32.gmra.mxu0 %vm484_vm0, %v675_v35 }
 0x194   : > { %2973 = vmatmul.msk.f32.gmra.mxu3 %vm484_vm0, %v657_v36  ;;  %v963_v36 = vsel %vm811_vm9, %v3813_v17, %v962_v33 }
 0x197   : > { %2954 = vmatmul.msk.f32.gmra.mxu0 %vm484_vm0, %v676_v1  ;;  %v4127_v1 = vsel %vm813_vm10, %v3845_v32, %v963_v36 }
 0x19c   : > { %2974 = vmatmul.msk.f32.gmra.mxu3 %vm484_vm0, %v658_v37  ;;  %v1037_v37 = vsel %vm809_vm7, %v3956_v16, %v3954_v39 }
 0x19d   : > { %v1038_v13 = vsel %vm811_vm9, %v3964_v40, %v1037_v37 }
 0x19e   : > { %v4142_v17 = vsel %vm813_vm10, %v3980_v49, %v1038_v13 }
 0x19f   : > { %2955 = vmatmul.msk.f32.gmra.mxu0 %vm484_vm0, %v677_v0 }
 0x1ab   : > { %v878_v15 = vpop.trf.xlu1 }
 0x1ac   : > { %2949 = vmatmul.msk.f32.vlgmr.msra.gmra.mxu1 %vm484_vm0, %v878_v15 }
 0x1b3   : > { %v879_v29 = vpop.trf.xlu1 }
 0x1b4   : > { %2950 = vmatmul.msk.f32.gmra.mxu1 %vm484_vm0, %v879_v29 }
 0x1bc   : > { %2956 = vmatmul.msk.f32.vlgmr.msrb.gmra.mxu1 %vm484_vm0, %v678_v19 }
 0x1c4   : > { %2957 = vmatmul.msk.f32.gmra.mxu1 %vm484_vm0, %v679_v41 }
 0x1cc   : > { %2958 = vmatmul.msk.f32.gmra.mxu1 %vm484_vm0, %v680_v44 }
 0x1d4   : > { %2959 = vmatmul.msk.f32.gmra.mxu1 %vm484_vm0, %v3717_v8 }
 0x1dc   : > { %2960 = vmatmul.msk.f32.gmra.mxu1 %vm484_vm0, %v3702_v4  ;;  %v4112_v27 = vpop.f32.mrf.mxu2 }
 0x1e4   : > { %v4086_v31 = vpop.f32.mrf.mxu3 }
 0x1e5   : > { %5228 = vst [vmem:[#allocation34_spill] sm:$0xff] %v4086_v31 }
 0x1ec   : > { %v4048_v45 = vpop.f32.mrf.mxu0 }
 0x1ed   : > { %5221 = vst [vmem:[#allocation27_spill] sm:$0xff] %v4048_v45 }
 0x1f4   : > { %v4050_v46 = vpop.f32.mrf.mxu0 }
 0x1f5   : > { %5222 = vst [vmem:[#allocation28_spill] sm:$0xff] %v4050_v46 }
 0x1f7   : > { %v4094_v5 = vpop.f32.mrf.mxu3 }
 0x1fc   : > { %v4052_v47 = vpop.f32.mrf.mxu0 }
 0x1fd   : > { %1292 = vxpose.xlu1.b32.start [1/2] (short) (narrow) %v4052_v47, 16 }
 0x1ff   : > { %v4104_v52 = vpop.f32.mrf.mxu3 }
 0x200   : > { %5232 = vst [vmem:[#allocation38_spill] sm:$0xff] %v4104_v52 }
 0x204   : > { %v4055_v48 = vpop.f32.mrf.mxu0 }
 0x205   : > { %1293 = vxpose.xlu1.b32.end [2/2] (short) (narrow) %v4055_v48, 16 }
 0x207   : > { %v4110_v20 = vpop.f32.mrf.mxu3 }
 0x208   : > { %5234 = vst [vmem:[#allocation40_spill] sm:$0xff] %v4110_v20 }
 0x20c   : > { %v4058_v51 = vpop.f32.mrf.mxu0 }
 0x20d   : > { %5223 = vst [vmem:[#allocation29_spill] sm:$0xff] %v4058_v51  ;;  %1393 = vxpose.xlu2.b32.start [1/2] (short) (narrow) %v4058_v51, 16 }
 0x20f   : > { %v4119_v35 = vpop.f32.mrf.mxu3 }
 0x214   : > { %v4061_v8 = vpop.f32.mrf.mxu0 }
 0x215   : > { %5224 = vst [vmem:[#allocation30_spill] sm:$0xff] %v4061_v8  ;;  %1394 = vxpose.xlu2.b32.end [2/2] (short) (narrow) %v4061_v8, 16 }
 0x217   : > { %v4134_v7 = vpop.f32.mrf.mxu3 }
 0x218   : > { %5235 = vst [vmem:[#allocation41_spill] sm:$0xff] %v4134_v7 }
 0x21c   : > { %v4064_v4 = vpop.f32.mrf.mxu0 }
 0x21d   : > { %1495 = vxpose.xlu0.b32.start [1/2] (short) (narrow) %v4064_v4, 16 }
 0x21f   : > { %v4146_v32 = vpop.f32.mrf.mxu3 }
 0x220   : > { %5236 = vst [vmem:[#allocation42_spill] sm:$0xff] %v4146_v32 }
 0x229   : > { %v4067_v53 = vpop.f32.mrf.mxu1 }
 0x231   : > { %v4069_v54 = vpop.f32.mrf.mxu1 }
 0x232   : > { %5225 = vst [vmem:[#allocation31_spill] sm:$0xff] %v4069_v54 }
 0x239   : > { %v4073_v58 = vpop.f32.mrf.mxu1 }
 0x23a   : > { %1496 = vxpose.xlu0.b32.end [2/2] (short) (narrow) %v4073_v58, 16 }
 0x241   : > { %v4078_v60 = vpop.f32.mrf.mxu1 }
 0x242   : > { %1597 = vxpose.xlu1.b32.start [1/2] (short) (narrow) %v4078_v60, 16 }
 0x249   : > { %v4083_v61 = vpop.f32.mrf.mxu1 }
 0x24a   : > { %5227 = vst [vmem:[#allocation33_spill] sm:$0xff] %v4083_v61  ;;  %1598 = vxpose.xlu1.b32.end [2/2] (short) (narrow) %v4083_v61, 16 }
 0x251   : > { %v4088_v63 = vpop.f32.mrf.mxu1 }
 0x252   : > { %1801 = vxpose.xlu1.b32.start [1/2] (short) (narrow) %v4071_v57, 16  ;;  %1699 = vxpose.xlu0.b32.start [1/2] (short) (narrow) %v4088_v63, 16 }
 0x259   : > { %v4096_v6 = vpop.f32.mrf.mxu1 }
 0x25a   : > { %5230 = vst [vmem:[#allocation36_spill] sm:$0xff] %v4096_v6  ;;  %1802 = vxpose.xlu1.b32.end [2/2] (short) (narrow) %v4076_v59, 16  ;;  %1700 = vxpose.xlu0.b32.end [2/2] (short) (narrow) %v4096_v6, 16 }
 0x262   : > { %2005 = vxpose.xlu1.b32.start [1/2] (short) (narrow) %v4100_v9, 16  ;;  %1903 = vxpose.xlu0.b32.start [1/2] (short) (narrow) %v4081_v42, 16 }
 0x26a   : > { %2006 = vxpose.xlu1.b32.end [2/2] (short) (narrow) %v4106_v43, 16  ;;  %1904 = vxpose.xlu0.b32.end [2/2] (short) (narrow) %v4092_v2, 16  ;;  %v992_v2 = vperm.slane %v3982_v50, %v3819_v21 }
 0x272   : > { %2209 = vxpose.xlu1.b32.start [1/2] (short) (narrow) %v4094_v5, 16  ;;  %2107 = vxpose.xlu0.b32.start [1/2] (short) (narrow) %v4112_v27, 16 }
 0x27a   : > { %2210 = vxpose.xlu1.b32.end [2/2] (short) (narrow) %v4104_v52, 16  ;;  %2108 = vxpose.xlu0.b32.end [2/2] (short) (narrow) %v4086_v31, 16 }
 0x27e   : > { %969 = vrot.lane.b32.xlu2 %v4127_v1, %s3455_s19 }
 0x282   : > { %2413 = vxpose.xlu1.b32.start [1/2] (short) (narrow) %v4134_v7, 16  ;;  %2311 = vxpose.xlu0.b32.start [1/2] (short) (narrow) %v4110_v20, 16 }
 0x286   : > { %1041 = vrot.lane.b32.xlu2 %v4142_v17, %s3456_s20 }
 0x28a   : > { %2414 = vxpose.xlu1.b32.end [2/2] (short) (narrow) %v4146_v32, 16  ;;  %2312 = vxpose.xlu0.b32.end [2/2] (short) (narrow) %v4119_v35, 16 }
 0x28e   : > { %1047 = vrot.lane.b32.xlu2 %v4142_v17, %s3457_s9 }
 0x296   : > { %1262 = vrot.lane.b32.xlu2 %v4055_v48, %s3456_s20 }
 0x29e   : > { %1268 = vrot.lane.b32.xlu2 %v4055_v48, %s3455_s19 }
 0x2a1   : > { %v4156_v39 = vpop.trf.xlu1 }
 0x2a6   : > { %1274 = vrot.lane.b32.xlu2 %v4055_v48, %s3457_s9  ;;  %v4168_v40 = vpop.trf.xlu2 }
 0x2a9   : > { %v4160_v16 = vpop.trf.xlu1 }
 0x2aa   : > { %5237 = vst [vmem:[#allocation43_spill] sm:$0xff] %v4160_v16 }
 0x2ae   : > { %1328 = vrot.lane.b32.xlu2 %v4160_v16, %s3456_s20  ;;  %v4174_v49 = vpop.trf.xlu2 }
 0x2b6   : > { %1334 = vrot.lane.b32.xlu2 %v4160_v16, %s3455_s19 }
 0x2be   : > { %1360 = vrot.lane.b32.xlu2 %v4058_v51, %s3456_s20 }
 0x2c6   : > { %1366 = vrot.lane.b32.xlu2 %v4058_v51, %s3455_s19 }
 0x2ce   : > { %1372 = vrot.lane.b32.xlu2 %v4058_v51, %s3457_s9 }
 0x2d6   : > { %1462 = vrot.lane.b32.xlu2 %v4064_v4, %s3456_s20  ;;  %v4204_v33 = vpop.trf.xlu0 }
 0x2d8   : > { %v4178_v0 = vpop.permute.xlu2 %969 }
 0x2de   : > { %1578 = vrot.lane.b32.xlu2 %v4083_v61, %s3457_s9  ;;  %v4218_v13 = vpop.trf.xlu0 }
 0x2e0   : > { %v4182_v15 = vpop.permute.xlu2 %1041 }
 0x2e4   : > { %1338 = vrot.lane.b32.xlu1 %v4156_v39, %s3457_s9 }
 0x2e6   : > { %v4186_v29 = vpop.trf.xlu1 }
 0x2e7   : > { %5238 = vst [vmem:[#allocation44_spill] sm:$0xff] %v4186_v29  ;;  %1631 = vrot.lane.b32.xlu2 %v4186_v29, %s3456_s20 }
 0x2e8   : > { %v4190_v19 = vpop.permute.xlu2 %1047 }
 0x2ec   : > { %1470 = vrot.lane.b32.xlu1 %v4073_v58, %s3455_s19 }
 0x2ee   : > { %v4194_v41 = vpop.trf.xlu1 }
 0x2ef   : > { %5239 = vst [vmem:[#allocation45_spill] sm:$0xff] %v4194_v41  ;;  %1633 = vrot.lane.b32.xlu2 %v4194_v41, %s3456_s20 }
 0x2f0   : > { %v4198_v44 = vpop.permute.xlu2 %1262 }
 0x2f4   : > { %1476 = vrot.lane.b32.xlu1 %v4073_v58, %s3457_s9 }
 0x2f6   : > { %v4222_v12 = vpop.trf.xlu1 }
 0x2f7   : > { %1637 = vrot.lane.b32.xlu2 %v4186_v29, %s3455_s19 }
 0x2f8   : > { %v4206_v36 = vpop.permute.xlu2 %1268  ;;  %966 = vrot.lane.b32.xlu0 %v4127_v1, %s3456_s20 }
 0x2fc   : > { %1529 = vrot.lane.b32.xlu1 %v4204_v33, %s3456_s20 }
 0x2fe   : > { %v4234_v32 = vpop.trf.xlu1 }
 0x2ff   : > { %1639 = vrot.lane.b32.xlu2 %v4194_v41, %s3455_s19 }
 0x300   : > { %v4214_v37 = vpop.permute.xlu2 %1274  ;;  %972 = vrot.lane.b32.xlu0 %v4127_v1, %s3457_s9 }
 0x304   : > { %1531 = vrot.lane.b32.xlu1 %v4218_v13, %s3456_s20 }
 0x307   : > { %1643 = vrot.lane.b32.xlu2 %v4186_v29, %s3457_s9  ;;  %v4248_v29 = vpop.trf.xlu1 }
 0x308   : > { %1044 = vrot.lane.b32.xlu0 %v4142_v17, %s3455_s19  ;;  %v4228_v55 = vpop.permute.xlu2 %1328  ;;  %5243 = vst [vmem:[#allocation49_spill] sm:$0xff] %v4248_v29 }
 0x309   : > { %5240 = vst [vmem:[#allocation46_spill] sm:$0xff] %v4228_v55  ;;  %v1007_v55 = vperm.slane %v3989_v56, %v3831_v25 }
 0x30c   : > { %1535 = vrot.lane.b32.xlu1 %v4204_v33, %s3455_s19 }
 0x30f   : > { %1645 = vrot.lane.b32.xlu2 %v4194_v41, %s3457_s9  ;;  %v4250_v41 = vpop.trf.xlu0  ;;  %v4260_v45 = vpop.trf.xlu1 }
 0x310   : > { %1260 = vrot.lane.b32.xlu0 %v4052_v47, %s3456_s20  ;;  %v4238_v52 = vpop.permute.xlu2 %1334  ;;  %5244 = vst [vmem:[#allocation50_spill] sm:$0xff] %v4250_v41 }
 0x311   : > { %5241 = vst [vmem:[#allocation47_spill] sm:$0xff] %v4238_v52 }
 0x312   : > { %5246 = vst [vmem:[#allocation52_spill] sm:$0xff] %v4260_v45 }
 0x314   : > { %1537 = vrot.lane.b32.xlu1 %v4218_v13, %s3455_s19 }
 0x317   : > { %1666 = vrot.lane.b32.xlu2 %v4088_v63, %s3456_s20  ;;  %v4264_v51 = vpop.trf.xlu0 }
 0x318   : > { %1266 = vrot.lane.b32.xlu0 %v4052_v47, %s3455_s19  ;;  %v4246_v31 = vpop.permute.xlu2 %1360  ;;  %5247 = vst [vmem:[#allocation53_spill] sm:$0xff] %v4264_v51 }
 0x319   : > { %5242 = vst [vmem:[#allocation48_spill] sm:$0xff] %v4246_v31  ;;  %v4274_v31 = vpop.trf.xlu1 }
 0x31a   : > { %5249 = vst [vmem:[#allocation55_spill] sm:$0xff] %v4274_v31 }
 0x31c   : > { %1541 = vrot.lane.b32.xlu1 %v4204_v33, %s3457_s9 }
 0x31f   : > { %1668 = vrot.lane.b32.xlu2 %v4096_v6, %s3456_s20 }
 0x320   : > { %1272 = vrot.lane.b32.xlu0 %v4052_v47, %s3457_s9  ;;  %v4258_v43 = vpop.permute.xlu2 %1366 }
 0x321   : > { %5245 = vst [vmem:[#allocation51_spill] sm:$0xff] %v4258_v43  ;;  %v4276_v43 = vpop.trf.xlu0 }
 0x322   : > { %5250 = vst [vmem:[#allocation56_spill] sm:$0xff] %v4276_v43 }
 0x324   : > { %1543 = vrot.lane.b32.xlu1 %v4218_v13, %s3457_s9 }
 0x327   : > { %1674 = vrot.lane.b32.xlu2 %v4096_v6, %s3455_s19 }
 0x328   : > { %1326 = vrot.lane.b32.xlu0 %v4156_v39, %s3456_s20  ;;  %v4270_v29 = vpop.permute.xlu2 %1372 }
 0x329   : > { %5248 = vst [vmem:[#allocation54_spill] sm:$0xff] %v4270_v29  ;;  %v4288_v29 = vpop.trf.xlu1  ;;  %v4294_v20 = vpop.trf.xlu0 }
 0x32a   : > { %5252 = vst [vmem:[#allocation58_spill] sm:$0xff] %v4288_v29 }
 0x32b   : > { %5254 = vst [vmem:[#allocation60_spill] sm:$0xff] %v4294_v20 }
 0x32c   : > { %1566 = vrot.lane.b32.xlu1 %v4083_v61, %s3456_s20 }
 0x32f   : > { %1680 = vrot.lane.b32.xlu2 %v4096_v6, %s3457_s9 }
 0x330   : > { %1332 = vrot.lane.b32.xlu0 %v4156_v39, %s3455_s19  ;;  %v4282_v45 = vpop.permute.xlu2 %1462 }
 0x331   : > { %5251 = vst [vmem:[#allocation57_spill] sm:$0xff] %v4282_v45  ;;  %v4304_v45 = vpop.trf.xlu1  ;;  %v4306_v29 = vpop.trf.xlu0 }
 0x332   : > { %5256 = vst [vmem:[#allocation62_spill] sm:$0xff] %v4304_v45 }
 0x333   : > { %5257 = vst [vmem:[#allocation63_spill] sm:$0xff] %v4306_v29 }
 0x334   : > { %1570 = vrot.lane.b32.xlu1 %v4078_v60, %s3455_s19 }
 0x337   : > { %1733 = vrot.lane.b32.xlu2 %v4250_v41, %s3456_s20 }
 0x338   : > { %1340 = vrot.lane.b32.xlu0 %v4160_v16, %s3457_s9  ;;  %v4292_v31 = vpop.permute.xlu2 %1578  ;;  %v1008_v16 = vperm.slane %v3982_v50, %v3822_v22 }
 0x339   : > { %5253 = vst [vmem:[#allocation59_spill] sm:$0xff] %v4292_v31 }
 0x33c   : > { %1572 = vrot.lane.b32.xlu1 %v4083_v61, %s3455_s19  ;;  %v4318_v61 = vpop.trf.xlu1 }
 0x33d   : > { %5259 = vst [vmem:[#allocation65_spill] sm:$0xff] %v4318_v61 }
 0x33f   : > { %1735 = vrot.lane.b32.xlu2 %v4264_v51, %s3456_s20 }
 0x340   : > { %1362 = vrot.lane.b32.xlu0 %v4061_v8, %s3456_s20 }
 0x341   : > { %v4302_v6 = vpop.permute.xlu2 %1631 }
 0x342   : > { %5255 = vst [vmem:[#allocation61_spill] sm:$0xff] %v4302_v6  ;;  %v4320_v6 = vpop.trf.xlu0 }
 0x343   : > { %5260 = vst [vmem:[#allocation66_spill] sm:$0xff] %v4320_v6  ;;  %v1002_v6 = vperm.slane %v3958_v14, %v3822_v22 }
 0x344   : > { %1576 = vrot.lane.b32.xlu1 %v4078_v60, %s3457_s9 }
 0x347   : > { %1739 = vrot.lane.b32.xlu2 %v4250_v41, %s3455_s19 }
 0x348   : > { %1368 = vrot.lane.b32.xlu0 %v4061_v8, %s3455_s19 }
 0x349   : > { %v4314_v31 = vpop.permute.xlu2 %1633 }
 0x34a   : > { %5258 = vst [vmem:[#allocation64_spill] sm:$0xff] %v4314_v31  ;;  %v4332_v31 = vpop.trf.xlu0 }
 0x34b   : > { %5262 = vst [vmem:[#allocation68_spill] sm:$0xff] %v4332_v31 }
 0x34c   : > { %1672 = vrot.lane.b32.xlu1 %v4088_v63, %s3455_s19 }
 0x34f   : > { %1741 = vrot.lane.b32.xlu2 %v4264_v51, %s3455_s19  ;;  %v1005_v51 = vperm.slane %v3962_v28, %v3822_v22 }
 0x350   : > { %1374 = vrot.lane.b32.xlu0 %v4061_v8, %s3457_s9  ;;  %v991_v8 = vperm.slane %v3989_v56, %v3828_v24 }
 0x351   : > { %v4326_v45 = vpop.permute.xlu2 %1637 }
 0x352   : > { %5261 = vst [vmem:[#allocation67_spill] sm:$0xff] %v4326_v45  ;;  %v986_v45 = vperm.slane %v3958_v14, %v3819_v21  ;;  %v4350_v31 = vpop.trf.xlu0 }
 0x353   : > { %5265 = vst [vmem:[#allocation71_spill] sm:$0xff] %v4350_v31  ;;  %v982_v31 = vperm.slane %v3900_v34, %v3828_v24 }
 0x354   : > { %1780 = vrot.lane.b32.xlu1 %v4071_v57, %s3457_s9 }
 0x356   : > { %v4330_v29 = vpop.permute.xlu1 %1338 }
 0x357   : > { %1745 = vrot.lane.b32.xlu2 %v4250_v41, %s3457_s9  ;;  %v985_v41 = vperm.slane %v3938_v10, %v3828_v24 }
 0x358   : > { %1427 = vrot.lane.b32.xlu0 %v4168_v40, %s3456_s20 }
 0x359   : > { %v4338_v61 = vpop.permute.xlu2 %1639  ;;  %v987_v20 = vsel %vm901_vm3, %v986_v45, %v985_v41  ;;  %v998_v45 = vperm.slane %v3900_v34, %v3831_v25 }
 0x35a   : > { %5263 = vst [vmem:[#allocation69_spill] sm:$0xff] %v4338_v61  ;;  %v983_v61 = vperm.slane %v3949_v30, %v3819_v21 }
 0x35c   : > { %1876 = vrot.lane.b32.xlu1 %v4081_v42, %s3455_s19  ;;  %v1001_v42 = vperm.slane %v3938_v10, %v3831_v25  ;;  %v984_v21 = vsel %vm901_vm3, %v983_v61, %v982_v31  ;;  %v1018_v61 = vperm.slane %v3958_v14, %v3825_v23  ;;  %v993_v31 = vsel %vm901_vm3, %v992_v2, %v991_v8 }
 0x35e   : > { %v4342_v43 = vpop.permute.xlu1 %1470  ;;  %v1003_v52 = vsel %vm920_vm4, %v1002_v6, %v1001_v42  ;;  %v1020_v6 = vperm.slane %v3952_v38, %v3834_v26 }
 0x35f   : > { %5264 = vst [vmem:[#allocation70_spill] sm:$0xff] %v4342_v43  ;;  %1768 = vrot.lane.b32.xlu2 %v4071_v57, %s3456_s20  ;;  %v988_v43 = vperm.slane %v3952_v38, %v3828_v24  ;;  %v1004_v24 = vperm.slane %v3952_v38, %v3831_v25  ;;  %v1015_v25 = vperm.slane %v3949_v30, %v3825_v23 }
 0x360   : > { %1429 = vrot.lane.b32.xlu0 %v4174_v49, %s3456_s20 }
 0x361   : > { %v4360_v3 = vpop.permute.xlu2 %1643  ;;  %v990_v41 = vsel %vm901_vm3, %v989_v11, %v988_v43  ;;  %v1017_v11 = vperm.slane %v3938_v10, %v3834_v26  ;;  %v1006_v14 = vsel %vm920_vm4, %v1005_v51, %v1004_v24  ;;  %v1021_v10 = vperm.slane %v3962_v28, %v3825_v23  ;;  %v896_v24 = vld [vmem:[#allocation13] sm:$0xf] }
 0x362   : > { %5266 = vst [vmem:[#allocation72_spill] sm:$0xff] %v4360_v3  ;;  %v999_v3 = vperm.slane %v3949_v30, %v3822_v22  ;;  %v1009_v43 = vsel %vm920_vm4, %v1008_v16, %v1007_v55  ;;  %v1014_v30 = vperm.slane %v3900_v34, %v3834_v26 }
 0x363   : > { %v1019_v51 = vsel %vm939_vm5, %v1018_v61, %v1017_v11  ;;  %v981_v11 = vld [vmem:[#allocation13 + $0x8] sm:$0xf] }
 0x364   : > { %1984 = vrot.lane.b32.xlu1 %v4100_v9, %s3457_s9  ;;  %v994_v9 = vsel %vm809_vm7, %v987_v20, %v984_v21  ;;  %v1000_v22 = vsel %vm920_vm4, %v999_v3, %v998_v45  ;;  %v1016_v28 = vsel %vm939_vm5, %v1015_v25, %v1014_v30  ;;  %v1022_v45 = vsel %vm939_vm5, %v1021_v10, %v1020_v6 }
 0x365   : > { %v1010_v42 = vsel %vm809_vm7, %v1003_v52, %v1000_v22  ;;  %v995_v8 = vsel %vm811_vm9, %v990_v41, %v994_v9  ;;  %v1024_v9 = vperm.slane %v3982_v50, %v3825_v23  ;;  %v1023_v52 = vperm.slane %v3989_v56, %v3834_v26  ;;  %v961_v41 = vld [vmem:[#allocation13 + $0x4] sm:$0xf] }
 0x366   : > { %v4391_v54 = vpop.permute.xlu1 %1476  ;;  %v996_v3 = vsel %vm813_vm10, %v993_v31, %v995_v8  ;;  %v1011_v38 = vsel %vm811_vm9, %v1006_v14, %v1010_v42  ;;  %v1026_v16 = vsel %vm809_vm7, %v1019_v51, %v1016_v28  ;;  %v959_v42 = vmul.f32 %v3941_v18, %v896_v24 }
 0x367   : > { %1770 = vrot.lane.b32.xlu2 %v4076_v59, %s3456_s20  ;;  %v1012_v55 = vsel %vm813_vm10, %v1009_v43, %v1011_v38  ;;  %v1030_v34 = vsel %vm484_vm0, %v4000_v62, %v996_v3  ;;  %v1025_v50 = vsel %vm939_vm5, %v1024_v9, %v1023_v52  ;;  %v1027_v62 = vsel %vm811_vm9, %v1022_v45, %v1026_v16  ;;  %v1036_v43 = vld [vmem:[#allocation13 + $0xc] sm:$0xf] }
 0x368   : > { %1433 = vrot.lane.b32.xlu0 %v4168_v40, %s3455_s19  ;;  %v1031_v56 = vsel %vm955_vm12, %v1030_v34, %v1012_v55  ;;  %v1028_v31 = vsel %vm813_vm10, %v1025_v50, %v1027_v62  ;;  %v1050_v18 = vsel %vm484_vm0, %v4142_v17, %v4182_v15 }
 0x369   : > { %v4408_v2 = vpop.permute.xlu2 %1645  ;;  %v1032_v22 = vsel %vm957_vm13, %v1031_v56, %v1028_v31 }
 0x36a   : > { %v967_v20 = vpop.permute.xlu0 %966  ;;  %v1033_v8 = vmul.f32 %v1032_v22, %v981_v11 }
 0x36b   : > { %v975_v26 = vsel %vm484_vm0, %v4127_v1, %v967_v20 }
 0x36c   : > { %2080 = vrot.lane.b32.xlu1 %v4112_v27, %s3455_s19  ;;  %v976_v61 = vsel %vm955_vm12, %v975_v26, %v4178_v0 }
 0x36e   : > { %v1530_v23 = vpop.permute.xlu1 %1529 }
 0x36f   : > { %1774 = vrot.lane.b32.xlu2 %v4071_v57, %s3455_s19  ;;  %v1547_v52 = vsel %vm484_vm0, %v4204_v33, %v1530_v23 }
 0x370   : > { %1435 = vrot.lane.b32.xlu0 %v4174_v49, %s3455_s19 }
 0x371   : > { %v4441_v21 = vpop.permute.xlu2 %1666 }
 0x372   : > { %v973_v1 = vpop.permute.xlu0 %972 }
 0x373   : > { %v977_v25 = vsel %vm957_vm13, %v976_v61, %v973_v1  ;;  %v1055_v61 = vld [vmem:[%s5140_s7] sm:$0x1] }
 0x374   : > { %v978_v14 = vmul.f32 %v977_v25, %v961_v41  ;;  %2188 = vrot.lane.b32.xlu1 %v4094_v5, %s3457_s9 }
 0x376   : > { %v979_v6 = vadd.f32 %v978_v14, %v959_v42  ;;  %v1532_v10 = vpop.permute.xlu1 %1531  ;;  %v3107_v42 = vld [vmem:[#allocation7] ss:$0 sm:$0xff] }
 0x377   : > { %1776 = vrot.lane.b32.xlu2 %v4076_v59, %s3455_s19  ;;  %v1548_v33 = vsel %vm484_vm0, %v4218_v13, %v1532_v10 }
 0x378   : > { %v1034_v0 = vadd.f32 %v1033_v8, %v979_v6  ;;  %1439 = vrot.lane.b32.xlu0 %v4168_v40, %s3457_s9 }
 0x379   : > { %v4455_v3 = vpop.permute.xlu2 %1668 }
 0x37a   : > { %v1045_v20 = vpop.permute.xlu0 %1044 }
 0x37b   : > { %v1051_v30 = vsel %vm955_vm12, %v1050_v18, %v1045_v20 }
 0x37c   : > { %v1052_v51 = vsel %vm957_vm13, %v1051_v30, %v4190_v19  ;;  %2280 = vrot.lane.b32.xlu1 %v4119_v35, %s3456_s20 }
 0x37d   : > { %v1053_v9 = vmul.f32 %v1052_v51, %v1036_v43  ;;  %v4519_v51 = vld [vmem:[%s3665_s26 + $0x30] sm:$0xff] }
 0x37e   : > { %v1536_v38 = vpop.permute.xlu1 %1535 }
 0x37f   : > { %v1054_v28 = vadd.f32 %v1053_v9, %v1034_v0  ;;  %v1549_v55 = vsel %vm955_vm12, %v1547_v52, %v1536_v38  ;;  %1782 = vrot.lane.b32.xlu2 %v4076_v59, %s3457_s9  ;;  %v4505_v0 = vld [vmem:[%s3665_s26 + $0x28] sm:$0xff] }
 0x380   : > { %1441 = vrot.lane.b32.xlu0 %v4174_v49, %s3457_s9  ;;  %v3112_v52 = vld [vmem:[#allocation8] ss:$0 sm:$0xff] }
 0x381   : > { %v1057_v17 = vsel %vm1056_vm14, %v1054_v28, 0.0  ;;  %v4472_v15 = vpop.permute.xlu2 %1674 }
 0x382   : > { %v1058_v19 = vrot.slane %v1057_v17, 4  ;;  %v1261_v34 = vpop.permute.xlu0 %1260 }
 0x383   : > { %v1278_v24 = vsel %vm484_vm0, %v4052_v47, %v1261_v34  ;;  %v1279_v34 = vsel %vm484_vm0, %v4055_v48, %v4198_v44 }
 0x384   : > { %v1059_v16 = vadd.f32 %v1058_v19, %v1057_v17  ;;  %2392 = vrot.lane.b32.xlu1 %v4134_v7, %s3457_s9  ;;  %v4535_v19 = vld [vmem:[%s3665_s26 + $0x38] sm:$0xff] }
 0x385   : > { %v5291_v7 = vld [vmem:[#allocation37_spill] sm:$0xff] }
 0x386   : > { %v1060_v45 = vrot.slane %v1059_v16, 2  ;;  %v1538_v23 = vpop.permute.xlu1 %1537 }
 0x387   : > { %v1550_v50 = vsel %vm955_vm12, %v1548_v33, %v1538_v23  ;;  %1835 = vrot.lane.b32.xlu2 %v4222_v12, %s3456_s20  ;;  %v1281_v33 = vsel %vm955_vm12, %v1279_v34, %v4206_v36 }
 0x388   : > { %v1061_v26 = vadd.f32 %v1060_v45, %v1059_v16  ;;  %1464 = vrot.lane.b32.xlu0 %v4073_v58, %s3456_s20  ;;  %v5267_v45 = vld [vmem:[#allocation31_spill] sm:$0xff] }
 0x389   : > { %v4483_v56 = vpop.permute.xlu2 %1680 }
 0x38a   : > { %v1062_v62 = vrot.slane %v1061_v26, 1  ;;  %v1267_v41 = vpop.permute.xlu0 %1266 }
 0x38b   : > { %v1280_v13 = vsel %vm955_vm12, %v1278_v24, %v1267_v41 }
 0x38c   : > { %v1063_v31 = vadd.f32 %v1062_v62, %v1061_v26  ;;  %2484 = vrot.lane.b32.xlu1 %v4050_v46, %s3456_s20  ;;  %v5269_v26 = vld [vmem:[#allocation43_spill] sm:$0xff] }
 0x38d   : > { %v5270_v62 = vld [vmem:[#allocation47_spill] sm:$0xff] }
 0x38e   : > { %v1542_v1 = vpop.permute.xlu1 %1541  ;;  %v1064_v11 = vadd.f32 %v1063_v31, %v1055_v61 }
 0x38f   : > { %v4494_v22 = vsel %vm957_vm13, %v1549_v55, %v1542_v1  ;;  %1837 = vrot.lane.b32.xlu2 %v4234_v32, %s3456_s20  ;;  %v5271_v1 = vld [vmem:[#allocation53_spill] sm:$0xff] }
 0x390   : > { %1468 = vrot.lane.b32.xlu0 %v4064_v4, %s3455_s19  ;;  %v1066_v47 = vperm.slane %v1064_v11, 0 }
 0x391   : > { %v4500_v25 = vpop.permute.xlu2 %1733 }
 0x392   : > { %v1273_v14 = vpop.permute.xlu0 %1272  ;;  %v1092_v6 = vadd.f32 %v4067_v53, %v1066_v47  ;;  %v1095_v23 = vadd.f32 %v5267_v45, %v1066_v47 }
 0x393   : > { %v1282_v8 = vsel %vm957_vm13, %v1280_v13, %v1273_v14 }
 0x394   : > { %v1288_v10 = vmul.f32 %v3107_v42, %v1282_v8  ;;  %2681 = vrot.lane.b32.xlu1 %v4505_v0, %s3455_s19  ;;  %v5273_v8 = vld [vmem:[#allocation30_spill] sm:$0xff] }
 0x396   : > { %v1290_v18 = vadd.f32 %v1288_v10, %v1092_v6  ;;  %v1544_v43 = vpop.permute.xlu1 %1543 }
 0x397   : > { %v4510_v20 = vsel %vm957_vm13, %v1550_v50, %v1544_v43  ;;  %1841 = vrot.lane.b32.xlu2 %v4222_v12, %s3455_s19  ;;  %v5268_v50 = vld [vmem:[#allocation46_spill] sm:$0xff]  ;;  %v5274_v43 = vld [vmem:[#allocation35_spill] sm:$0xff] }
 0x398   : > { %1474 = vrot.lane.b32.xlu0 %v4064_v4, %s3457_s9  ;;  %v1345_v48 = vsel %vm484_vm0, %v5269_v26, %v5268_v50  ;;  %v5277_v50 = vld [vmem:[#allocation26_spill] sm:$0xff] }
 0x399   : > { %v4516_v30 = vpop.permute.xlu2 %1735  ;;  %v521_v26 = vsel %vm484_vm0, %v5277_v50, 0.0 }
 0x39a   : > { %v1327_v53 = vpop.permute.xlu0 %1326 }
 0x39b   : > { %v1344_v38 = vsel %vm484_vm0, %v4156_v39, %v1327_v53  ;;  %v1283_v39 = vsel %vm957_vm13, %v1281_v33, %v4214_v37  ;;  %v1347_v37 = vsel %vm955_vm12, %v1345_v48, %v5270_v62  ;;  %v5275_v53 = vld [vmem:[#allocation60_spill] sm:$0xff]  ;;  %v5278_v48 = vld [vmem:[#allocation25_spill] sm:$0xff] }
 0x39c   : > { %2734 = vrot.lane.b32.xlu1 %v4519_v51, %s3456_s20  ;;  %v1289_v36 = vmul.f32 %v3107_v42, %v1283_v39  ;;  %v5272_v42 = vld [vmem:[#allocation32_spill] sm:$0xff]  ;;  %v5276_v39 = vld [vmem:[#allocation66_spill] sm:$0xff] }
 0x39e   : > { %v1291_v13 = vadd.f32 %v1289_v36, %v1095_v23  ;;  %v520_v36 = vsel %vm484_vm0, %v5278_v48, 0.0  ;;  %v5284_v48 = vld [vmem:[#allocation51_spill] sm:$0xff] }
 0x39f   : > { %1843 = vrot.lane.b32.xlu2 %v4234_v32, %s3455_s19  ;;  %v522_v62 = vadd.f32 %v521_v26, %v520_v36  ;;  %v1567_v26 = vpop.permute.xlu1 %1566 }
 0x3a0   : > { %1564 = vrot.lane.b32.xlu0 %v4078_v60, %s3456_s20 }
 0x3a1   : > { %v4527_v9 = vpop.permute.xlu2 %1739 }
 0x3a2   : > { %v1333_v28 = vpop.permute.xlu0 %1332 }
 0x3a3   : > { %v1346_v55 = vsel %vm955_vm12, %v1344_v38, %v1333_v28  ;;  %v3108_v38 = vld [vmem:[#allocation7 + $0x1] ss:$0 sm:$0xff] }
 0x3a4   : > { %v1348_v17 = vsel %vm957_vm13, %v1346_v55, %v4330_v29  ;;  %2742 = vrot.lane.b32.xlu1 %v4535_v19, %s3455_s19 }
 0x3a5   : > { %v1354_v16 = vmul.f32 %v3112_v52, %v1348_v17 }
 0x3a7   : > { %1847 = vrot.lane.b32.xlu2 %v4222_v12, %s3457_s9  ;;  %v4548_v29 = vadd.f32 %v1354_v16, %v1290_v18 }
 0x3a8   : > { %1678 = vrot.lane.b32.xlu0 %v4088_v63, %s3457_s9 }
 0x3a9   : > { %v4556_v44 = vpop.permute.xlu2 %1741 }
 0x3aa   : > { %v1341_v24 = vpop.permute.xlu0 %1340 }
 0x3ab   : > { %v1349_v41 = vsel %vm957_vm13, %v1347_v37, %v1341_v24  ;;  %v5279_v37 = vld [vmem:[#allocation56_spill] sm:$0xff] }
 0x3ac   : > { %v1355_v61 = vmul.f32 %v3112_v52, %v1349_v41  ;;  %v5280_v24 = vld [vmem:[#allocation40_spill] sm:$0xff] }
 0x3ae   : > { %v1357_v31 = vadd.f32 %v1355_v61, %v1291_v13 }
 0x3af   : > { %1849 = vrot.lane.b32.xlu2 %v4234_v32, %s3457_s9 }
 0x3b0   : > { %1747 = vrot.lane.b32.xlu0 %v5271_v1, %s3457_s9 }
 0x3b1   : > { %v4565_v11 = vpop.permute.xlu2 %1745 }
 0x3b2   : > { %v1363_v47 = vpop.permute.xlu0 %1362 }
 0x3b3   : > { %v1379_v6 = vsel %vm484_vm0, %v5273_v8, %v1363_v47 }
 0x3b7   : > { %1870 = vrot.lane.b32.xlu2 %v5272_v42, %s3456_s20 }
 0x3b8   : > { %1882 = vrot.lane.b32.xlu0 %v5272_v42, %s3457_s9 }
 0x3b9   : > { %v4571_v14 = vpop.permute.xlu2 %1768 }
 0x3ba   : > { %v1369_v10 = vpop.permute.xlu0 %1368 }
 0x3bb   : > { %v1381_v18 = vsel %vm955_vm12, %v1379_v6, %v1369_v10  ;;  %v5281_v6 = vld [vmem:[#allocation71_spill] sm:$0xff] }
 0x3bf   : > { %1872 = vrot.lane.b32.xlu2 %v5274_v43, %s3456_s20 }
 0x3c0   : > { %1951 = vrot.lane.b32.xlu0 %v5275_v53, %s3457_s9 }
 0x3c1   : > { %v4580_v52 = vpop.permute.xlu2 %1770 }
 0x3c2   : > { %v1375_v28 = vpop.permute.xlu0 %1374 }
 0x3c3   : > { %v1383_v55 = vsel %vm957_vm13, %v1381_v18, %v1375_v28 }
 0x3c4   : > { %v1390_v17 = vmul.f32 %v3108_v38, %v1383_v55 }
 0x3c6   : > { %v1392_v34 = vadd.f32 %v1390_v17, %v1357_v31  ;;  %v523_v31 = vrot.slane %v522_v62, 4  ;;  %v5282_v17 = vld [vmem:[#allocation48_spill] sm:$0xff] }
 0x3c7   : > { %1878 = vrot.lane.b32.xlu2 %v5274_v43, %s3455_s19 }
 0x3c8   : > { %2086 = vrot.lane.b32.xlu0 %v4112_v27, %s3457_s9  ;;  %v524_v8 = vadd.f32 %v523_v31, %v522_v62 }
 0x3c9   : > { %v4587_v16 = vpop.permute.xlu2 %1774 }
 0x3ca   : > { %v1428_v33 = vpop.permute.xlu0 %1427  ;;  %v525_v55 = vrot.slane %v524_v8, 2 }
 0x3cb   : > { %v1445_v13 = vsel %vm484_vm0, %v4168_v40, %v1428_v33  ;;  %v5283_v33 = vld [vmem:[#allocation29_spill] sm:$0xff] }
 0x3cc   : > { %v1378_v50 = vsel %vm484_vm0, %v5283_v33, %v5282_v17  ;;  %v526_v62 = vadd.f32 %v525_v55, %v524_v8 }
 0x3cd   : > { %v1380_v36 = vsel %vm955_vm12, %v1378_v50, %v5284_v48 }
 0x3ce   : > { %v527_v17 = vrot.slane %v526_v62, 1 }
 0x3cf   : > { %1884 = vrot.lane.b32.xlu2 %v5274_v43, %s3457_s9 }
 0x3d0   : > { %2155 = vrot.lane.b32.xlu0 %v5276_v39, %s3457_s9  ;;  %v4632_v48 = vadd.f32 %v527_v17, %v526_v62  ;;  %v5288_v17 = vld [vmem:[#allocation33_spill] sm:$0xff] }
 0x3d1   : > { %v4593_v45 = vpop.permute.xlu2 %1776 }
 0x3d2   : > { %v1430_v23 = vpop.permute.xlu0 %1429  ;;  %5287 = vst [vmem:[#allocation31_spill] sm:$0xff] %v4632_v48 }
 0x3d3   : > { %v1446_v18 = vsel %vm484_vm0, %v4174_v49, %v1430_v23  ;;  %v5286_v49 = vld [vmem:[#allocation27_spill] sm:$0xff] }
 0x3d4   : > { %v3116_v23 = vld [vmem:[#allocation8 + $0x1] ss:$0 sm:$0xff] }
 0x3d7   : > { %1937 = vrot.lane.b32.xlu2 %v5279_v37, %s3456_s20 }
 0x3d8   : > { %2290 = vrot.lane.b32.xlu0 %v5280_v24, %s3457_s9 }
 0x3d9   : > { %v4603_v41 = vpop.permute.xlu2 %1782 }
 0x3da   : > { %v1434_v61 = vpop.permute.xlu0 %1433 }
 0x3db   : > { %v1447_v47 = vsel %vm955_vm12, %v1445_v13, %v1434_v61  ;;  %v5285_v13 = vld [vmem:[#allocation54_spill] sm:$0xff] }
 0x3dc   : > { %v1382_v61 = vsel %vm957_vm13, %v1380_v36, %v5285_v13  ;;  %v1571_v36 = vpop.permute.xlu1 %1570 }
 0x3df   : > { %1939 = vrot.lane.b32.xlu2 %v5275_v53, %s3456_s20 }
 0x3e0   : > { %2359 = vrot.lane.b32.xlu0 %v5281_v6, %s3457_s9 }
 0x3e1   : > { %v4612_v10 = vpop.permute.xlu2 %1835 }
 0x3e2   : > { %v1436_v28 = vpop.permute.xlu0 %1435 }
 0x3e3   : > { %v1448_v40 = vsel %vm955_vm12, %v1446_v18, %v1436_v28  ;;  %v1389_v18 = vmul.f32 %v3108_v38, %v1382_v61 }
 0x3e5   : > { %v1391_v50 = vadd.f32 %v1389_v18, %v4548_v29  ;;  %v1573_v29 = vpop.permute.xlu1 %1572 }
 0x3e7   : > { %1943 = vrot.lane.b32.xlu2 %v5279_v37, %s3455_s19 }
 0x3e8   : > { %2494 = vrot.lane.b32.xlu0 %v5286_v49, %s3457_s9 }
 0x3e9   : > { %v4628_v31 = vpop.permute.xlu2 %1837 }
 0x3ea   : > { %v1440_v28 = vpop.permute.xlu0 %1439 }
 0x3eb   : > { %v1449_v33 = vsel %vm957_vm13, %v1447_v47, %v1440_v28  ;;  %v3118_v28 = vld [vmem:[#allocation7 + $0x2] ss:$0 sm:$0xff] }
 0x3ec   : > { %v1456_v8 = vmul.f32 %v3116_v23, %v1449_v33  ;;  %v1583_v33 = vsel %vm484_vm0, %v5288_v17, %v1567_v26 }
 0x3ee   : > { %v1458_v55 = vadd.f32 %v1456_v8, %v1391_v50  ;;  %v3111_v8 = vld [vmem:[#allocation8 + $0x2] ss:$0 sm:$0xff] }
 0x3ef   : > { %1945 = vrot.lane.b32.xlu2 %v5275_v53, %s3455_s19  ;;  %v1559_v26 = vmul.f32 %v3111_v8, %v4510_v20 }
 0x3f0   : > { %2507 = vrot.lane.b32.xlu0 %v4632_v48, %s3456_s20 }
 0x3f1   : > { %v4638_v13 = vpop.permute.xlu2 %1841 }
 0x3f2   : > { %v1442_v38 = vpop.permute.xlu0 %1441 }
 0x3f3   : > { %v1450_v61 = vsel %vm957_vm13, %v1448_v40, %v1442_v38  ;;  %v3113_v38 = vld [vmem:[#allocation7 + $0x3] ss:$0 sm:$0xff] }
 0x3f4   : > { %v1457_v46 = vmul.f32 %v3116_v23, %v1450_v61 }
 0x3f6   : > { %v1459_v47 = vadd.f32 %v1457_v46, %v1392_v34  ;;  %v1585_v46 = vsel %vm955_vm12, %v1583_v33, %v1573_v29  ;;  %v5289_v34 = vld [vmem:[#allocation70_spill] sm:$0xff] }
 0x3f7   : > { %1949 = vrot.lane.b32.xlu2 %v5279_v37, %s3457_s9 }
 0x3f8   : > { %2513 = vrot.lane.b32.xlu0 %v4632_v48, %s3457_s9  ;;  %v5290_v48 = vld [vmem:[#allocation59_spill] sm:$0xff] }
 0x3f9   : > { %v4645_v62 = vpop.permute.xlu2 %1843  ;;  %v1587_v49 = vsel %vm957_vm13, %v1585_v46, %v5290_v48  ;;  %v5293_v48 = vld [vmem:[#allocation57_spill] sm:$0xff] }
 0x3fa   : > { %v1465_v18 = vpop.permute.xlu0 %1464  ;;  %v1480_v20 = vsel %vm484_vm0, %v4064_v4, %v5293_v48 }
 0x3fb   : > { %v1481_v40 = vsel %vm484_vm0, %v4073_v58, %v1465_v18  ;;  %v4662_v18 = vld [vmem:[%s3665_s26 + $0x8] sm:$0xff] }
 0x3fc   : > { %v1483_v23 = vsel %vm955_vm12, %v1481_v40, %v5289_v34  ;;  %v5292_v34 = vld [vmem:[#allocation39_spill] sm:$0xff] }
 0x3fd   : > { %v1485_v50 = vsel %vm957_vm13, %v1483_v23, %v4391_v54  ;;  %v1594_v54 = vmul.f32 %v3113_v38, %v1587_v49 }
 0x3fe   : > { %v1492_v61 = vmul.f32 %v3118_v28, %v1485_v50  ;;  %v1577_v50 = vpop.permute.xlu1 %1576 }
 0x3ff   : > { %1972 = vrot.lane.b32.xlu2 %v5291_v7, %s3456_s20 }
 0x400   : > { %v1494_v58 = vadd.f32 %v1492_v61, %v1459_v47  ;;  %2553 = vrot.lane.b32.xlu0 %v4662_v18, %s3456_s20 }
 0x401   : > { %v4666_v29 = vpop.permute.xlu2 %1847 }
 0x402   : > { %v1469_v17 = vpop.permute.xlu0 %1468  ;;  %v1561_v33 = vadd.f32 %v1559_v26, %v1494_v58  ;;  %v1558_v26 = vmul.f32 %v3111_v8, %v4494_v22 }
 0x403   : > { %v1482_v46 = vsel %vm955_vm12, %v1480_v20, %v1469_v17  ;;  %v5294_v20 = vld [vmem:[#allocation61_spill] sm:$0xff] }
 0x404   : > { %v1596_v40 = vadd.f32 %v1594_v54, %v1561_v33 }
 0x407   : > { %1974 = vrot.lane.b32.xlu2 %v5292_v34, %s3456_s20 }
 0x408   : > { %2559 = vrot.lane.b32.xlu0 %v4662_v18, %s3455_s19 }
 0x409   : > { %v4675_v47 = vpop.permute.xlu2 %1849 }
 0x40a   : > { %v1475_v23 = vpop.permute.xlu0 %1474 }
 0x40b   : > { %v1484_v49 = vsel %vm957_vm13, %v1482_v46, %v1475_v23  ;;  %v5296_v46 = vld [vmem:[#allocation67_spill] sm:$0xff] }
 0x40c   : > { %v1491_v61 = vmul.f32 %v3118_v28, %v1484_v49  ;;  %v5295_v28 = vld [vmem:[#allocation44_spill] sm:$0xff]  ;;  %v3109_v49 = vld [vmem:[#allocation8 + $0x3] ss:$0 sm:$0xff] }
 0x40d   : > { %v1649_v22 = vsel %vm484_vm0, %v5295_v28, %v5294_v20  ;;  %v5300_v20 = vld [vmem:[#allocation69_spill] sm:$0xff] }
 0x40e   : > { %v1493_v58 = vadd.f32 %v1491_v61, %v1458_v55  ;;  %v1673_v55 = vpop.permute.xlu1 %1672  ;;  %v1651_v23 = vsel %vm955_vm12, %v1649_v22, %v5296_v46 }
 0x40f   : > { %1978 = vrot.lane.b32.xlu2 %v5291_v7, %s3455_s19 }
 0x410   : > { %v1560_v54 = vadd.f32 %v1558_v26, %v1493_v58  ;;  %2565 = vrot.lane.b32.xlu0 %v4662_v18, %s3457_s9  ;;  %v5297_v26 = vld [vmem:[#allocation72_spill] sm:$0xff] }
 0x411   : > { %v1871_v4 = vpop.permute.xlu2 %1870  ;;  %v1653_v58 = vsel %vm957_vm13, %v1651_v23, %v5297_v26 }
 0x412   : > { %v1565_v33 = vpop.permute.xlu0 %1564  ;;  %v1660_v22 = vmul.f32 %v3109_v49, %v1653_v58 }
 0x413   : > { %v1582_v17 = vsel %vm484_vm0, %v4078_v60, %v1565_v33  ;;  %v5298_v33 = vld [vmem:[#allocation64_spill] sm:$0xff] }
 0x414   : > { %v1584_v48 = vsel %vm955_vm12, %v1582_v17, %v1571_v36  ;;  %v4698_v36 = vld [vmem:[%s3665_s26 + $0x18] sm:$0xff] }
 0x415   : > { %v1586_v8 = vsel %vm957_vm13, %v1584_v48, %v1577_v50  ;;  %v5299_v17 = vld [vmem:[#allocation45_spill] sm:$0xff] }
 0x416   : > { %v1593_v61 = vmul.f32 %v3113_v38, %v1586_v8  ;;  %v1650_v50 = vsel %vm484_vm0, %v5299_v17, %v5298_v33  ;;  %v1684_v38 = vsel %vm484_vm0, %v4088_v63, %v4441_v21  ;;  %v5301_v17 = vld [vmem:[#allocation36_spill] sm:$0xff]  ;;  %v5302_v21 = vld [vmem:[#allocation50_spill] sm:$0xff] }
 0x417   : > { %1980 = vrot.lane.b32.xlu2 %v5292_v34, %s3455_s19  ;;  %v1652_v28 = vsel %vm955_vm12, %v1650_v50, %v5300_v20  ;;  %v1686_v8 = vsel %vm955_vm12, %v1684_v38, %v1673_v55  ;;  %v1685_v63 = vsel %vm484_vm0, %v5301_v17, %v4455_v3  ;;  %v1751_v50 = vsel %vm484_vm0, %v5302_v21, %v4500_v25  ;;  %v1781_v25 = vpop.permute.xlu1 %1780  ;;  %v3119_v21 = vld [vmem:[#allocation7 + $0x6] ss:$0 sm:$0xff] }
 0x418   : > { %v1595_v60 = vadd.f32 %v1593_v61, %v1560_v54  ;;  %2614 = vrot.lane.b32.xlu0 %v4698_v36, %s3456_s20  ;;  %v3110_v54 = vld [vmem:[#allocation7 + $0x4] ss:$0 sm:$0xff]  ;;  %v1654_v23 = vsel %vm957_vm13, %v1652_v28, %v4408_v2  ;;  %v1687_v55 = vsel %vm955_vm12, %v1685_v63, %v4472_v15  ;;  %v1753_v38 = vsel %vm955_vm12, %v1751_v50, %v4527_v9  ;;  %v3114_v2 = vld [vmem:[#allocation8 + $0x4] ss:$0 sm:$0xff]  ;;  %v5303_v63 = vld [vmem:[#allocation49_spill] sm:$0xff] }
 0x419   : > { %v4708_v48 = vpop.permute.xlu2 %1872  ;;  %v1661_v58 = vmul.f32 %v3109_v49, %v1654_v23  ;;  %v1755_v28 = vsel %vm957_vm13, %v1753_v38, %v4565_v11  ;;  %v1786_v3 = vsel %vm484_vm0, %v4071_v57, %v4571_v14  ;;  %v1888_v17 = vsel %vm484_vm0, %v5272_v42, %v1871_v4  ;;  %v5304_v4 = vld [vmem:[#allocation52_spill] sm:$0xff] }
 0x41a   : > { %v1679_v46 = vpop.permute.xlu0 %1678  ;;  %v1662_v26 = vadd.f32 %v1660_v22, %v1595_v60  ;;  %v1689_v60 = vsel %vm957_vm13, %v1687_v55, %v4483_v56  ;;  %v1788_v15 = vsel %vm955_vm12, %v1786_v3, %v4587_v16  ;;  %v1752_v56 = vsel %vm484_vm0, %v5271_v1, %v4516_v30  ;;  %v3115_v22 = vld [vmem:[#allocation7 + $0x5] ss:$0 sm:$0xff] }
 0x41b   : > { %v1688_v61 = vsel %vm957_vm13, %v1686_v8, %v1679_v46  ;;  %v1663_v9 = vadd.f32 %v1661_v58, %v1596_v40  ;;  %v1696_v49 = vmul.f32 %v3110_v54, %v1689_v60  ;;  %v1754_v57 = vsel %vm955_vm12, %v1752_v56, %v4556_v44  ;;  %v4772_v60 = vld [vmem:[%s3665_s26 + $0x20] sm:$0xff] }
 0x41c   : > { %v1695_v33 = vmul.f32 %v3110_v54, %v1688_v61  ;;  %v1762_v14 = vmul.f32 %v3114_v2, %v1755_v28  ;;  %v1790_v46 = vsel %vm957_vm13, %v1788_v15, %v1781_v25  ;;  %v3117_v54 = vld [vmem:[#allocation8 + $0x5] ss:$0 sm:$0xff]  ;;  %v1787_v3 = vsel %vm484_vm0, %v4076_v59, %v4580_v52 }
 0x41d   : > { %v1698_v23 = vadd.f32 %v1696_v49, %v1663_v9  ;;  %v1797_v30 = vmul.f32 %v3115_v22, %v1790_v46  ;;  %v1789_v25 = vsel %vm955_vm12, %v1787_v3, %v4593_v45  ;;  %v1854_v9 = vsel %vm484_vm0, %v4234_v32, %v4628_v31 }
 0x41e   : > { %v1697_v20 = vadd.f32 %v1695_v33, %v1662_v26  ;;  %v1853_v26 = vsel %vm484_vm0, %v4222_v12, %v4612_v10  ;;  %v1791_v15 = vsel %vm957_vm13, %v1789_v25, %v4603_v41  ;;  %v1856_v59 = vsel %vm955_vm12, %v1854_v9, %v4645_v62 }
 0x41f   : > { %1986 = vrot.lane.b32.xlu2 %v5292_v34, %s3457_s9  ;;  %v1855_v1 = vsel %vm955_vm12, %v1853_v26, %v4638_v13  ;;  %v1877_v12 = vpop.permute.xlu1 %1876  ;;  %v1798_v49 = vmul.f32 %v3115_v22, %v1791_v15  ;;  %v1858_v52 = vsel %vm957_vm13, %v1856_v59, %v4675_v47  ;;  %v1889_v45 = vsel %vm484_vm0, %v5274_v43, %v4708_v48  ;;  %v4803_v22 = vld [vmem:[#allocation8 + $0x6] ss:$0 sm:$0xff] }
 0x420   : > { %2620 = vrot.lane.b32.xlu0 %v4698_v36, %s3455_s19  ;;  %v1764_v40 = vadd.f32 %v1762_v14, %v1697_v20  ;;  %v1857_v33 = vsel %vm957_vm13, %v1855_v1, %v4666_v29  ;;  %v1890_v55 = vsel %vm955_vm12, %v1888_v17, %v1877_v12  ;;  %v1865_v14 = vmul.f32 %v3117_v54, %v1858_v52  ;;  %v5306_v1 = vld [vmem:[#allocation63_spill] sm:$0xff]  ;;  %v5307_v12 = vld [vmem:[#allocation38_spill] sm:$0xff] }
 0x421   : > { %v1879_v11 = vpop.permute.xlu2 %1878  ;;  %v1864_v13 = vmul.f32 %v3117_v54, %v1857_v33 }
 0x422   : > { %v1748_v8 = vpop.permute.xlu0 %1747  ;;  %v1799_v50 = vadd.f32 %v1797_v30, %v1764_v40  ;;  %v1891_v41 = vsel %vm955_vm12, %v1889_v45, %v1879_v11 }
 0x423   : > { %v1756_v16 = vsel %vm957_vm13, %v1754_v57, %v1748_v8 }
 0x424   : > { %v1763_v61 = vmul.f32 %v3114_v2, %v1756_v16  ;;  %v1866_v38 = vadd.f32 %v1864_v13, %v1799_v50 }
 0x426   : > { %v1765_v44 = vadd.f32 %v1763_v61, %v1698_v23 }
 0x427   : > { %2039 = vrot.lane.b32.xlu2 %v5303_v63, %s3456_s20  ;;  %v1985_v25 = vpop.permute.xlu1 %1984 }
 0x428   : > { %2626 = vrot.lane.b32.xlu0 %v4698_v36, %s3457_s9 }
 0x429   : > { %v1885_v10 = vpop.permute.xlu2 %1884 }
 0x42a   : > { %v1883_v58 = vpop.permute.xlu0 %1882  ;;  %v1893_v57 = vsel %vm957_vm13, %v1891_v41, %v1885_v10  ;;  %v3121_v41 = vld [vmem:[#allocation7 + $0x7] ss:$0 sm:$0xff] }
 0x42b   : > { %v1892_v29 = vsel %vm957_vm13, %v1890_v55, %v1883_v58  ;;  %v1900_v31 = vmul.f32 %v3119_v21, %v1893_v57 }
 0x42c   : > { %v1899_v2 = vmul.f32 %v3119_v21, %v1892_v29  ;;  %v5308_v29 = vld [vmem:[#allocation55_spill] sm:$0xff] }
 0x42e   : > { %v4761_v42 = vadd.f32 %v1899_v2, %v1866_v38  ;;  %v5309_v2 = vld [vmem:[#allocation58_spill] sm:$0xff] }
 0x42f   : > { %2041 = vrot.lane.b32.xlu2 %v5304_v4, %s3456_s20 }
 0x430   : > { %2675 = vrot.lane.b32.xlu0 %v4505_v0, %s3456_s20 }
 0x431   : > { %v4767_v20 = vpop.permute.xlu2 %1937 }
 0x432   : > { %v1952_v47 = vpop.permute.xlu0 %1951 }
 0x437   : > { %2045 = vrot.lane.b32.xlu2 %v5303_v63, %s3455_s19 }
 0x438   : > { %2685 = vrot.lane.b32.xlu0 %v4772_v60, %s3457_s9 }
 0x439   : > { %v1940_v28 = vpop.permute.xlu2 %1939 }
 0x43a   : > { %v1956_v62 = vsel %vm484_vm0, %v5275_v53, %v1940_v28  ;;  %v5305_v53 = vld [vmem:[#allocation34_spill] sm:$0xff]  ;;  %v2087_v9 = vpop.permute.xlu0 %2086 }
 0x43f   : > { %2047 = vrot.lane.b32.xlu2 %v5304_v4, %s3455_s19 }
 0x440   : > { %2736 = vrot.lane.b32.xlu0 %v4535_v19, %s3456_s20  ;;  %v1800_v19 = vadd.f32 %v1798_v49, %v1765_v44 }
 0x441   : > { %v4790_v56 = vpop.permute.xlu2 %1943 }
 0x442   : > { %v1867_v32 = vadd.f32 %v1865_v14, %v1800_v19  ;;  %v1955_v14 = vsel %vm484_vm0, %v5279_v37, %v4767_v20  ;;  %v3123_v20 = vld [vmem:[#allocation7 + $0x8] ss:$0 sm:$0xff] }
 0x444   : > { %v1902_v8 = vadd.f32 %v1900_v31, %v1867_v32 }
 0x447   : > { %2051 = vrot.lane.b32.xlu2 %v5303_v63, %s3457_s9 }
 0x448   : > { %2746 = vrot.lane.b32.xlu0 %v4519_v51, %s3457_s9 }
 0x449   : > { %v1946_v43 = vpop.permute.xlu2 %1945 }
 0x44a   : > { %v1958_v48 = vsel %vm955_vm12, %v1956_v62, %v1946_v43  ;;  %v3122_v62 = vld [vmem:[#allocation8 + $0x7] ss:$0 sm:$0xff]  ;;  %v1957_v43 = vsel %vm955_vm12, %v1955_v14, %v4790_v56 }
 0x44b   : > { %v1960_v11 = vsel %vm957_vm13, %v1958_v48, %v1952_v47 }
 0x44c   : > { %v1967_v46 = vmul.f32 %v4803_v22, %v1960_v11 }
 0x44e   : > { %v4812_v16 = vadd.f32 %v1967_v46, %v1902_v8 }
 0x44f   : > { %2053 = vrot.lane.b32.xlu2 %v5304_v4, %s3457_s9 }
 0x451   : > { %v1950_v40 = vpop.permute.xlu2 %1949 }
 0x452   : > { %v1959_v11 = vsel %vm957_vm13, %v1957_v43, %v1950_v40 }
 0x453   : > { %v1966_v40 = vmul.f32 %v4803_v22, %v1959_v11 }
 0x457   : > { %2074 = vrot.lane.b32.xlu2 %v4112_v27, %s3456_s20 }
 0x459   : > { %v1973_v23 = vpop.permute.xlu2 %1972 }
 0x45a   : > { %v1990_v32 = vsel %vm484_vm0, %v5291_v7, %v1973_v23  ;;  %v2081_v7 = vpop.permute.xlu1 %2080 }
 0x45f   : > { %2076 = vrot.lane.b32.xlu2 %v5305_v53, %s3456_s20 }
 0x461   : > { %v1975_v61 = vpop.permute.xlu2 %1974 }
 0x462   : > { %v1991_v15 = vsel %vm484_vm0, %v5292_v34, %v1975_v61  ;;  %v3124_v61 = vld [vmem:[#allocation8 + $0x8] ss:$0 sm:$0xff] }
 0x467   : > { %2082 = vrot.lane.b32.xlu2 %v5305_v53, %s3455_s19 }
 0x469   : > { %v1979_v26 = vpop.permute.xlu2 %1978 }
 0x46a   : > { %v1992_v47 = vsel %vm955_vm12, %v1990_v32, %v1979_v26 }
 0x46b   : > { %v1994_v46 = vsel %vm957_vm13, %v1992_v47, %v1985_v25  ;;  %v5310_v47 = vld [vmem:[#allocation68_spill] sm:$0xff] }
 0x46f   : > { %2088 = vrot.lane.b32.xlu2 %v5305_v53, %s3457_s9 }
 0x471   : > { %v1981_v30 = vpop.permute.xlu2 %1980 }
 0x472   : > { %v1993_v49 = vsel %vm955_vm12, %v1991_v15, %v1981_v30 }
 0x477   : > { %2141 = vrot.lane.b32.xlu2 %v5306_v1, %s3456_s20 }
 0x479   : > { %v1987_v54 = vpop.permute.xlu2 %1986 }
 0x47a   : > { %v1995_v59 = vsel %vm957_vm13, %v1993_v49, %v1987_v54 }
 0x47b   : > { %v2002_v31 = vmul.f32 %v3121_v41, %v1995_v59 }
 0x47d   : > { %v2004_v23 = vadd.f32 %v2002_v31, %v4812_v16 }
 0x47f   : > { %2143 = vrot.lane.b32.xlu2 %v5276_v39, %s3456_s20 }
 0x481   : > { %v2040_v44 = vpop.permute.xlu2 %2039 }
 0x482   : > { %v2057_v56 = vsel %vm484_vm0, %v5303_v63, %v2040_v44 }
 0x487   : > { %2147 = vrot.lane.b32.xlu2 %v5306_v1, %s3455_s19 }
 0x489   : > { %v2042_v33 = vpop.permute.xlu2 %2041 }
 0x48a   : > { %v2058_v52 = vsel %vm484_vm0, %v5304_v4, %v2042_v33  ;;  %v2156_v33 = vpop.permute.xlu0 %2155 }
 0x48f   : > { %2149 = vrot.lane.b32.xlu2 %v5276_v39, %s3455_s19 }
 0x491   : > { %v2046_v17 = vpop.permute.xlu2 %2045 }
 0x492   : > { %v2059_v26 = vsel %vm955_vm12, %v2057_v56, %v2046_v17  ;;  %v1968_v17 = vadd.f32 %v1966_v40, %v4761_v42  ;;  %v3126_v40 = vld [vmem:[#allocation8 + $0x9] ss:$0 sm:$0xff] }
 0x497   : > { %2153 = vrot.lane.b32.xlu2 %v5306_v1, %s3457_s9 }
 0x499   : > { %v2048_v21 = vpop.permute.xlu2 %2047 }
 0x49a   : > { %v2060_v19 = vsel %vm955_vm12, %v2058_v52, %v2048_v21 }
 0x49f   : > { %2176 = vrot.lane.b32.xlu2 %v4094_v5, %s3456_s20 }
 0x4a1   : > { %v2052_v50 = vpop.permute.xlu2 %2051 }
 0x4a2   : > { %v2061_v21 = vsel %vm957_vm13, %v2059_v26, %v2052_v50 }
 0x4a7   : > { %2178 = vrot.lane.b32.xlu2 %v5307_v12, %s3456_s20 }
 0x4a9   : > { %v2054_v10 = vpop.permute.xlu2 %2053 }
 0x4aa   : > { %v2062_v57 = vsel %vm957_vm13, %v2060_v19, %v2054_v10 }
 0x4ab   : > { %v2069_v8 = vmul.f32 %v3122_v62, %v2062_v57  ;;  %v2189_v57 = vpop.permute.xlu1 %2188 }
 0x4ad   : > { %v2071_v10 = vadd.f32 %v2069_v8, %v2004_v23 }
 0x4af   : > { %2182 = vrot.lane.b32.xlu2 %v4094_v5, %s3455_s19 }
 0x4b1   : > { %v2075_v13 = vpop.permute.xlu2 %2074 }
 0x4b2   : > { %v2092_v37 = vsel %vm484_vm0, %v4112_v27, %v2075_v13  ;;  %v2001_v13 = vmul.f32 %v3121_v41, %v1994_v46 }
 0x4b3   : > { %v2094_v27 = vsel %vm955_vm12, %v2092_v37, %v2081_v7 }
 0x4b4   : > { %v2096_v44 = vsel %vm957_vm13, %v2094_v27, %v2087_v9  ;;  %v2003_v25 = vadd.f32 %v2001_v13, %v1968_v17  ;;  %v3127_v13 = vld [vmem:[#allocation7 + $0xa] ss:$0 sm:$0xff] }
 0x4b7   : > { %2184 = vrot.lane.b32.xlu2 %v5307_v12, %s3455_s19 }
 0x4b9   : > { %v2077_v58 = vpop.permute.xlu2 %2076 }
 0x4ba   : > { %v2093_v34 = vsel %vm484_vm0, %v5305_v53, %v2077_v58 }
 0x4bf   : > { %2190 = vrot.lane.b32.xlu2 %v5307_v12, %s3457_s9 }
 0x4c1   : > { %v2083_v55 = vpop.permute.xlu2 %2082 }
 0x4c2   : > { %v2095_v4 = vsel %vm955_vm12, %v2093_v34, %v2083_v55  ;;  %v2068_v55 = vmul.f32 %v3122_v62, %v2061_v21 }
 0x4c7   : > { %2243 = vrot.lane.b32.xlu2 %v5308_v29, %s3456_s20 }
 0x4c9   : > { %v2089_v38 = vpop.permute.xlu2 %2088 }
 0x4ca   : > { %v2097_v48 = vsel %vm957_vm13, %v2095_v4, %v2089_v38 }
 0x4cb   : > { %v2104_v53 = vmul.f32 %v3123_v20, %v2097_v48 }
 0x4cd   : > { %v2106_v22 = vadd.f32 %v2104_v53, %v2071_v10 }
 0x4cf   : > { %2245 = vrot.lane.b32.xlu2 %v5309_v2, %s3456_s20 }
 0x4d1   : > { %v2142_v28 = vpop.permute.xlu2 %2141 }
 0x4d2   : > { %v2159_v50 = vsel %vm484_vm0, %v5306_v1, %v2142_v28  ;;  %v3125_v1 = vld [vmem:[#allocation7 + $0x9] ss:$0 sm:$0xff] }
 0x4d7   : > { %2249 = vrot.lane.b32.xlu2 %v5308_v29, %s3455_s19 }
 0x4d9   : > { %v2144_v3 = vpop.permute.xlu2 %2143 }
 0x4da   : > { %v2160_v30 = vsel %vm484_vm0, %v5276_v39, %v2144_v3  ;;  %v2103_v39 = vmul.f32 %v3123_v20, %v2096_v44  ;;  %v2070_v3 = vadd.f32 %v2068_v55, %v2003_v25 }
 0x4dc   : > { %v2105_v59 = vadd.f32 %v2103_v39, %v2070_v3  ;;  %v2281_v39 = vpop.permute.xlu1 %2280 }
 0x4dd   : > { %v2297_v3 = vsel %vm484_vm0, %v4119_v35, %v2281_v39 }
 0x4df   : > { %2251 = vrot.lane.b32.xlu2 %v5309_v2, %s3455_s19 }
 0x4e1   : > { %v2148_v45 = vpop.permute.xlu2 %2147 }
 0x4e2   : > { %v2161_v15 = vsel %vm955_vm12, %v2159_v50, %v2148_v45  ;;  %v5313_v50 = vld [vmem:[#allocation62_spill] sm:$0xff] }
 0x4e7   : > { %2255 = vrot.lane.b32.xlu2 %v5308_v29, %s3457_s9 }
 0x4e9   : > { %v2150_v54 = vpop.permute.xlu2 %2149 }
 0x4ea   : > { %v2162_v16 = vsel %vm955_vm12, %v2160_v30, %v2150_v54  ;;  %v5312_v54 = vld [vmem:[#allocation42_spill] sm:$0xff] }
 0x4eb   : > { %v2164_v63 = vsel %vm957_vm13, %v2162_v16, %v2156_v33 }
 0x4ec   : > { %v2171_v58 = vmul.f32 %v3124_v61, %v2164_v63 }
 0x4ee   : > { %v2173_v38 = vadd.f32 %v2171_v58, %v2106_v22  ;;  %v2291_v22 = vpop.permute.xlu0 %2290 }
 0x4ef   : > { %2257 = vrot.lane.b32.xlu2 %v5309_v2, %s3457_s9 }
 0x4f1   : > { %v2154_v49 = vpop.permute.xlu2 %2153 }
 0x4f2   : > { %v2163_v9 = vsel %vm957_vm13, %v2161_v15, %v2154_v49 }
 0x4f3   : > { %v2170_v52 = vmul.f32 %v3124_v61, %v2163_v9  ;;  %v5311_v61 = vld [vmem:[#allocation41_spill] sm:$0xff] }
 0x4f5   : > { %v2172_v41 = vadd.f32 %v2170_v52, %v2105_v59  ;;  %v5314_v52 = vld [vmem:[#allocation65_spill] sm:$0xff] }
 0x4f7   : > { %2278 = vrot.lane.b32.xlu2 %v5280_v24, %s3456_s20 }
 0x4f9   : > { %v2177_v42 = vpop.permute.xlu2 %2176 }
 0x4fa   : > { %v2194_v28 = vsel %vm484_vm0, %v4094_v5, %v2177_v42 }
 0x4ff   : > { %2284 = vrot.lane.b32.xlu2 %v5280_v24, %s3455_s19 }
 0x501   : > { %v2179_v19 = vpop.permute.xlu2 %2178 }
 0x502   : > { %v2195_v62 = vsel %vm484_vm0, %v5307_v12, %v2179_v19 }
 0x507   : > { %2286 = vrot.lane.b32.xlu2 %v4119_v35, %s3455_s19 }
 0x509   : > { %v2183_v45 = vpop.permute.xlu2 %2182 }
 0x50a   : > { %v2196_v34 = vsel %vm955_vm12, %v2194_v28, %v2183_v45  ;;  %v3128_v28 = vld [vmem:[#allocation8 + $0xa] ss:$0 sm:$0xff] }
 0x50b   : > { %v2198_v14 = vsel %vm957_vm13, %v2196_v34, %v2189_v57  ;;  %v2360_v34 = vpop.permute.xlu0 %2359 }
 0x50c   : > { %v2205_v32 = vmul.f32 %v3125_v1, %v2198_v14 }
 0x50e   : > { %v2207_v31 = vadd.f32 %v2205_v32, %v2172_v41 }
 0x50f   : > { %2292 = vrot.lane.b32.xlu2 %v4119_v35, %s3457_s9 }
 0x511   : > { %v2185_v4 = vpop.permute.xlu2 %2184 }
 0x512   : > { %v2197_v43 = vsel %vm955_vm12, %v2195_v62, %v2185_v4 }
 0x517   : > { %2345 = vrot.lane.b32.xlu2 %v5310_v47, %s3456_s20 }
 0x519   : > { %v2191_v5 = vpop.permute.xlu2 %2190 }
 0x51a   : > { %v2199_v48 = vsel %vm957_vm13, %v2197_v43, %v2191_v5 }
 0x51b   : > { %v2206_v11 = vmul.f32 %v3125_v1, %v2199_v48  ;;  %v5315_v48 = vld [vmem:[#allocation27_spill] sm:$0xff] }
 0x51d   : > { %v2208_v8 = vadd.f32 %v2206_v11, %v2173_v38 }
 0x51f   : > { %2347 = vrot.lane.b32.xlu2 %v5281_v6, %s3456_s20 }
 0x521   : > { %v2244_v37 = vpop.permute.xlu2 %2243 }
 0x522   : > { %v2261_v12 = vsel %vm484_vm0, %v5308_v29, %v2244_v37  ;;  %v3129_v37 = vld [vmem:[#allocation7 + $0xb] ss:$0 sm:$0xff] }
 0x527   : > { %2351 = vrot.lane.b32.xlu2 %v5310_v47, %s3455_s19 }
 0x529   : > { %v2246_v20 = vpop.permute.xlu2 %2245 }
 0x52a   : > { %v2262_v23 = vsel %vm484_vm0, %v5309_v2, %v2246_v20 }
 0x52f   : > { %2353 = vrot.lane.b32.xlu2 %v5281_v6, %s3455_s19 }
 0x531   : > { %v2250_v7 = vpop.permute.xlu2 %2249 }
 0x532   : > { %v2263_v46 = vsel %vm955_vm12, %v2261_v12, %v2250_v7  ;;  %v2393_v7 = vpop.permute.xlu1 %2392 }
 0x537   : > { %2357 = vrot.lane.b32.xlu2 %v5310_v47, %s3457_s9 }
 0x539   : > { %v2252_v56 = vpop.permute.xlu2 %2251 }
 0x53a   : > { %v2264_v53 = vsel %vm955_vm12, %v2262_v23, %v2252_v56 }
 0x53f   : > { %2380 = vrot.lane.b32.xlu2 %v5311_v61, %s3456_s20 }
 0x541   : > { %v2256_v26 = vpop.permute.xlu2 %2255 }
 0x542   : > { %v2265_v27 = vsel %vm957_vm13, %v2263_v46, %v2256_v26 }
 0x543   : > { %v2272_v29 = vmul.f32 %v3126_v40, %v2265_v27 }
 0x545   : > { %v2274_v30 = vadd.f32 %v2272_v29, %v2207_v31  ;;  %v2495_v29 = vpop.permute.xlu0 %2494 }
 0x547   : > { %2382 = vrot.lane.b32.xlu2 %v5312_v54, %s3456_s20 }
 0x549   : > { %v2258_v33 = vpop.permute.xlu2 %2257 }
 0x54a   : > { %v2266_v21 = vsel %vm957_vm13, %v2264_v53, %v2258_v33 }
 0x54b   : > { %v2273_v10 = vmul.f32 %v3126_v40, %v2266_v21 }
 0x54d   : > { %v2275_v2 = vadd.f32 %v2273_v10, %v2208_v8  ;;  %v5316_v8 = vld [vmem:[#allocation28_spill] sm:$0xff] }
 0x54f   : > { %2386 = vrot.lane.b32.xlu2 %v5311_v61, %s3455_s19 }
 0x551   : > { %v2279_v16 = vpop.permute.xlu2 %2278 }
 0x552   : > { %v2296_v63 = vsel %vm484_vm0, %v5280_v24, %v2279_v16  ;;  %v4992_v16 = vpop.permute.xlu0 %2507 }
 0x557   : > { %2388 = vrot.lane.b32.xlu2 %v5312_v54, %s3455_s19 }
 0x559   : > { %v2285_v44 = vpop.permute.xlu2 %2284 }
 0x55a   : > { %v2298_v58 = vsel %vm955_vm12, %v2296_v63, %v2285_v44  ;;  %v4996_v63 = vpop.permute.xlu0 %2513 }
 0x55b   : > { %v2300_v17 = vsel %vm957_vm13, %v2298_v58, %v2291_v22 }
 0x55c   : > { %v2307_v55 = vmul.f32 %v3127_v13, %v2300_v17 }
 0x55e   : > { %v2309_v38 = vadd.f32 %v2307_v55, %v2274_v30  ;;  %v5004_v55 = vld [vmem:[%s3665_s26 + $0x10] sm:$0xff] }
 0x55f   : > { %2394 = vrot.lane.b32.xlu2 %v5312_v54, %s3457_s9 }
 0x561   : > { %v2287_v25 = vpop.permute.xlu2 %2286 }
 0x562   : > { %v2299_v24 = vsel %vm955_vm12, %v2297_v3, %v2287_v25  ;;  %v2554_v17 = vpop.permute.xlu0 %2553 }
 0x563   : > { %v2570_v39 = vsel %vm484_vm0, %v4662_v18, %v2554_v17 }
 0x567   : > { %2447 = vrot.lane.b32.xlu2 %v5313_v50, %s3456_s20 }
 0x569   : > { %v2293_v15 = vpop.permute.xlu2 %2292 }
 0x56a   : > { %v2301_v49 = vsel %vm957_vm13, %v2299_v24, %v2293_v15  ;;  %v2560_v24 = vpop.permute.xlu0 %2559  ;;  %v3130_v15 = vld [vmem:[#allocation8 + $0xb] ss:$0 sm:$0xff] }
 0x56b   : > { %v2308_v9 = vmul.f32 %v3127_v13, %v2301_v49 }
 0x56d   : > { %v2310_v59 = vadd.f32 %v2308_v9, %v2275_v2  ;;  %v4988_v2 = vld [vmem:[%s3665_s26] sm:$0xff] }
 0x56f   : > { %2449 = vrot.lane.b32.xlu2 %v5314_v52, %s3456_s20 }
 0x571   : > { %v2346_v41 = vpop.permute.xlu2 %2345 }
 0x572   : > { %v2363_v35 = vsel %vm484_vm0, %v5310_v47, %v2346_v41 }
 0x577   : > { %2453 = vrot.lane.b32.xlu2 %v5313_v50, %s3455_s19 }
 0x579   : > { %v2348_v42 = vpop.permute.xlu2 %2347 }
 0x57a   : > { %v2364_v45 = vsel %vm484_vm0, %v5281_v6, %v2348_v42 }
 0x57f   : > { %2455 = vrot.lane.b32.xlu2 %v5314_v52, %s3455_s19 }
 0x581   : > { %v2352_v19 = vpop.permute.xlu2 %2351 }
 0x582   : > { %v2365_v1 = vsel %vm955_vm12, %v2363_v35, %v2352_v19 }
 0x587   : > { %2459 = vrot.lane.b32.xlu2 %v5313_v50, %s3457_s9 }
 0x589   : > { %v2354_v57 = vpop.permute.xlu2 %2353 }
 0x58a   : > { %v2366_v14 = vsel %vm955_vm12, %v2364_v45, %v2354_v57  ;;  %v3105_v45 = vld [vmem:[#allocation10 + $0x6] ss:$0 sm:$0xff]  ;;  %v3131_v57 = vld [vmem:[#allocation10] ss:$0 sm:$0xff] }
 0x58b   : > { %v2368_v32 = vsel %vm957_vm13, %v2366_v14, %v2360_v34  ;;  %v3132_v34 = vld [vmem:[#allocation10 + $0x1] ss:$0 sm:$0xff]  ;;  %v3133_v14 = vld [vmem:[#allocation10 + $0x2] ss:$0 sm:$0xff] }
 0x58c   : > { %v2375_v31 = vmul.f32 %v3128_v28, %v2368_v32  ;;  %v3134_v32 = vld [vmem:[#allocation10 + $0x3] ss:$0 sm:$0xff] }
 0x58e   : > { %v2377_v62 = vadd.f32 %v2375_v31, %v2310_v59  ;;  %v3106_v31 = vld [vmem:[#allocation10 + $0x7] ss:$0 sm:$0xff] }
 0x58f   : > { %2461 = vrot.lane.b32.xlu2 %v5314_v52, %s3457_s9 }
 0x591   : > { %v2358_v4 = vpop.permute.xlu2 %2357 }
 0x592   : > { %v2367_v43 = vsel %vm957_vm13, %v2365_v1, %v2358_v4  ;;  %v3103_v1 = vld [vmem:[#allocation10 + $0x4] ss:$0 sm:$0xff] }
 0x593   : > { %v2374_v47 = vmul.f32 %v3128_v28, %v2367_v43  ;;  %v3104_v28 = vld [vmem:[#allocation10 + $0x5] ss:$0 sm:$0xff] }
 0x595   : > { %v2376_v5 = vadd.f32 %v2374_v47, %v2309_v38  ;;  %v2566_v47 = vpop.permute.xlu0 %2565 }
 0x597   : > { %2482 = vrot.lane.b32.xlu2 %v5315_v48, %s3456_s20 }
 0x599   : > { %v2381_v6 = vpop.permute.xlu2 %2380 }
 0x59a   : > { %v2398_v20 = vsel %vm484_vm0, %v5311_v61, %v2381_v6  ;;  %v5317_v61 = vld [vmem:[#allocation31_spill] sm:$0xff] }
 0x59f   : > { %2488 = vrot.lane.b32.xlu2 %v5315_v48, %s3455_s19 }
 0x5a1   : > { %v2383_v11 = vpop.permute.xlu2 %2382 }
 0x5a2   : > { %v2399_v40 = vsel %vm484_vm0, %v5312_v54, %v2383_v11 }
 0x5a7   : > { %2490 = vrot.lane.b32.xlu2 %v5316_v8, %s3455_s19 }
 0x5a9   : > { %v2387_v12 = vpop.permute.xlu2 %2386 }
 0x5aa   : > { %v2400_v46 = vsel %vm955_vm12, %v2398_v20, %v2387_v12 }
 0x5ab   : > { %v2402_v23 = vsel %vm957_vm13, %v2400_v46, %v2393_v7 }
 0x5ac   : > { %v2409_v56 = vmul.f32 %v3129_v37, %v2402_v23 }
 0x5ae   : > { %v2411_v53 = vadd.f32 %v2409_v56, %v2376_v5  ;;  %v5318_v5 = vld [vmem:[#allocation23_spill] sm:$0xff] }
 0x5af   : > { %2496 = vrot.lane.b32.xlu2 %v5316_v8, %s3457_s9  ;;  %v2530_v6 = vmul.f32 %v3103_v1, %v5318_v5  ;;  %v2591_v11 = vmul.f32 %v3104_v28, %v5318_v5  ;;  %v2713_v56 = vmul.f32 %v3106_v31, %v5318_v5 }
 0x5b1   : > { %v2389_v26 = vpop.permute.xlu2 %2388 }
 0x5b2   : > { %v2401_v27 = vsel %vm955_vm12, %v2399_v40, %v2389_v26 }
 0x5b7   : > { %2510 = vrot.lane.b32.xlu2 %v5317_v61, %s3455_s19 }
 0x5b9   : > { %v2395_v30 = vpop.permute.xlu2 %2394 }
 0x5ba   : > { %v2403_v33 = vsel %vm957_vm13, %v2401_v27, %v2395_v30  ;;  %v2615_v30 = vpop.permute.xlu0 %2614 }
 0x5bb   : > { %v2410_v21 = vmul.f32 %v3129_v37, %v2403_v33  ;;  %v2652_v37 = vmul.f32 %v3105_v45, %v5318_v5  ;;  %v2485_v33 = vpop.permute.xlu1 %2484 }
 0x5bd   : > { %v2412_v10 = vadd.f32 %v2410_v21, %v2377_v62  ;;  %v5319_v21 = vld [vmem:[#allocation24_spill] sm:$0xff] }
 0x5bf   : > { %2551 = vrot.lane.b32.xlu2 %v4988_v2, %s3456_s20 }
 0x5c1   : > { %v2448_v54 = vpop.permute.xlu2 %2447 }
 0x5c2   : > { %v2465_v44 = vsel %vm484_vm0, %v5313_v50, %v2448_v54  ;;  %v5014_v50 = vsel %vm955_vm12, %v2570_v39, %v2560_v24 }
 0x5c3   : > { %v2574_v5 = vsel %vm957_vm13, %v5014_v50, %v2566_v47 }
 0x5c7   : > { %2557 = vrot.lane.b32.xlu2 %v4988_v2, %s3455_s19 }
 0x5c9   : > { %v2450_v13 = vpop.permute.xlu2 %2449 }
 0x5ca   : > { %v2466_v38 = vsel %vm484_vm0, %v5314_v52, %v2450_v13 }
 0x5cf   : > { %2563 = vrot.lane.b32.xlu2 %v4988_v2, %s3457_s9 }
 0x5d1   : > { %v2454_v22 = vpop.permute.xlu2 %2453 }
 0x5d2   : > { %v2467_v58 = vsel %vm955_vm12, %v2465_v44, %v2454_v22  ;;  %v2592_v44 = vmul.f32 %v3104_v28, %v5319_v21  ;;  %v2714_v22 = vmul.f32 %v3106_v31, %v5319_v21  ;;  %v2631_v28 = vsel %vm484_vm0, %v4698_v36, %v2615_v30  ;;  %v3135_v31 = vld [vmem:[#allocation10 + $0xc] ss:$0 sm:$0xff] }
 0x5d7   : > { %2612 = vrot.lane.b32.xlu2 %v5004_v55, %s3456_s20 }
 0x5d9   : > { %v2456_v25 = vpop.permute.xlu2 %2455 }
 0x5da   : > { %v2468_v3 = vsel %vm955_vm12, %v2466_v38, %v2456_v25 }
 0x5df   : > { %2618 = vrot.lane.b32.xlu2 %v5004_v55, %s3455_s19 }
 0x5e1   : > { %v2460_v49 = vpop.permute.xlu2 %2459 }
 0x5e2   : > { %v2469_v9 = vsel %vm957_vm13, %v2467_v58, %v2460_v49  ;;  %v5051_v49 = vld [vmem:[%s3665_s26 + $0x38] sm:$0xff] }
 0x5e3   : > { %v2476_v59 = vmul.f32 %v3130_v15, %v2469_v9  ;;  %v2535_v9 = vld [vmem:[#allocation10 + $0x8] sm:$0x1] }
 0x5e5   : > { %v5019_v41 = vadd.f32 %v2476_v59, %v2411_v53  ;;  %v2516_v59 = vsel %vm484_vm0, %v5317_v61, %v4992_v16 }
 0x5e7   : > { %2624 = vrot.lane.b32.xlu2 %v5004_v55, %s3457_s9 }
 0x5e9   : > { %v2462_v18 = vpop.permute.xlu2 %2461 }
 0x5ea   : > { %v2470_v52 = vsel %vm957_vm13, %v2468_v3, %v2462_v18  ;;  %v2596_v18 = vld [vmem:[#allocation10 + $0x9] sm:$0x1] }
 0x5eb   : > { %v2477_v42 = vmul.f32 %v3130_v15, %v2470_v52  ;;  %v2621_v15 = vpop.permute.xlu0 %2620  ;;  %v2657_v52 = vld [vmem:[#allocation10 + $0xa] sm:$0x1] }
 0x5ed   : > { %v5024_v35 = vadd.f32 %v2477_v42, %v2412_v10  ;;  %v2531_v10 = vmul.f32 %v3103_v1, %v5319_v21  ;;  %v2718_v42 = vld [vmem:[#allocation10 + $0xb] sm:$0x1] }
 0x5ef   : > { %2673 = vrot.lane.b32.xlu2 %v4772_v60, %s3456_s20 }
 0x5f1   : > { %v2483_v19 = vpop.permute.xlu2 %2482 }
 0x5f2   : > { %v2500_v62 = vsel %vm484_vm0, %v5315_v48, %v2483_v19 }
 0x5f3   : > { %v2627_v36 = vpop.permute.xlu0 %2626 }
 0x5f7   : > { %2679 = vrot.lane.b32.xlu2 %v4772_v60, %s3455_s19 }
 0x5f9   : > { %v2489_v4 = vpop.permute.xlu2 %2488 }
 0x5fa   : > { %v2502_v43 = vsel %vm955_vm12, %v2500_v62, %v2489_v4 }
 0x5fb   : > { %v2504_v20 = vsel %vm957_vm13, %v2502_v43, %v2495_v29  ;;  %v2501_v29 = vsel %vm484_vm0, %v5316_v8, %v2485_v33  ;;  %v3136_v43 = vld [vmem:[#allocation10 + $0xd] ss:$0 sm:$0xff] }
 0x5fc   : > { %v2523_v12 = vmul.f32 %v3131_v57, %v2504_v20  ;;  %v2584_v7 = vmul.f32 %v3132_v34, %v2504_v20  ;;  %v2645_v46 = vmul.f32 %v3133_v14, %v2504_v20  ;;  %v2706_v23 = vmul.f32 %v3134_v32, %v2504_v20 }
 0x5fe   : > { %v2532_v53 = vadd.f32 %v2530_v6, %v2523_v12  ;;  %v2593_v48 = vadd.f32 %v2591_v11, %v2584_v7  ;;  %v2654_v40 = vadd.f32 %v2652_v37, %v2645_v46  ;;  %v2715_v26 = vadd.f32 %v2713_v56, %v2706_v23 }
 0x5ff   : > { %2687 = vrot.lane.b32.xlu2 %v4505_v0, %s3457_s9  ;;  %v2653_v0 = vmul.f32 %v3105_v45, %v5319_v21  ;;  %v2633_v6 = vsel %vm955_vm12, %v2631_v28, %v2621_v15 }
 0x600   : > { %v2635_v33 = vsel %vm957_vm13, %v2633_v6, %v2627_v36 }
 0x601   : > { %v2491_v27 = vpop.permute.xlu2 %2490 }
 0x602   : > { %v2503_v54 = vsel %vm955_vm12, %v2501_v29, %v2491_v27 }
 0x607   : > { %2740 = vrot.lane.b32.xlu2 %v4519_v51, %s3455_s19 }
 0x609   : > { %v2497_v13 = vpop.permute.xlu2 %2496 }
 0x60a   : > { %v2505_v58 = vsel %vm957_vm13, %v2503_v54, %v2497_v13 }
 0x60b   : > { %v2524_v17 = vmul.f32 %v3131_v57, %v2505_v58  ;;  %v2585_v38 = vmul.f32 %v3132_v34, %v2505_v58  ;;  %v2646_v51 = vmul.f32 %v3133_v14, %v2505_v58  ;;  %v2707_v25 = vmul.f32 %v3134_v32, %v2505_v58 }
 0x60d   : > { %v2533_v39 = vadd.f32 %v2531_v10, %v2524_v17  ;;  %v2594_v8 = vadd.f32 %v2592_v44, %v2585_v38  ;;  %v2655_v3 = vadd.f32 %v2653_v0, %v2646_v51  ;;  %v2716_v24 = vadd.f32 %v2714_v22, %v2707_v25  ;;  %v2676_v51 = vpop.permute.xlu0 %2675 }
 0x60f   : > { %2748 = vrot.lane.b32.xlu2 %v5051_v49, %s3457_s9 }
 0x611   : > { %v2511_v19 = vpop.permute.xlu2 %2510 }
 0x612   : > { %v2517_v1 = vsel %vm955_vm12, %v2516_v59, %v2511_v19  ;;  %v2682_v59 = vpop.permute.xlu1 %2681 }
 0x613   : > { %v2518_v45 = vsel %vm957_vm13, %v2517_v1, %v4996_v63 }
 0x614   : > { %v2536_v57 = vmul.f32 %v2535_v9, %v2518_v45  ;;  %v2597_v34 = vmul.f32 %v2596_v18, %v2518_v45  ;;  %v2658_v14 = vmul.f32 %v2657_v52, %v2518_v45  ;;  %v2719_v32 = vmul.f32 %v2718_v42, %v2518_v45  ;;  %v3148_v42 = vld [vmem:[%s3665_s26 + $0x28] sm:$0xff] }
 0x615   : > { %v2692_v19 = vsel %vm484_vm0, %v3148_v42, %v2676_v51 }
 0x616   : > { %v2538_v62 = vperm.slane %v2536_v57, 0  ;;  %v2599_v4 = vperm.slane %v2597_v34, 0  ;;  %v2660_v61 = vperm.slane %v2658_v14, 0  ;;  %v2721_v16 = vperm.slane %v2719_v32, 0 }
 0x617   : > { %v2694_v45 = vsel %vm955_vm12, %v2692_v19, %v2682_v59 }
 0x618   : > { %v2541_v11 = vadd.f32 %v2538_v62, %v2533_v39  ;;  %v2602_v37 = vadd.f32 %v2599_v4, %v2594_v8  ;;  %v2540_v20 = vadd.f32 %v2538_v62, %v2532_v53  ;;  %v2601_v63 = vadd.f32 %v2599_v4, %v2593_v48  ;;  %v3138_v62 = vld [vmem:[#allocation10 + $0xf] ss:$0 sm:$0xff]  ;;  %v3149_v4 = vld [vmem:[%s3665_s26 + $0x30] sm:$0xff] }
 0x619   : > { %v2552_v12 = vpop.permute.xlu2 %2551  ;;  %v2662_v7 = vadd.f32 %v2660_v61, %v2654_v40  ;;  %v2663_v46 = vadd.f32 %v2660_v61, %v2655_v3  ;;  %v2723_v23 = vadd.f32 %v2721_v16, %v2715_v26  ;;  %v5066_v56 = vadd.f32 %v2721_v16, %v2716_v24  ;;  %v2686_v3 = vpop.permute.xlu0 %2685  ;;  %v3137_v24 = vld [vmem:[#allocation10 + $0xe] ss:$0 sm:$0xff] }
 0x61a   : > { %v2548_v27 = vadd.f32 %v3135_v31, %v2541_v11  ;;  %v2609_v30 = vadd.f32 %v3136_v43, %v2602_v37  ;;  %v2569_v53 = vsel %vm484_vm0, %v4988_v2, %v2552_v12  ;;  %v2547_v40 = vadd.f32 %v3135_v31, %v2540_v20  ;;  %v2735_v32 = vpop.permute.xlu1 %2734 }
 0x61b   : > { %v2608_v17 = vadd.f32 %v3136_v43, %v2601_v63  ;;  %v2670_v57 = vadd.f32 %v3137_v24, %v2663_v46  ;;  %v2752_v61 = vsel %vm484_vm0, %v3149_v4, %v2735_v32  ;;  %v2730_v6 = vadd.f32 %v3138_v62, %v2723_v23 }
 0x61c   : > { %v2576_v29 = vmul.f32 %v2574_v5, %v2548_v27  ;;  %v2637_v47 = vmul.f32 %v2635_v33, %v2609_v30 }
 0x61e   : > { %v2578_v50 = vadd.f32 %v2576_v29, %v5024_v35 }
 0x620   : > { %v2639_v21 = vadd.f32 %v2637_v47, %v2578_v50 }
 0x621   : > { %v2558_v10 = vpop.permute.xlu2 %2557  ;;  %v2737_v28 = vpop.permute.xlu0 %2736 }
 0x622   : > { %v2571_v48 = vsel %vm955_vm12, %v2569_v53, %v2558_v10  ;;  %v2753_v37 = vsel %vm484_vm0, %v5051_v49, %v2737_v28  ;;  %v2743_v63 = vpop.permute.xlu1 %2742 }
 0x623   : > { %v2755_v12 = vsel %vm955_vm12, %v2753_v37, %v2743_v63 }
 0x629   : > { %v2564_v54 = vpop.permute.xlu2 %2563  ;;  %v2747_v16 = vpop.permute.xlu0 %2746 }
 0x62a   : > { %v2573_v26 = vsel %vm957_vm13, %v2571_v48, %v2564_v54 }
 0x62b   : > { %v2575_v13 = vmul.f32 %v2573_v26, %v2547_v40 }
 0x62d   : > { %v2577_v44 = vadd.f32 %v2575_v13, %v5019_v41 }
 0x631   : > { %v2613_v0 = vpop.permute.xlu2 %2612 }
 0x632   : > { %v2630_v35 = vsel %vm484_vm0, %v5004_v55, %v2613_v0  ;;  %v2669_v55 = vadd.f32 %v3137_v24, %v2662_v7  ;;  %v2731_v7 = vadd.f32 %v3138_v62, %v5066_v56 }
 0x639   : > { %v2619_v22 = vpop.permute.xlu2 %2618 }
 0x63a   : > { %v2632_v58 = vsel %vm955_vm12, %v2630_v35, %v2619_v22 }
 0x641   : > { %v2625_v38 = vpop.permute.xlu2 %2624 }
 0x642   : > { %v2634_v2 = vsel %vm957_vm13, %v2632_v58, %v2625_v38 }
 0x643   : > { %v2636_v25 = vmul.f32 %v2634_v2, %v2608_v17 }
 0x645   : > { %v2638_v39 = vadd.f32 %v2636_v25, %v2577_v44 }
 0x649   : > { %v2674_v8 = vpop.permute.xlu2 %2673 }
 0x64a   : > { %v2691_v41 = vsel %vm484_vm0, %v4772_v60, %v2674_v8 }
 0x651   : > { %v2680_v15 = vpop.permute.xlu2 %2679 }
 0x652   : > { %v2693_v9 = vsel %vm955_vm12, %v2691_v41, %v2680_v15 }
 0x653   : > { %v2695_v18 = vsel %vm957_vm13, %v2693_v9, %v2686_v3 }
 0x654   : > { %v2697_v52 = vmul.f32 %v2695_v18, %v2669_v55 }
 0x656   : > { %v2699_v1 = vadd.f32 %v2697_v52, %v2638_v39 }
 0x659   : > { %v2688_v34 = vpop.permute.xlu2 %2687 }
 0x65a   : > { %v2696_v60 = vsel %vm957_vm13, %v2694_v45, %v2688_v34 }
 0x65b   : > { %v2698_v14 = vmul.f32 %v2696_v60, %v2670_v57 }
 0x65d   : > { %v2700_v31 = vadd.f32 %v2698_v14, %v2639_v21 }
 0x661   : > { %v2741_v43 = vpop.permute.xlu2 %2740 }
 0x662   : > { %v2754_v5 = vsel %vm955_vm12, %v2752_v61, %v2741_v43 }
 0x663   : > { %v2756_v11 = vsel %vm957_vm13, %v2754_v5, %v2747_v16 }
 0x664   : > { %v2758_v36 = vmul.f32 %v2756_v11, %v2730_v6 }
 0x666   : > { %v2760_v20 = vadd.f32 %v2758_v36, %v2699_v1 }
 0x668   : > { %2763 = vst.msk [vmem:[%s449_s3] sm:$0xff] %vm2762_vm15, %v2760_v20 }
 0x669   : > { %v2749_v46 = vpop.permute.xlu2 %2748 }
 0x66a   : > { %v2757_v49 = vsel %vm957_vm13, %v2755_v12, %v2749_v46 }
 0x66b   : > { %v2759_v23 = vmul.f32 %v2757_v49, %v2731_v7 }
 0x66d   : > { %v2761_v27 = vadd.f32 %v2759_v23, %v2700_v31 }
 0x66f   : > { %2764 = vst.msk [vmem:[%s449_s3 + $0x8] sm:$0xff] %vm2762_vm15, %v2761_v27 }
 0x670   : > { %3387 = shalt.err (!%p3384_p8)
}
 0x671   : > { %s3458_s2 = smov 128   ;;  %s3459_s19 = smov 8  }
 0x672   : > { %3013 = dma.vmem_to_hbm [thread:$0]  (%p3598_p0), %s2779_s12, 256, %s2781_s25, %s2766_s23, %s3458_s2, %s3458_s2, %s3459_s19  }
 0x673 PF: > { %s2795_s20 = sand.u32 1, %s3430_s27   ;;  %p5320_p10 = scmp.ge.s32.totalorder %s3442_s30, 2 }
 0x674   : > { %s2796_s9 = scalar_lea.sflag [#allocation4], %s2795_s20 }
 0x675   : > { %p3039_p11 = pnand %p5320_p10, %p3606_p6 }
 0x677   : > { %p3040_p12 = pneg %p3039_p11 }
 0x679   : > { %3425 = dma.done.wait (%p3040_p12), %s2796_s9, 256  }
 0x67a   : > { %3427 = vsyncadd (%p3040_p12), %s2796_s9, 4294967040  ;;  %s5321_s5 = sld [smem:[#allocation21_spill]]  ;;  %p26_p2 = scmp.ge.s32.totalorder %s3574_s11, 4  }
 0x67b   : > { %s5322_s29 = sld [smem:[#allocation22_spill]]  ;;  %s5323_s27 = smov %s3434_s28 }
 0x67c   : > { %s5325_s30 = smov %s3574_s11  ;;  %28 = sbr.rel (!%p26_p2) target bundleno = 15 (0xf), region = 170 }
 0x680   : > { %s5324_s28 = smov %s5321_s5 }
 0x681   :  { %2802 = vsyncpa [#allocation3], 1 }
 0x682   :  { %2804 = vsyncpa [#allocation3 + $0x1], 1 }
 0x683   :  { %2805 = vsyncpa [#allocation6], 1 }
 0x684   :  { %2807 = vsyncpa [#allocation6 + $0x1], 1 }
 0x685   :  { %2808 = vsyncpa [#allocation9], 1 }
 0x686   :  { %2809 = vsyncpa [#allocation12], 1 }
 0x687   :  { %2810 = vsyncpa [#allocation4], 1 }
 0x688   :  { %2812 = vsyncpa [#allocation4 + $0x1], 1 }

</bundles_post_ra>
